<compile_context>
chip_gen: v7x
topology: tpu7x:2x2x1
jax: 0.10.0
libtpu: 0.0.40
codegen_flags: <defaults>
</compile_context>

<pallas_src>
import functools

import jax
import jax.numpy as jnp
from jax.experimental import pallas as pl
from jax.experimental.pallas import tpu as pltpu

EMBEDDING_SIZE = 10
HIDDEN_SIZE = 8
INPUT_SIZE = 4      # vocab size for Embedding
NUM_CLASS = 4
NUM_LAYERS = 2

LANE = 128          # one f32 lane tile; each GRU gate gets its own tile
BATCH_PAD = 8       # f32 sublane count


def _gru_kernel(gi0_ref, wh0_ref, bh0n_ref,
                wi1_ref, b1_ref, wh1_ref, bh1n_ref,
                fcw_ref, fcb_ref, out_ref, h1_all_ref, *, seq_len):
  """Fused 2-layer GRU + FC.  Gate order along the fused dim is r|z|n, one
  128-lane tile per gate.

  gi0_ref : (S*8, 3L)  precomputed layer-0 input-side gates (emb+W_ih0+biases)
  wh0_ref : (L, 3L)    layer-0 hidden-side weights (zero-padded)
  bh0n_ref: (8, L)     bh0_n pre-broadcast to padded batch
  wi1_ref : (L, 3L)    layer-1 input-side weights
  b1_ref  : (8, 3L)    layer-1 input-side biases (r/z: bi+bh folded; n: bi)
  wh1_ref : (L, 3L)    layer-1 hidden-side weights
  bh1n_ref: (8, L)     bh1_n pre-broadcast
  fcw_ref : (L, L), fcb_ref: (1, L)
  out_ref : (S*8, L)   lane-dense padded output
  h1_all_ref: (S*8, L) VMEM scratch collecting h1 per step
  """
  f32 = jnp.float32
  L = LANE
  BP = BATCH_PAD

  wh0 = wh0_ref[...]
  bh0n = bh0n_ref[...]
  wi1 = wi1_ref[...]
  b1 = b1_ref[...]
  wh1 = wh1_ref[...]
  bh1n = bh1n_ref[...]

  h0 = jnp.zeros((BP, L), f32)
  h1 = jnp.zeros((BP, L), f32)

  # Fully unrolled time loop (S static and small).
  for t in range(seq_len):
    # Tile-aligned (8, 3L) load of this step's layer-0 input gates.
    gi0 = gi0_ref[t * BP:(t + 1) * BP, :]

    # ----- Layer 0: the only steady-state recurrent chain (h0 -> gh0 -> h0).
    gh0 = jnp.dot(h0, wh0, preferred_element_type=f32)           # (8, 3L)
    rz0 = jax.nn.sigmoid(gi0[:, :2 * L] + gh0[:, :2 * L])
    r0 = rz0[:, :L]
    z0 = rz0[:, L:]
    n0 = jnp.tanh(gi0[:, 2 * L:] + r0 * (gh0[:, 2 * L:] + bh0n))
    h0 = (1.0 - z0) * n0 + z0 * h0

    # ----- Layer 1: hidden-side dot only needs h1[t-1] (overlaps layer 0);
    #       input-side dot needs the fresh h0.
    gh1 = jnp.dot(h1, wh1, preferred_element_type=f32)           # (8, 3L)
    gi1 = jnp.dot(h0, wi1, preferred_element_type=f32) + b1
    rz1 = jax.nn.sigmoid(gi1[:, :2 * L] + gh1[:, :2 * L])
    r1 = rz1[:, :L]
    z1 = rz1[:, L:]
    n1 = jnp.tanh(gi1[:, 2 * L:] + r1 * (gh1[:, 2 * L:] + bh1n))
    h1 = (1.0 - z1) * n1 + z1 * h1

    # Tile-aligned scratch store; FC happens once in the epilogue.
    h1_all_ref[t * BP:(t + 1) * BP, :] = h1

  # ----- Epilogue: single matmul + lane-dense bulk store.
  out = jnp.dot(h1_all_ref[...], fcw_ref[...],
                preferred_element_type=f32) + fcb_ref[...]
  out_ref[...] = out.astype(out_ref.dtype)


def prepare_fused_params(p):
  """One-time host-side weight fusion/padding (NOT on the per-call jit path)."""
  H, L = HIDDEN_SIZE, LANE

  def gate_pad_cols(w):            # (in, 3H) -> (in, 3L); gate g at [g*L, g*L+H)
    out = jnp.zeros((w.shape[0], 3 * L), jnp.float32)
    for g in range(3):
      out = out.at[:, g * L:g * L + H].set(w[:, g * H:(g + 1) * H])
    return out

  def gate_pad_bias(b):            # (3H,) -> (1, 3L)
    out = jnp.zeros((1, 3 * L), jnp.float32)
    for g in range(3):
      out = out.at[0, g * L:g * L + H].set(b[g * H:(g + 1) * H])
    return out

  def pad_rows(w, rows):
    out = jnp.zeros((rows, w.shape[1]), jnp.float32)
    return out.at[:w.shape[0], :].set(w)

  # ---- Layer 0: fold embedding + W_ih0 + [bi_r+bh_r | bi_z+bh_z | bi_n]
  #      into a (V, 3L) lookup table.
  wi0 = gate_pad_cols(p["w_ih0"].T.astype(jnp.float32))               # (E, 3L)
  b0 = gate_pad_bias(jnp.concatenate(
      [p["b_ih0"][:2 * H] + p["b_hh0"][:2 * H], p["b_ih0"][2 * H:]]))
  table = p["emb_w"].astype(jnp.float32) @ wi0 + b0                   # (V, 3L)
  wh0 = pad_rows(gate_pad_cols(p["w_hh0"].T), L)                      # (L, 3L)
  bh0n = jnp.zeros((BATCH_PAD, L), jnp.float32).at[:, :H].set(
      jnp.broadcast_to(p["b_hh0"][2 * H:], (BATCH_PAD, H)))

  # ---- Layer 1.
  wi1 = pad_rows(gate_pad_cols(p["w_ih1"].T), L)                      # (L, 3L)
  b1 = jnp.asarray(jnp.broadcast_to(
      gate_pad_bias(jnp.concatenate(
          [p["b_ih1"][:2 * H] + p["b_hh1"][:2 * H], p["b_ih1"][2 * H:]])),
      (BATCH_PAD, 3 * L)))
  wh1 = pad_rows(gate_pad_cols(p["w_hh1"].T), L)                      # (L, 3L)
  bh1n = jnp.zeros((BATCH_PAD, L), jnp.float32).at[:, :H].set(
      jnp.broadcast_to(p["b_hh1"][2 * H:], (BATCH_PAD, H)))

  # ---- FC, padded to a full lane tile so the output store is lane-dense.
  fcw = jnp.zeros((L, L), jnp.float32).at[:H, :NUM_CLASS].set(p["fc_w"].T)
  fcb = jnp.zeros((1, L), jnp.float32).at[0, :NUM_CLASS].set(p["fc_b"])

  return dict(table=table, wh0=wh0, bh0n=bh0n,
              wi1=wi1, b1=b1, wh1=wh1, bh1n=bh1n, fcw=fcw, fcb=fcb)


@jax.jit
def model_forward(x_ids, fused):
  """x_ids: (S, B) int32 token ids. Returns (S*B, NUM_CLASS) float32."""
  S, B = x_ids.shape
  assert B <= BATCH_PAD, "pad-to-8 scheme assumes batch <= 8"

  # Pad batch to 8 sublanes; gather layer-0 input gates for every timestep
  # from the fused (V, 3L) table (embedding + W_ih0 + biases pre-folded).
  ids = jnp.zeros((S, BATCH_PAD), jnp.int32).at[:, :B].set(x_ids)
  gi0_all = jnp.take(fused["table"], ids.reshape(-1), axis=0)       # (S*8, 3L)

  kernel = functools.partial(_gru_kernel, seq_len=S)
  out_pad = pl.pallas_call(
      kernel,
      out_shape=jax.ShapeDtypeStruct((S * BATCH_PAD, LANE), jnp.float32),
      in_specs=[pl.BlockSpec(memory_space=pltpu.MemorySpace.VMEM)] * 9,
      out_specs=pl.BlockSpec(memory_space=pltpu.MemorySpace.VMEM),
      scratch_shapes=[pltpu.VMEM((S * BATCH_PAD, LANE), jnp.float32)],
  )(gi0_all, fused["wh0"], fused["bh0n"],
    fused["wi1"], fused["b1"], fused["wh1"], fused["bh1n"],
    fused["fcw"], fused["fcb"])

  # Drop the padded batch rows / class lanes -> (S*B, C), t-major.
  out = out_pad.reshape(S, BATCH_PAD, LANE)[:, :B, :NUM_CLASS]
  return out.reshape(S * B, NUM_CLASS)


def init_params(key):
  """PyTorch-style parameters (Embedding N(0,1); GRU/Linear U(-1/sqrt(H), ..))."""
  H, E, V, C = HIDDEN_SIZE, EMBEDDING_SIZE, INPUT_SIZE, NUM_CLASS
  keys = jax.random.split(key, 12)
  k = 1.0 / jnp.sqrt(jnp.float32(H))

  emb_w = jax.random.normal(keys[0], (V, E), jnp.float32)

  def gru_layer(ks, in_dim):
    w_ih = jax.random.uniform(ks[0], (3 * H, in_dim), jnp.float32, -k, k)
    w_hh = jax.random.uniform(ks[1], (3 * H, H), jnp.float32, -k, k)
    b_ih = jax.random.uniform(ks[2], (3 * H,), jnp.float32, -k, k)
    b_hh = jax.random.uniform(ks[3], (3 * H,), jnp.float32, -k, k)
    return w_ih, w_hh, b_ih, b_hh

  w_ih0, w_hh0, b_ih0, b_hh0 = gru_layer(keys[1:5], E)
  w_ih1, w_hh1, b_ih1, b_hh1 = gru_layer(keys[5:9], H)

  kf = 1.0 / jnp.sqrt(jnp.float32(H))
  fc_w = jax.random.uniform(keys[9], (C, H), jnp.float32, -kf, kf)
  fc_b = jax.random.uniform(keys[10], (C,), jnp.float32, -kf, kf)

  return dict(emb_w=emb_w,
              w_ih0=w_ih0, w_hh0=w_hh0, b_ih0=b_ih0, b_hh0=b_hh0,
              w_ih1=w_ih1, w_hh1=w_hh1, b_ih1=b_ih1, b_hh1=b_hh1,
              fc_w=fc_w, fc_b=fc_b)


def reference_forward(x_ids, p):
  """Pure-JAX reference with exact PyTorch GRU semantics."""
  S, B = x_ids.shape
  H = HIDDEN_SIZE
  x = p["emb_w"][x_ids]                                             # (S, B, E)

  def cell(xt, h, w_ih, w_hh, b_ih, b_hh):
    gi = xt @ w_ih.T + b_ih
    gh = h @ w_hh.T + b_hh
    i_r, i_z, i_n = gi[:, :H], gi[:, H:2 * H], gi[:, 2 * H:]
    h_r, h_z, h_n = gh[:, :H], gh[:, H:2 * H], gh[:, 2 * H:]
    r = jax.nn.sigmoid(i_r + h_r)
    z = jax.nn.sigmoid(i_z + h_z)
    n = jnp.tanh(i_n + r * h_n)
    return (1.0 - z) * n + z * h

  h0 = jnp.zeros((B, H), jnp.float32)
  h1 = jnp.zeros((B, H), jnp.float32)
  outs = []
  for t in range(S):
    h0 = cell(x[t], h0, p["w_ih0"], p["w_hh0"], p["b_ih0"], p["b_hh0"])
    h1 = cell(h0, h1, p["w_ih1"], p["w_hh1"], p["b_ih1"], p["b_hh1"])
    outs.append(h1 @ p["fc_w"].T + p["fc_b"])
  return jnp.stack(outs).reshape(-1, NUM_CLASS)


if __name__ == "__main__":
  key = jax.random.PRNGKey(0)
  pkey, xkey = jax.random.split(key)
  params = init_params(pkey)
  fused = prepare_fused_params(params)     # one-time, off the per-call path

  seq_len, batch = 8, 2
  x_ids = jax.random.randint(xkey, (seq_len, batch), 0, INPUT_SIZE, jnp.int32)

  out = jax.block_until_ready(model_forward(x_ids, fused))
  ref = reference_forward(x_ids, params)

  assert out.shape == (seq_len * batch, NUM_CLASS), out.shape
  assert jnp.allclose(out, ref, atol=1e-4, rtol=1e-4), "mismatch vs reference"
  print("KERNEL_OK")
</pallas_src>

<mosaic_0001>
module attributes {stable_mosaic.version = 11 : i64} {
  func.func @_gru_kernel(%arg0: memref<64x384xf32, #tpu.memory_space<vmem>>, %arg1: memref<128x384xf32, #tpu.memory_space<vmem>>, %arg2: memref<8x128xf32, #tpu.memory_space<vmem>>, %arg3: memref<128x384xf32, #tpu.memory_space<vmem>>, %arg4: memref<8x384xf32, #tpu.memory_space<vmem>>, %arg5: memref<128x384xf32, #tpu.memory_space<vmem>>, %arg6: memref<8x128xf32, #tpu.memory_space<vmem>>, %arg7: memref<128x128xf32, #tpu.memory_space<vmem>>, %arg8: memref<1x128xf32, #tpu.memory_space<vmem>>, %arg9: memref<64x128xf32, #tpu.memory_space<vmem>>, %arg10: memref<64x128xf32, #tpu.memory_space<vmem>>) attributes {dimension_semantics = [], scalar_prefetch = 0 : i64, scratch_operands = 1 : i64, tpu.core_type = #tpu.core_type<tc>} {
    %c0 = arith.constant 0 : index
    %c0_0 = arith.constant 0 : index
    %0 = vector.load %arg1[%c0, %c0_0] : memref<128x384xf32, #tpu.memory_space<vmem>>, vector<128x384xf32>
    %c0_1 = arith.constant 0 : index
    %c0_2 = arith.constant 0 : index
    %1 = vector.load %arg2[%c0_1, %c0_2] : memref<8x128xf32, #tpu.memory_space<vmem>>, vector<8x128xf32>
    %c0_3 = arith.constant 0 : index
    %c0_4 = arith.constant 0 : index
    %2 = vector.load %arg3[%c0_3, %c0_4] : memref<128x384xf32, #tpu.memory_space<vmem>>, vector<128x384xf32>
    %c0_5 = arith.constant 0 : index
    %c0_6 = arith.constant 0 : index
    %3 = vector.load %arg4[%c0_5, %c0_6] : memref<8x384xf32, #tpu.memory_space<vmem>>, vector<8x384xf32>
    %c0_7 = arith.constant 0 : index
    %c0_8 = arith.constant 0 : index
    %4 = vector.load %arg5[%c0_7, %c0_8] : memref<128x384xf32, #tpu.memory_space<vmem>>, vector<128x384xf32>
    %c0_9 = arith.constant 0 : index
    %c0_10 = arith.constant 0 : index
    %5 = vector.load %arg6[%c0_9, %c0_10] : memref<8x128xf32, #tpu.memory_space<vmem>>, vector<8x128xf32>
    %cst = arith.constant 0.000000e+00 : f32
    %6 = vector.broadcast %cst : f32 to vector<8x128xf32>
    %cst_11 = arith.constant 0.000000e+00 : f32
    %7 = vector.broadcast %cst_11 : f32 to vector<8x128xf32>
    %c0_12 = arith.constant 0 : index
    %c0_13 = arith.constant 0 : index
    %8 = vector.load %arg0[%c0_12, %c0_13] : memref<64x384xf32, #tpu.memory_space<vmem>>, vector<8x384xf32>
    %cst_14 = arith.constant dense<0.000000e+00> : vector<8x384xf32>
    %9 = tpu.matmul %6, %0, %cst_14 {dimension_numbers = #tpu.dot_dimension_numbers<[1], [0], [0], [1], [0, 0, 1, 1], [], []>} : vector<8x128xf32>, vector<128x384xf32>, vector<8x384xf32> -> vector<8x384xf32>
    %10 = vector.extract_strided_slice %8 {offsets = [0, 0], sizes = [8, 256], strides = [1, 1]} : vector<8x384xf32> to vector<8x256xf32>
    %11 = vector.extract_strided_slice %9 {offsets = [0, 0], sizes = [8, 256], strides = [1, 1]} : vector<8x384xf32> to vector<8x256xf32>
    %12 = arith.addf %10, %11 : vector<8x256xf32>
    %13 = arith.negf %12 : vector<8x256xf32>
    %14 = math.exp %13 : vector<8x256xf32>
    %cst_15 = arith.constant 1.000000e+00 : f32
    %15 = vector.broadcast %cst_15 : f32 to vector<8x256xf32>
    %16 = arith.addf %15, %14 : vector<8x256xf32>
    %17 = arith.divf %15, %16 : vector<8x256xf32>
    %18 = vector.extract_strided_slice %17 {offsets = [0, 0], sizes = [8, 128], strides = [1, 1]} : vector<8x256xf32> to vector<8x128xf32>
    %19 = vector.extract_strided_slice %17 {offsets = [0, 128], sizes = [8, 128], strides = [1, 1]} : vector<8x256xf32> to vector<8x128xf32>
    %20 = vector.extract_strided_slice %8 {offsets = [0, 256], sizes = [8, 128], strides = [1, 1]} : vector<8x384xf32> to vector<8x128xf32>
    %21 = vector.extract_strided_slice %9 {offsets = [0, 256], sizes = [8, 128], strides = [1, 1]} : vector<8x384xf32> to vector<8x128xf32>
    %22 = arith.addf %21, %1 : vector<8x128xf32>
    %23 = arith.mulf %18, %22 : vector<8x128xf32>
    %24 = arith.addf %20, %23 : vector<8x128xf32>
    %25 = math.tanh %24 : vector<8x128xf32>
    %cst_16 = arith.constant 1.000000e+00 : f32
    %26 = vector.broadcast %cst_16 : f32 to vector<8x128xf32>
    %27 = arith.subf %26, %19 : vector<8x128xf32>
    %28 = arith.mulf %27, %25 : vector<8x128xf32>
    %29 = arith.mulf %19, %6 : vector<8x128xf32>
    %30 = arith.addf %28, %29 : vector<8x128xf32>
    %cst_17 = arith.constant dense<0.000000e+00> : vector<8x384xf32>
    %31 = tpu.matmul %7, %4, %cst_17 {dimension_numbers = #tpu.dot_dimension_numbers<[1], [0], [0], [1], [0, 0, 1, 1], [], []>} : vector<8x128xf32>, vector<128x384xf32>, vector<8x384xf32> -> vector<8x384xf32>
    %cst_18 = arith.constant dense<0.000000e+00> : vector<8x384xf32>
    %32 = tpu.matmul %30, %2, %cst_18 {dimension_numbers = #tpu.dot_dimension_numbers<[1], [0], [0], [1], [0, 0, 1, 1], [], []>} : vector<8x128xf32>, vector<128x384xf32>, vector<8x384xf32> -> vector<8x384xf32>
    %33 = arith.addf %32, %3 : vector<8x384xf32>
    %34 = vector.extract_strided_slice %33 {offsets = [0, 0], sizes = [8, 256], strides = [1, 1]} : vector<8x384xf32> to vector<8x256xf32>
    %35 = vector.extract_strided_slice %31 {offsets = [0, 0], sizes = [8, 256], strides = [1, 1]} : vector<8x384xf32> to vector<8x256xf32>
    %36 = arith.addf %34, %35 : vector<8x256xf32>
    %37 = arith.negf %36 : vector<8x256xf32>
    %38 = math.exp %37 : vector<8x256xf32>
    %cst_19 = arith.constant 1.000000e+00 : f32
    %39 = vector.broadcast %cst_19 : f32 to vector<8x256xf32>
    %40 = arith.addf %39, %38 : vector<8x256xf32>
    %41 = arith.divf %39, %40 : vector<8x256xf32>
    %42 = vector.extract_strided_slice %41 {offsets = [0, 0], sizes = [8, 128], strides = [1, 1]} : vector<8x256xf32> to vector<8x128xf32>
    %43 = vector.extract_strided_slice %41 {offsets = [0, 128], sizes = [8, 128], strides = [1, 1]} : vector<8x256xf32> to vector<8x128xf32>
    %44 = vector.extract_strided_slice %33 {offsets = [0, 256], sizes = [8, 128], strides = [1, 1]} : vector<8x384xf32> to vector<8x128xf32>
    %45 = vector.extract_strided_slice %31 {offsets = [0, 256], sizes = [8, 128], strides = [1, 1]} : vector<8x384xf32> to vector<8x128xf32>
    %46 = arith.addf %45, %5 : vector<8x128xf32>
    %47 = arith.mulf %42, %46 : vector<8x128xf32>
    %48 = arith.addf %44, %47 : vector<8x128xf32>
    %49 = math.tanh %48 : vector<8x128xf32>
    %cst_20 = arith.constant 1.000000e+00 : f32
    %50 = vector.broadcast %cst_20 : f32 to vector<8x128xf32>
    %51 = arith.subf %50, %43 : vector<8x128xf32>
    %52 = arith.mulf %51, %49 : vector<8x128xf32>
    %53 = arith.mulf %43, %7 : vector<8x128xf32>
    %54 = arith.addf %52, %53 : vector<8x128xf32>
    %c0_21 = arith.constant 0 : index
    %c0_22 = arith.constant 0 : index
    %55 = vector.load %arg10[%c0_21, %c0_22] : memref<64x128xf32, #tpu.memory_space<vmem>>, vector<8x128xf32>
    tpu.vector_store %arg10[%c0_21, %c0_22], %54 {strides = array<i32>} : memref<64x128xf32, #tpu.memory_space<vmem>>, vector<8x128xf32>,
    %c8 = arith.constant 8 : index
    %c0_23 = arith.constant 0 : index
    %56 = vector.load %arg0[%c8, %c0_23] : memref<64x384xf32, #tpu.memory_space<vmem>>, vector<8x384xf32>
    %cst_24 = arith.constant dense<0.000000e+00> : vector<8x384xf32>
    %57 = tpu.matmul %30, %0, %cst_24 {dimension_numbers = #tpu.dot_dimension_numbers<[1], [0], [0], [1], [0, 0, 1, 1], [], []>} : vector<8x128xf32>, vector<128x384xf32>, vector<8x384xf32> -> vector<8x384xf32>
    %58 = vector.extract_strided_slice %56 {offsets = [0, 0], sizes = [8, 256], strides = [1, 1]} : vector<8x384xf32> to vector<8x256xf32>
    %59 = vector.extract_strided_slice %57 {offsets = [0, 0], sizes = [8, 256], strides = [1, 1]} : vector<8x384xf32> to vector<8x256xf32>
    %60 = arith.addf %58, %59 : vector<8x256xf32>
    %61 = arith.negf %60 : vector<8x256xf32>
    %62 = math.exp %61 : vector<8x256xf32>
    %cst_25 = arith.constant 1.000000e+00 : f32
    %63 = vector.broadcast %cst_25 : f32 to vector<8x256xf32>
    %64 = arith.addf %63, %62 : vector<8x256xf32>
    %65 = arith.divf %63, %64 : vector<8x256xf32>
    %66 = vector.extract_strided_slice %65 {offsets = [0, 0], sizes = [8, 128], strides = [1, 1]} : vector<8x256xf32> to vector<8x128xf32>
    %67 = vector.extract_strided_slice %65 {offsets = [0, 128], sizes = [8, 128], strides = [1, 1]} : vector<8x256xf32> to vector<8x128xf32>
    %68 = vector.extract_strided_slice %56 {offsets = [0, 256], sizes = [8, 128], strides = [1, 1]} : vector<8x384xf32> to vector<8x128xf32>
    %69 = vector.extract_strided_slice %57 {offsets = [0, 256], sizes = [8, 128], strides = [1, 1]} : vector<8x384xf32> to vector<8x128xf32>
    %70 = arith.addf %69, %1 : vector<8x128xf32>
    %71 = arith.mulf %66, %70 : vector<8x128xf32>
    %72 = arith.addf %68, %71 : vector<8x128xf32>
    %73 = math.tanh %72 : vector<8x128xf32>
    %cst_26 = arith.constant 1.000000e+00 : f32
    %74 = vector.broadcast %cst_26 : f32 to vector<8x128xf32>
    %75 = arith.subf %74, %67 : vector<8x128xf32>
    %76 = arith.mulf %75, %73 : vector<8x128xf32>
    %77 = arith.mulf %67, %30 : vector<8x128xf32>
    %78 = arith.addf %76, %77 : vector<8x128xf32>
    %cst_27 = arith.constant dense<0.000000e+00> : vector<8x384xf32>
    %79 = tpu.matmul %54, %4, %cst_27 {dimension_numbers = #tpu.dot_dimension_numbers<[1], [0], [0], [1], [0, 0, 1, 1], [], []>} : vector<8x128xf32>, vector<128x384xf32>, vector<8x384xf32> -> vector<8x384xf32>
    %cst_28 = arith.constant dense<0.000000e+00> : vector<8x384xf32>
    %80 = tpu.matmul %78, %2, %cst_28 {dimension_numbers = #tpu.dot_dimension_numbers<[1], [0], [0], [1], [0, 0, 1, 1], [], []>} : vector<8x128xf32>, vector<128x384xf32>, vector<8x384xf32> -> vector<8x384xf32>
    %81 = arith.addf %80, %3 : vector<8x384xf32>
    %82 = vector.extract_strided_slice %81 {offsets = [0, 0], sizes = [8, 256], strides = [1, 1]} : vector<8x384xf32> to vector<8x256xf32>
    %83 = vector.extract_strided_slice %79 {offsets = [0, 0], sizes = [8, 256], strides = [1, 1]} : vector<8x384xf32> to vector<8x256xf32>
    %84 = arith.addf %82, %83 : vector<8x256xf32>
    %85 = arith.negf %84 : vector<8x256xf32>
    %86 = math.exp %85 : vector<8x256xf32>
    %cst_29 = arith.constant 1.000000e+00 : f32
    %87 = vector.broadcast %cst_29 : f32 to vector<8x256xf32>
    %88 = arith.addf %87, %86 : vector<8x256xf32>
    %89 = arith.divf %87, %88 : vector<8x256xf32>
    %90 = vector.extract_strided_slice %89 {offsets = [0, 0], sizes = [8, 128], strides = [1, 1]} : vector<8x256xf32> to vector<8x128xf32>
    %91 = vector.extract_strided_slice %89 {offsets = [0, 128], sizes = [8, 128], strides = [1, 1]} : vector<8x256xf32> to vector<8x128xf32>
    %92 = vector.extract_strided_slice %81 {offsets = [0, 256], sizes = [8, 128], strides = [1, 1]} : vector<8x384xf32> to vector<8x128xf32>
    %93 = vector.extract_strided_slice %79 {offsets = [0, 256], sizes = [8, 128], strides = [1, 1]} : vector<8x384xf32> to vector<8x128xf32>
    %94 = arith.addf %93, %5 : vector<8x128xf32>
    %95 = arith.mulf %90, %94 : vector<8x128xf32>
    %96 = arith.addf %92, %95 : vector<8x128xf32>
    %97 = math.tanh %96 : vector<8x128xf32>
    %cst_30 = arith.constant 1.000000e+00 : f32
    %98 = vector.broadcast %cst_30 : f32 to vector<8x128xf32>
    %99 = arith.subf %98, %91 : vector<8x128xf32>
    %100 = arith.mulf %99, %97 : vector<8x128xf32>
    %101 = arith.mulf %91, %54 : vector<8x128xf32>
    %102 = arith.addf %100, %101 : vector<8x128xf32>
    %c8_31 = arith.constant 8 : index
    %c0_32 = arith.constant 0 : index
    %103 = vector.load %arg10[%c8_31, %c0_32] : memref<64x128xf32, #tpu.memory_space<vmem>>, vector<8x128xf32>
    tpu.vector_store %arg10[%c8_31, %c0_32], %102 {strides = array<i32>} : memref<64x128xf32, #tpu.memory_space<vmem>>, vector<8x128xf32>,
    %c16 = arith.constant 16 : index
    %c0_33 = arith.constant 0 : index
    %104 = vector.load %arg0[%c16, %c0_33] : memref<64x384xf32, #tpu.memory_space<vmem>>, vector<8x384xf32>
    %cst_34 = arith.constant dense<0.000000e+00> : vector<8x384xf32>
    %105 = tpu.matmul %78, %0, %cst_34 {dimension_numbers = #tpu.dot_dimension_numbers<[1], [0], [0], [1], [0, 0, 1, 1], [], []>} : vector<8x128xf32>, vector<128x384xf32>, vector<8x384xf32> -> vector<8x384xf32>
    %106 = vector.extract_strided_slice %104 {offsets = [0, 0], sizes = [8, 256], strides = [1, 1]} : vector<8x384xf32> to vector<8x256xf32>
    %107 = vector.extract_strided_slice %105 {offsets = [0, 0], sizes = [8, 256], strides = [1, 1]} : vector<8x384xf32> to vector<8x256xf32>
    %108 = arith.addf %106, %107 : vector<8x256xf32>
    %109 = arith.negf %108 : vector<8x256xf32>
    %110 = math.exp %109 : vector<8x256xf32>
    %cst_35 = arith.constant 1.000000e+00 : f32
    %111 = vector.broadcast %cst_35 : f32 to vector<8x256xf32>
    %112 = arith.addf %111, %110 : vector<8x256xf32>
    %113 = arith.divf %111, %112 : vector<8x256xf32>
    %114 = vector.extract_strided_slice %113 {offsets = [0, 0], sizes = [8, 128], strides = [1, 1]} : vector<8x256xf32> to vector<8x128xf32>
    %115 = vector.extract_strided_slice %113 {offsets = [0, 128], sizes = [8, 128], strides = [1, 1]} : vector<8x256xf32> to vector<8x128xf32>
    %116 = vector.extract_strided_slice %104 {offsets = [0, 256], sizes = [8, 128], strides = [1, 1]} : vector<8x384xf32> to vector<8x128xf32>
    %117 = vector.extract_strided_slice %105 {offsets = [0, 256], sizes = [8, 128], strides = [1, 1]} : vector<8x384xf32> to vector<8x128xf32>
    %118 = arith.addf %117, %1 : vector<8x128xf32>
    %119 = arith.mulf %114, %118 : vector<8x128xf32>
    %120 = arith.addf %116, %119 : vector<8x128xf32>
    %121 = math.tanh %120 : vector<8x128xf32>
    %cst_36 = arith.constant 1.000000e+00 : f32
    %122 = vector.broadcast %cst_36 : f32 to vector<8x128xf32>
    %123 = arith.subf %122, %115 : vector<8x128xf32>
    %124 = arith.mulf %123, %121 : vector<8x128xf32>
    %125 = arith.mulf %115, %78 : vector<8x128xf32>
    %126 = arith.addf %124, %125 : vector<8x128xf32>
    %cst_37 = arith.constant dense<0.000000e+00> : vector<8x384xf32>
    %127 = tpu.matmul %102, %4, %cst_37 {dimension_numbers = #tpu.dot_dimension_numbers<[1], [0], [0], [1], [0, 0, 1, 1], [], []>} : vector<8x128xf32>, vector<128x384xf32>, vector<8x384xf32> -> vector<8x384xf32>
    %cst_38 = arith.constant dense<0.000000e+00> : vector<8x384xf32>
    %128 = tpu.matmul %126, %2, %cst_38 {dimension_numbers = #tpu.dot_dimension_numbers<[1], [0], [0], [1], [0, 0, 1, 1], [], []>} : vector<8x128xf32>, vector<128x384xf32>, vector<8x384xf32> -> vector<8x384xf32>
    %129 = arith.addf %128, %3 : vector<8x384xf32>
    %130 = vector.extract_strided_slice %129 {offsets = [0, 0], sizes = [8, 256], strides = [1, 1]} : vector<8x384xf32> to vector<8x256xf32>
    %131 = vector.extract_strided_slice %127 {offsets = [0, 0], sizes = [8, 256], strides = [1, 1]} : vector<8x384xf32> to vector<8x256xf32>
    %132 = arith.addf %130, %131 : vector<8x256xf32>
    %133 = arith.negf %132 : vector<8x256xf32>
    %134 = math.exp %133 : vector<8x256xf32>
    %cst_39 = arith.constant 1.000000e+00 : f32
    %135 = vector.broadcast %cst_39 : f32 to vector<8x256xf32>
    %136 = arith.addf %135, %134 : vector<8x256xf32>
    %137 = arith.divf %135, %136 : vector<8x256xf32>
    %138 = vector.extract_strided_slice %137 {offsets = [0, 0], sizes = [8, 128], strides = [1, 1]} : vector<8x256xf32> to vector<8x128xf32>
    %139 = vector.extract_strided_slice %137 {offsets = [0, 128], sizes = [8, 128], strides = [1, 1]} : vector<8x256xf32> to vector<8x128xf32>
    %140 = vector.extract_strided_slice %129 {offsets = [0, 256], sizes = [8, 128], strides = [1, 1]} : vector<8x384xf32> to vector<8x128xf32>
    %141 = vector.extract_strided_slice %127 {offsets = [0, 256], sizes = [8, 128], strides = [1, 1]} : vector<8x384xf32> to vector<8x128xf32>
    %142 = arith.addf %141, %5 : vector<8x128xf32>
    %143 = arith.mulf %138, %142 : vector<8x128xf32>
    %144 = arith.addf %140, %143 : vector<8x128xf32>
    %145 = math.tanh %144 : vector<8x128xf32>
    %cst_40 = arith.constant 1.000000e+00 : f32
    %146 = vector.broadcast %cst_40 : f32 to vector<8x128xf32>
    %147 = arith.subf %146, %139 : vector<8x128xf32>
    %148 = arith.mulf %147, %145 : vector<8x128xf32>
    %149 = arith.mulf %139, %102 : vector<8x128xf32>
    %150 = arith.addf %148, %149 : vector<8x128xf32>
    %c16_41 = arith.constant 16 : index
    %c0_42 = arith.constant 0 : index
    %151 = vector.load %arg10[%c16_41, %c0_42] : memref<64x128xf32, #tpu.memory_space<vmem>>, vector<8x128xf32>
    tpu.vector_store %arg10[%c16_41, %c0_42], %150 {strides = array<i32>} : memref<64x128xf32, #tpu.memory_space<vmem>>, vector<8x128xf32>,
    %c24 = arith.constant 24 : index
    %c0_43 = arith.constant 0 : index
    %152 = vector.load %arg0[%c24, %c0_43] : memref<64x384xf32, #tpu.memory_space<vmem>>, vector<8x384xf32>
    %cst_44 = arith.constant dense<0.000000e+00> : vector<8x384xf32>
    %153 = tpu.matmul %126, %0, %cst_44 {dimension_numbers = #tpu.dot_dimension_numbers<[1], [0], [0], [1], [0, 0, 1, 1], [], []>} : vector<8x128xf32>, vector<128x384xf32>, vector<8x384xf32> -> vector<8x384xf32>
    %154 = vector.extract_strided_slice %152 {offsets = [0, 0], sizes = [8, 256], strides = [1, 1]} : vector<8x384xf32> to vector<8x256xf32>
    %155 = vector.extract_strided_slice %153 {offsets = [0, 0], sizes = [8, 256], strides = [1, 1]} : vector<8x384xf32> to vector<8x256xf32>
    %156 = arith.addf %154, %155 : vector<8x256xf32>
    %157 = arith.negf %156 : vector<8x256xf32>
    %158 = math.exp %157 : vector<8x256xf32>
    %cst_45 = arith.constant 1.000000e+00 : f32
    %159 = vector.broadcast %cst_45 : f32 to vector<8x256xf32>
    %160 = arith.addf %159, %158 : vector<8x256xf32>
    %161 = arith.divf %159, %160 : vector<8x256xf32>
    %162 = vector.extract_strided_slice %161 {offsets = [0, 0], sizes = [8, 128], strides = [1, 1]} : vector<8x256xf32> to vector<8x128xf32>
    %163 = vector.extract_strided_slice %161 {offsets = [0, 128], sizes = [8, 128], strides = [1, 1]} : vector<8x256xf32> to vector<8x128xf32>
    %164 = vector.extract_strided_slice %152 {offsets = [0, 256], sizes = [8, 128], strides = [1, 1]} : vector<8x384xf32> to vector<8x128xf32>
    %165 = vector.extract_strided_slice %153 {offsets = [0, 256], sizes = [8, 128], strides = [1, 1]} : vector<8x384xf32> to vector<8x128xf32>
    %166 = arith.addf %165, %1 : vector<8x128xf32>
    %167 = arith.mulf %162, %166 : vector<8x128xf32>
    %168 = arith.addf %164, %167 : vector<8x128xf32>
    %169 = math.tanh %168 : vector<8x128xf32>
    %cst_46 = arith.constant 1.000000e+00 : f32
    %170 = vector.broadcast %cst_46 : f32 to vector<8x128xf32>
    %171 = arith.subf %170, %163 : vector<8x128xf32>
    %172 = arith.mulf %171, %169 : vector<8x128xf32>
    %173 = arith.mulf %163, %126 : vector<8x128xf32>
    %174 = arith.addf %172, %173 : vector<8x128xf32>
    %cst_47 = arith.constant dense<0.000000e+00> : vector<8x384xf32>
    %175 = tpu.matmul %150, %4, %cst_47 {dimension_numbers = #tpu.dot_dimension_numbers<[1], [0], [0], [1], [0, 0, 1, 1], [], []>} : vector<8x128xf32>, vector<128x384xf32>, vector<8x384xf32> -> vector<8x384xf32>
    %cst_48 = arith.constant dense<0.000000e+00> : vector<8x384xf32>
    %176 = tpu.matmul %174, %2, %cst_48 {dimension_numbers = #tpu.dot_dimension_numbers<[1], [0], [0], [1], [0, 0, 1, 1], [], []>} : vector<8x128xf32>, vector<128x384xf32>, vector<8x384xf32> -> vector<8x384xf32>
    %177 = arith.addf %176, %3 : vector<8x384xf32>
    %178 = vector.extract_strided_slice %177 {offsets = [0, 0], sizes = [8, 256], strides = [1, 1]} : vector<8x384xf32> to vector<8x256xf32>
    %179 = vector.extract_strided_slice %175 {offsets = [0, 0], sizes = [8, 256], strides = [1, 1]} : vector<8x384xf32> to vector<8x256xf32>
    %180 = arith.addf %178, %179 : vector<8x256xf32>
    %181 = arith.negf %180 : vector<8x256xf32>
    %182 = math.exp %181 : vector<8x256xf32>
    %cst_49 = arith.constant 1.000000e+00 : f32
    %183 = vector.broadcast %cst_49 : f32 to vector<8x256xf32>
    %184 = arith.addf %183, %182 : vector<8x256xf32>
    %185 = arith.divf %183, %184 : vector<8x256xf32>
    %186 = vector.extract_strided_slice %185 {offsets = [0, 0], sizes = [8, 128], strides = [1, 1]} : vector<8x256xf32> to vector<8x128xf32>
    %187 = vector.extract_strided_slice %185 {offsets = [0, 128], sizes = [8, 128], strides = [1, 1]} : vector<8x256xf32> to vector<8x128xf32>
    %188 = vector.extract_strided_slice %177 {offsets = [0, 256], sizes = [8, 128], strides = [1, 1]} : vector<8x384xf32> to vector<8x128xf32>
    %189 = vector.extract_strided_slice %175 {offsets = [0, 256], sizes = [8, 128], strides = [1, 1]} : vector<8x384xf32> to vector<8x128xf32>
    %190 = arith.addf %189, %5 : vector<8x128xf32>
    %191 = arith.mulf %186, %190 : vector<8x128xf32>
    %192 = arith.addf %188, %191 : vector<8x128xf32>
    %193 = math.tanh %192 : vector<8x128xf32>
    %cst_50 = arith.constant 1.000000e+00 : f32
    %194 = vector.broadcast %cst_50 : f32 to vector<8x128xf32>
    %195 = arith.subf %194, %187 : vector<8x128xf32>
    %196 = arith.mulf %195, %193 : vector<8x128xf32>
    %197 = arith.mulf %187, %150 : vector<8x128xf32>
    %198 = arith.addf %196, %197 : vector<8x128xf32>
    %c24_51 = arith.constant 24 : index
    %c0_52 = arith.constant 0 : index
    %199 = vector.load %arg10[%c24_51, %c0_52] : memref<64x128xf32, #tpu.memory_space<vmem>>, vector<8x128xf32>
    tpu.vector_store %arg10[%c24_51, %c0_52], %198 {strides = array<i32>} : memref<64x128xf32, #tpu.memory_space<vmem>>, vector<8x128xf32>,
    %c32 = arith.constant 32 : index
    %c0_53 = arith.constant 0 : index
    %200 = vector.load %arg0[%c32, %c0_53] : memref<64x384xf32, #tpu.memory_space<vmem>>, vector<8x384xf32>
    %cst_54 = arith.constant dense<0.000000e+00> : vector<8x384xf32>
    %201 = tpu.matmul %174, %0, %cst_54 {dimension_numbers = #tpu.dot_dimension_numbers<[1], [0], [0], [1], [0, 0, 1, 1], [], []>} : vector<8x128xf32>, vector<128x384xf32>, vector<8x384xf32> -> vector<8x384xf32>
    %202 = vector.extract_strided_slice %200 {offsets = [0, 0], sizes = [8, 256], strides = [1, 1]} : vector<8x384xf32> to vector<8x256xf32>
    %203 = vector.extract_strided_slice %201 {offsets = [0, 0], sizes = [8, 256], strides = [1, 1]} : vector<8x384xf32> to vector<8x256xf32>
    %204 = arith.addf %202, %203 : vector<8x256xf32>
    %205 = arith.negf %204 : vector<8x256xf32>
    %206 = math.exp %205 : vector<8x256xf32>
    %cst_55 = arith.constant 1.000000e+00 : f32
    %207 = vector.broadcast %cst_55 : f32 to vector<8x256xf32>
    %208 = arith.addf %207, %206 : vector<8x256xf32>
    %209 = arith.divf %207, %208 : vector<8x256xf32>
    %210 = vector.extract_strided_slice %209 {offsets = [0, 0], sizes = [8, 128], strides = [1, 1]} : vector<8x256xf32> to vector<8x128xf32>
    %211 = vector.extract_strided_slice %209 {offsets = [0, 128], sizes = [8, 128], strides = [1, 1]} : vector<8x256xf32> to vector<8x128xf32>
    %212 = vector.extract_strided_slice %200 {offsets = [0, 256], sizes = [8, 128], strides = [1, 1]} : vector<8x384xf32> to vector<8x128xf32>
    %213 = vector.extract_strided_slice %201 {offsets = [0, 256], sizes = [8, 128], strides = [1, 1]} : vector<8x384xf32> to vector<8x128xf32>
    %214 = arith.addf %213, %1 : vector<8x128xf32>
    %215 = arith.mulf %210, %214 : vector<8x128xf32>
    %216 = arith.addf %212, %215 : vector<8x128xf32>
    %217 = math.tanh %216 : vector<8x128xf32>
    %cst_56 = arith.constant 1.000000e+00 : f32
    %218 = vector.broadcast %cst_56 : f32 to vector<8x128xf32>
    %219 = arith.subf %218, %211 : vector<8x128xf32>
    %220 = arith.mulf %219, %217 : vector<8x128xf32>
    %221 = arith.mulf %211, %174 : vector<8x128xf32>
    %222 = arith.addf %220, %221 : vector<8x128xf32>
    %cst_57 = arith.constant dense<0.000000e+00> : vector<8x384xf32>
    %223 = tpu.matmul %198, %4, %cst_57 {dimension_numbers = #tpu.dot_dimension_numbers<[1], [0], [0], [1], [0, 0, 1, 1], [], []>} : vector<8x128xf32>, vector<128x384xf32>, vector<8x384xf32> -> vector<8x384xf32>
    %cst_58 = arith.constant dense<0.000000e+00> : vector<8x384xf32>
    %224 = tpu.matmul %222, %2, %cst_58 {dimension_numbers = #tpu.dot_dimension_numbers<[1], [0], [0], [1], [0, 0, 1, 1], [], []>} : vector<8x128xf32>, vector<128x384xf32>, vector<8x384xf32> -> vector<8x384xf32>
    %225 = arith.addf %224, %3 : vector<8x384xf32>
    %226 = vector.extract_strided_slice %225 {offsets = [0, 0], sizes = [8, 256], strides = [1, 1]} : vector<8x384xf32> to vector<8x256xf32>
    %227 = vector.extract_strided_slice %223 {offsets = [0, 0], sizes = [8, 256], strides = [1, 1]} : vector<8x384xf32> to vector<8x256xf32>
    %228 = arith.addf %226, %227 : vector<8x256xf32>
    %229 = arith.negf %228 : vector<8x256xf32>
    %230 = math.exp %229 : vector<8x256xf32>
    %cst_59 = arith.constant 1.000000e+00 : f32
    %231 = vector.broadcast %cst_59 : f32 to vector<8x256xf32>
    %232 = arith.addf %231, %230 : vector<8x256xf32>
    %233 = arith.divf %231, %232 : vector<8x256xf32>
    %234 = vector.extract_strided_slice %233 {offsets = [0, 0], sizes = [8, 128], strides = [1, 1]} : vector<8x256xf32> to vector<8x128xf32>
    %235 = vector.extract_strided_slice %233 {offsets = [0, 128], sizes = [8, 128], strides = [1, 1]} : vector<8x256xf32> to vector<8x128xf32>
    %236 = vector.extract_strided_slice %225 {offsets = [0, 256], sizes = [8, 128], strides = [1, 1]} : vector<8x384xf32> to vector<8x128xf32>
    %237 = vector.extract_strided_slice %223 {offsets = [0, 256], sizes = [8, 128], strides = [1, 1]} : vector<8x384xf32> to vector<8x128xf32>
    %238 = arith.addf %237, %5 : vector<8x128xf32>
    %239 = arith.mulf %234, %238 : vector<8x128xf32>
    %240 = arith.addf %236, %239 : vector<8x128xf32>
    %241 = math.tanh %240 : vector<8x128xf32>
    %cst_60 = arith.constant 1.000000e+00 : f32
    %242 = vector.broadcast %cst_60 : f32 to vector<8x128xf32>
    %243 = arith.subf %242, %235 : vector<8x128xf32>
    %244 = arith.mulf %243, %241 : vector<8x128xf32>
    %245 = arith.mulf %235, %198 : vector<8x128xf32>
    %246 = arith.addf %244, %245 : vector<8x128xf32>
    %c32_61 = arith.constant 32 : index
    %c0_62 = arith.constant 0 : index
    %247 = vector.load %arg10[%c32_61, %c0_62] : memref<64x128xf32, #tpu.memory_space<vmem>>, vector<8x128xf32>
    tpu.vector_store %arg10[%c32_61, %c0_62], %246 {strides = array<i32>} : memref<64x128xf32, #tpu.memory_space<vmem>>, vector<8x128xf32>,
    %c40 = arith.constant 40 : index
    %c0_63 = arith.constant 0 : index
    %248 = vector.load %arg0[%c40, %c0_63] : memref<64x384xf32, #tpu.memory_space<vmem>>, vector<8x384xf32>
    %cst_64 = arith.constant dense<0.000000e+00> : vector<8x384xf32>
    %249 = tpu.matmul %222, %0, %cst_64 {dimension_numbers = #tpu.dot_dimension_numbers<[1], [0], [0], [1], [0, 0, 1, 1], [], []>} : vector<8x128xf32>, vector<128x384xf32>, vector<8x384xf32> -> vector<8x384xf32>
    %250 = vector.extract_strided_slice %248 {offsets = [0, 0], sizes = [8, 256], strides = [1, 1]} : vector<8x384xf32> to vector<8x256xf32>
    %251 = vector.extract_strided_slice %249 {offsets = [0, 0], sizes = [8, 256], strides = [1, 1]} : vector<8x384xf32> to vector<8x256xf32>
    %252 = arith.addf %250, %251 : vector<8x256xf32>
    %253 = arith.negf %252 : vector<8x256xf32>
    %254 = math.exp %253 : vector<8x256xf32>
    %cst_65 = arith.constant 1.000000e+00 : f32
    %255 = vector.broadcast %cst_65 : f32 to vector<8x256xf32>
    %256 = arith.addf %255, %254 : vector<8x256xf32>
    %257 = arith.divf %255, %256 : vector<8x256xf32>
    %258 = vector.extract_strided_slice %257 {offsets = [0, 0], sizes = [8, 128], strides = [1, 1]} : vector<8x256xf32> to vector<8x128xf32>
    %259 = vector.extract_strided_slice %257 {offsets = [0, 128], sizes = [8, 128], strides = [1, 1]} : vector<8x256xf32> to vector<8x128xf32>
    %260 = vector.extract_strided_slice %248 {offsets = [0, 256], sizes = [8, 128], strides = [1, 1]} : vector<8x384xf32> to vector<8x128xf32>
    %261 = vector.extract_strided_slice %249 {offsets = [0, 256], sizes = [8, 128], strides = [1, 1]} : vector<8x384xf32> to vector<8x128xf32>
    %262 = arith.addf %261, %1 : vector<8x128xf32>
    %263 = arith.mulf %258, %262 : vector<8x128xf32>
    %264 = arith.addf %260, %263 : vector<8x128xf32>
    %265 = math.tanh %264 : vector<8x128xf32>
    %cst_66 = arith.constant 1.000000e+00 : f32
    %266 = vector.broadcast %cst_66 : f32 to vector<8x128xf32>
    %267 = arith.subf %266, %259 : vector<8x128xf32>
    %268 = arith.mulf %267, %265 : vector<8x128xf32>
    %269 = arith.mulf %259, %222 : vector<8x128xf32>
    %270 = arith.addf %268, %269 : vector<8x128xf32>
    %cst_67 = arith.constant dense<0.000000e+00> : vector<8x384xf32>
    %271 = tpu.matmul %246, %4, %cst_67 {dimension_numbers = #tpu.dot_dimension_numbers<[1], [0], [0], [1], [0, 0, 1, 1], [], []>} : vector<8x128xf32>, vector<128x384xf32>, vector<8x384xf32> -> vector<8x384xf32>
    %cst_68 = arith.constant dense<0.000000e+00> : vector<8x384xf32>
    %272 = tpu.matmul %270, %2, %cst_68 {dimension_numbers = #tpu.dot_dimension_numbers<[1], [0], [0], [1], [0, 0, 1, 1], [], []>} : vector<8x128xf32>, vector<128x384xf32>, vector<8x384xf32> -> vector<8x384xf32>
    %273 = arith.addf %272, %3 : vector<8x384xf32>
    %274 = vector.extract_strided_slice %273 {offsets = [0, 0], sizes = [8, 256], strides = [1, 1]} : vector<8x384xf32> to vector<8x256xf32>
    %275 = vector.extract_strided_slice %271 {offsets = [0, 0], sizes = [8, 256], strides = [1, 1]} : vector<8x384xf32> to vector<8x256xf32>
    %276 = arith.addf %274, %275 : vector<8x256xf32>
    %277 = arith.negf %276 : vector<8x256xf32>
    %278 = math.exp %277 : vector<8x256xf32>
    %cst_69 = arith.constant 1.000000e+00 : f32
    %279 = vector.broadcast %cst_69 : f32 to vector<8x256xf32>
    %280 = arith.addf %279, %278 : vector<8x256xf32>
    %281 = arith.divf %279, %280 : vector<8x256xf32>
    %282 = vector.extract_strided_slice %281 {offsets = [0, 0], sizes = [8, 128], strides = [1, 1]} : vector<8x256xf32> to vector<8x128xf32>
    %283 = vector.extract_strided_slice %281 {offsets = [0, 128], sizes = [8, 128], strides = [1, 1]} : vector<8x256xf32> to vector<8x128xf32>
    %284 = vector.extract_strided_slice %273 {offsets = [0, 256], sizes = [8, 128], strides = [1, 1]} : vector<8x384xf32> to vector<8x128xf32>
    %285 = vector.extract_strided_slice %271 {offsets = [0, 256], sizes = [8, 128], strides = [1, 1]} : vector<8x384xf32> to vector<8x128xf32>
    %286 = arith.addf %285, %5 : vector<8x128xf32>
    %287 = arith.mulf %282, %286 : vector<8x128xf32>
    %288 = arith.addf %284, %287 : vector<8x128xf32>
    %289 = math.tanh %288 : vector<8x128xf32>
    %cst_70 = arith.constant 1.000000e+00 : f32
    %290 = vector.broadcast %cst_70 : f32 to vector<8x128xf32>
    %291 = arith.subf %290, %283 : vector<8x128xf32>
    %292 = arith.mulf %291, %289 : vector<8x128xf32>
    %293 = arith.mulf %283, %246 : vector<8x128xf32>
    %294 = arith.addf %292, %293 : vector<8x128xf32>
    %c40_71 = arith.constant 40 : index
    %c0_72 = arith.constant 0 : index
    %295 = vector.load %arg10[%c40_71, %c0_72] : memref<64x128xf32, #tpu.memory_space<vmem>>, vector<8x128xf32>
    tpu.vector_store %arg10[%c40_71, %c0_72], %294 {strides = array<i32>} : memref<64x128xf32, #tpu.memory_space<vmem>>, vector<8x128xf32>,
    %c48 = arith.constant 48 : index
    %c0_73 = arith.constant 0 : index
    %296 = vector.load %arg0[%c48, %c0_73] : memref<64x384xf32, #tpu.memory_space<vmem>>, vector<8x384xf32>
    %cst_74 = arith.constant dense<0.000000e+00> : vector<8x384xf32>
    %297 = tpu.matmul %270, %0, %cst_74 {dimension_numbers = #tpu.dot_dimension_numbers<[1], [0], [0], [1], [0, 0, 1, 1], [], []>} : vector<8x128xf32>, vector<128x384xf32>, vector<8x384xf32> -> vector<8x384xf32>
    %298 = vector.extract_strided_slice %296 {offsets = [0, 0], sizes = [8, 256], strides = [1, 1]} : vector<8x384xf32> to vector<8x256xf32>
    %299 = vector.extract_strided_slice %297 {offsets = [0, 0], sizes = [8, 256], strides = [1, 1]} : vector<8x384xf32> to vector<8x256xf32>
    %300 = arith.addf %298, %299 : vector<8x256xf32>
    %301 = arith.negf %300 : vector<8x256xf32>
    %302 = math.exp %301 : vector<8x256xf32>
    %cst_75 = arith.constant 1.000000e+00 : f32
    %303 = vector.broadcast %cst_75 : f32 to vector<8x256xf32>
    %304 = arith.addf %303, %302 : vector<8x256xf32>
    %305 = arith.divf %303, %304 : vector<8x256xf32>
    %306 = vector.extract_strided_slice %305 {offsets = [0, 0], sizes = [8, 128], strides = [1, 1]} : vector<8x256xf32> to vector<8x128xf32>
    %307 = vector.extract_strided_slice %305 {offsets = [0, 128], sizes = [8, 128], strides = [1, 1]} : vector<8x256xf32> to vector<8x128xf32>
    %308 = vector.extract_strided_slice %296 {offsets = [0, 256], sizes = [8, 128], strides = [1, 1]} : vector<8x384xf32> to vector<8x128xf32>
    %309 = vector.extract_strided_slice %297 {offsets = [0, 256], sizes = [8, 128], strides = [1, 1]} : vector<8x384xf32> to vector<8x128xf32>
    %310 = arith.addf %309, %1 : vector<8x128xf32>
    %311 = arith.mulf %306, %310 : vector<8x128xf32>
    %312 = arith.addf %308, %311 : vector<8x128xf32>
    %313 = math.tanh %312 : vector<8x128xf32>
    %cst_76 = arith.constant 1.000000e+00 : f32
    %314 = vector.broadcast %cst_76 : f32 to vector<8x128xf32>
    %315 = arith.subf %314, %307 : vector<8x128xf32>
    %316 = arith.mulf %315, %313 : vector<8x128xf32>
    %317 = arith.mulf %307, %270 : vector<8x128xf32>
    %318 = arith.addf %316, %317 : vector<8x128xf32>
    %cst_77 = arith.constant dense<0.000000e+00> : vector<8x384xf32>
    %319 = tpu.matmul %294, %4, %cst_77 {dimension_numbers = #tpu.dot_dimension_numbers<[1], [0], [0], [1], [0, 0, 1, 1], [], []>} : vector<8x128xf32>, vector<128x384xf32>, vector<8x384xf32> -> vector<8x384xf32>
    %cst_78 = arith.constant dense<0.000000e+00> : vector<8x384xf32>
    %320 = tpu.matmul %318, %2, %cst_78 {dimension_numbers = #tpu.dot_dimension_numbers<[1], [0], [0], [1], [0, 0, 1, 1], [], []>} : vector<8x128xf32>, vector<128x384xf32>, vector<8x384xf32> -> vector<8x384xf32>
    %321 = arith.addf %320, %3 : vector<8x384xf32>
    %322 = vector.extract_strided_slice %321 {offsets = [0, 0], sizes = [8, 256], strides = [1, 1]} : vector<8x384xf32> to vector<8x256xf32>
    %323 = vector.extract_strided_slice %319 {offsets = [0, 0], sizes = [8, 256], strides = [1, 1]} : vector<8x384xf32> to vector<8x256xf32>
    %324 = arith.addf %322, %323 : vector<8x256xf32>
    %325 = arith.negf %324 : vector<8x256xf32>
    %326 = math.exp %325 : vector<8x256xf32>
    %cst_79 = arith.constant 1.000000e+00 : f32
    %327 = vector.broadcast %cst_79 : f32 to vector<8x256xf32>
    %328 = arith.addf %327, %326 : vector<8x256xf32>
    %329 = arith.divf %327, %328 : vector<8x256xf32>
    %330 = vector.extract_strided_slice %329 {offsets = [0, 0], sizes = [8, 128], strides = [1, 1]} : vector<8x256xf32> to vector<8x128xf32>
    %331 = vector.extract_strided_slice %329 {offsets = [0, 128], sizes = [8, 128], strides = [1, 1]} : vector<8x256xf32> to vector<8x128xf32>
    %332 = vector.extract_strided_slice %321 {offsets = [0, 256], sizes = [8, 128], strides = [1, 1]} : vector<8x384xf32> to vector<8x128xf32>
    %333 = vector.extract_strided_slice %319 {offsets = [0, 256], sizes = [8, 128], strides = [1, 1]} : vector<8x384xf32> to vector<8x128xf32>
    %334 = arith.addf %333, %5 : vector<8x128xf32>
    %335 = arith.mulf %330, %334 : vector<8x128xf32>
    %336 = arith.addf %332, %335 : vector<8x128xf32>
    %337 = math.tanh %336 : vector<8x128xf32>
    %cst_80 = arith.constant 1.000000e+00 : f32
    %338 = vector.broadcast %cst_80 : f32 to vector<8x128xf32>
    %339 = arith.subf %338, %331 : vector<8x128xf32>
    %340 = arith.mulf %339, %337 : vector<8x128xf32>
    %341 = arith.mulf %331, %294 : vector<8x128xf32>
    %342 = arith.addf %340, %341 : vector<8x128xf32>
    %c48_81 = arith.constant 48 : index
    %c0_82 = arith.constant 0 : index
    %343 = vector.load %arg10[%c48_81, %c0_82] : memref<64x128xf32, #tpu.memory_space<vmem>>, vector<8x128xf32>
    tpu.vector_store %arg10[%c48_81, %c0_82], %342 {strides = array<i32>} : memref<64x128xf32, #tpu.memory_space<vmem>>, vector<8x128xf32>,
    %c56 = arith.constant 56 : index
    %c0_83 = arith.constant 0 : index
    %344 = vector.load %arg0[%c56, %c0_83] : memref<64x384xf32, #tpu.memory_space<vmem>>, vector<8x384xf32>
    %cst_84 = arith.constant dense<0.000000e+00> : vector<8x384xf32>
    %345 = tpu.matmul %318, %0, %cst_84 {dimension_numbers = #tpu.dot_dimension_numbers<[1], [0], [0], [1], [0, 0, 1, 1], [], []>} : vector<8x128xf32>, vector<128x384xf32>, vector<8x384xf32> -> vector<8x384xf32>
    %346 = vector.extract_strided_slice %344 {offsets = [0, 0], sizes = [8, 256], strides = [1, 1]} : vector<8x384xf32> to vector<8x256xf32>
    %347 = vector.extract_strided_slice %345 {offsets = [0, 0], sizes = [8, 256], strides = [1, 1]} : vector<8x384xf32> to vector<8x256xf32>
    %348 = arith.addf %346, %347 : vector<8x256xf32>
    %349 = arith.negf %348 : vector<8x256xf32>
    %350 = math.exp %349 : vector<8x256xf32>
    %cst_85 = arith.constant 1.000000e+00 : f32
    %351 = vector.broadcast %cst_85 : f32 to vector<8x256xf32>
    %352 = arith.addf %351, %350 : vector<8x256xf32>
    %353 = arith.divf %351, %352 : vector<8x256xf32>
    %354 = vector.extract_strided_slice %353 {offsets = [0, 0], sizes = [8, 128], strides = [1, 1]} : vector<8x256xf32> to vector<8x128xf32>
    %355 = vector.extract_strided_slice %353 {offsets = [0, 128], sizes = [8, 128], strides = [1, 1]} : vector<8x256xf32> to vector<8x128xf32>
    %356 = vector.extract_strided_slice %344 {offsets = [0, 256], sizes = [8, 128], strides = [1, 1]} : vector<8x384xf32> to vector<8x128xf32>
    %357 = vector.extract_strided_slice %345 {offsets = [0, 256], sizes = [8, 128], strides = [1, 1]} : vector<8x384xf32> to vector<8x128xf32>
    %358 = arith.addf %357, %1 : vector<8x128xf32>
    %359 = arith.mulf %354, %358 : vector<8x128xf32>
    %360 = arith.addf %356, %359 : vector<8x128xf32>
    %361 = math.tanh %360 : vector<8x128xf32>
    %cst_86 = arith.constant 1.000000e+00 : f32
    %362 = vector.broadcast %cst_86 : f32 to vector<8x128xf32>
    %363 = arith.subf %362, %355 : vector<8x128xf32>
    %364 = arith.mulf %363, %361 : vector<8x128xf32>
    %365 = arith.mulf %355, %318 : vector<8x128xf32>
    %366 = arith.addf %364, %365 : vector<8x128xf32>
    %cst_87 = arith.constant dense<0.000000e+00> : vector<8x384xf32>
    %367 = tpu.matmul %342, %4, %cst_87 {dimension_numbers = #tpu.dot_dimension_numbers<[1], [0], [0], [1], [0, 0, 1, 1], [], []>} : vector<8x128xf32>, vector<128x384xf32>, vector<8x384xf32> -> vector<8x384xf32>
    %cst_88 = arith.constant dense<0.000000e+00> : vector<8x384xf32>
    %368 = tpu.matmul %366, %2, %cst_88 {dimension_numbers = #tpu.dot_dimension_numbers<[1], [0], [0], [1], [0, 0, 1, 1], [], []>} : vector<8x128xf32>, vector<128x384xf32>, vector<8x384xf32> -> vector<8x384xf32>
    %369 = arith.addf %368, %3 : vector<8x384xf32>
    %370 = vector.extract_strided_slice %369 {offsets = [0, 0], sizes = [8, 256], strides = [1, 1]} : vector<8x384xf32> to vector<8x256xf32>
    %371 = vector.extract_strided_slice %367 {offsets = [0, 0], sizes = [8, 256], strides = [1, 1]} : vector<8x384xf32> to vector<8x256xf32>
    %372 = arith.addf %370, %371 : vector<8x256xf32>
    %373 = arith.negf %372 : vector<8x256xf32>
    %374 = math.exp %373 : vector<8x256xf32>
    %cst_89 = arith.constant 1.000000e+00 : f32
    %375 = vector.broadcast %cst_89 : f32 to vector<8x256xf32>
    %376 = arith.addf %375, %374 : vector<8x256xf32>
    %377 = arith.divf %375, %376 : vector<8x256xf32>
    %378 = vector.extract_strided_slice %377 {offsets = [0, 0], sizes = [8, 128], strides = [1, 1]} : vector<8x256xf32> to vector<8x128xf32>
    %379 = vector.extract_strided_slice %377 {offsets = [0, 128], sizes = [8, 128], strides = [1, 1]} : vector<8x256xf32> to vector<8x128xf32>
    %380 = vector.extract_strided_slice %369 {offsets = [0, 256], sizes = [8, 128], strides = [1, 1]} : vector<8x384xf32> to vector<8x128xf32>
    %381 = vector.extract_strided_slice %367 {offsets = [0, 256], sizes = [8, 128], strides = [1, 1]} : vector<8x384xf32> to vector<8x128xf32>
    %382 = arith.addf %381, %5 : vector<8x128xf32>
    %383 = arith.mulf %378, %382 : vector<8x128xf32>
    %384 = arith.addf %380, %383 : vector<8x128xf32>
    %385 = math.tanh %384 : vector<8x128xf32>
    %cst_90 = arith.constant 1.000000e+00 : f32
    %386 = vector.broadcast %cst_90 : f32 to vector<8x128xf32>
    %387 = arith.subf %386, %379 : vector<8x128xf32>
    %388 = arith.mulf %387, %385 : vector<8x128xf32>
    %389 = arith.mulf %379, %342 : vector<8x128xf32>
    %390 = arith.addf %388, %389 : vector<8x128xf32>
    %c56_91 = arith.constant 56 : index
    %c0_92 = arith.constant 0 : index
    %391 = vector.load %arg10[%c56_91, %c0_92] : memref<64x128xf32, #tpu.memory_space<vmem>>, vector<8x128xf32>
    tpu.vector_store %arg10[%c56_91, %c0_92], %390 {strides = array<i32>} : memref<64x128xf32, #tpu.memory_space<vmem>>, vector<8x128xf32>,
    %c0_93 = arith.constant 0 : index
    %c0_94 = arith.constant 0 : index
    %392 = vector.load %arg10[%c0_93, %c0_94] : memref<64x128xf32, #tpu.memory_space<vmem>>, vector<64x128xf32>
    %c0_95 = arith.constant 0 : index
    %c0_96 = arith.constant 0 : index
    %393 = vector.load %arg7[%c0_95, %c0_96] : memref<128x128xf32, #tpu.memory_space<vmem>>, vector<128x128xf32>
    %cst_97 = arith.constant dense<0.000000e+00> : vector<64x128xf32>
    %394 = tpu.matmul %392, %393, %cst_97 {dimension_numbers = #tpu.dot_dimension_numbers<[1], [0], [0], [1], [0, 0, 1, 1], [], []>} : vector<64x128xf32>, vector<128x128xf32>, vector<64x128xf32> -> vector<64x128xf32>
    %c0_98 = arith.constant 0 : index
    %c0_99 = arith.constant 0 : index
    %395 = vector.load %arg8[%c0_98, %c0_99] : memref<1x128xf32, #tpu.memory_space<vmem>>, vector<1x128xf32>
    %396 = vector.broadcast %395 : vector<1x128xf32> to vector<64x128xf32>
    %397 = arith.addf %394, %396 : vector<64x128xf32>
    %c0_100 = arith.constant 0 : index
    %c0_101 = arith.constant 0 : index
    %398 = vector.load %arg9[%c0_100, %c0_101] : memref<64x128xf32, #tpu.memory_space<vmem>>, vector<64x128xf32>
    tpu.vector_store %arg9[%c0_100, %c0_101], %397 {strides = array<i32>} : memref<64x128xf32, #tpu.memory_space<vmem>>, vector<64x128xf32>,
    return
  }
}

</mosaic_0001>

<bundles_post_ra>
// kernel: model_forward.1
= control target key start
LH: loop header
LB: loop body
LE: loop exit
PB: predicated region body
PF: predicated region fallthrough
CT: control target
= control target key end

     0   :  { %v8833_v3 = vmov 0.0   ;;  %vm7024_vm0 = vmmov 0   ;;  %s8823_s1 = inlined_call_operand.vmem [shape: f32[128,384], index: 1, kind: input, shape index: {}]   ;;  %s8824_s5 = inlined_call_operand.vmem [shape: f32[128,384], index: 5, kind: input, shape index: {}]   ;;  %s8825_s3 = inlined_call_operand.vmem [shape: f32[128,384], index: 3, kind: input, shape index: {}]   ;;  %s8826_s0 = inlined_call_operand.vmem [shape: f32[64,384], index: 0, kind: input, shape index: {}]   ;;  %s8827_s2 = inlined_call_operand.vmem [shape: f32[8,128], index: 2, kind: input, shape index: {}]   ;;  %s8828_s4 = inlined_call_operand.vmem [shape: f32[8,384], index: 4, kind: input, shape index: {}]   ;;  %s8829_s6 = inlined_call_operand.vmem [shape: f32[8,128], index: 6, kind: input, shape index: {}]   ;;  %s8830_s7 = inlined_call_operand.vmem [shape: f32[128,128], index: 7, kind: input, shape index: {}]   ;;  %s8831_s8 = inlined_call_operand.vmem [shape: f32[1,128], index: 8, kind: input, shape index: {}]   ;;  %s8832_s9 = inlined_call_operand.vmem [shape: f32[64,128], index: 9, kind: output, shape index: {}]  }
   0x1   :  { %v33_v0 = vld [vmem:[%s8823_s1 + $0x8] sm:$0xff]  ;;  %v36_v1 = vld [vmem:[%s8823_s1 + $0x20] sm:$0xff]  ;;  %248 = vmatprep.mubr.f32.mxu1 %v8833_v3  ;;  %411 = vmatprep.mubr.f32.mxu0 %v8833_v3  ;;  %v35_v5 = vld [vmem:[%s8823_s1 + $0x18] sm:$0xff] }
   0x2   :  { %v32_v2 = vld [vmem:[%s8823_s1] sm:$0xff]  ;;  %v7086_v4 = vpack.c.bf16 %v36_v1, %v33_v0  ;;  %v39_v6 = vld [vmem:[%s8823_s1 + $0x38] sm:$0xff]  ;;  %v42_v7 = vld [vmem:[%s8823_s1 + $0x50] sm:$0xff] }
   0x3   :  { %v7097_v8 = vpack.c.bf16 %v35_v5, %v32_v2  ;;  %v7099_v9 = vpack.c.bf16 %v42_v7, %v39_v6  ;;  %v38_v10 = vld [vmem:[%s8823_s1 + $0x30] sm:$0xff]  ;;  %v41_v11 = vld [vmem:[%s8823_s1 + $0x48] sm:$0xff]  ;;  %v48_v13 = vld [vmem:[%s8823_s1 + $0x80] sm:$0xff] }
   0x4   :  { %8978 = vst [vmem:[#allocation3_spill] sm:$0xff] %v7086_v4  ;;  %v45_v12 = vld [vmem:[%s8823_s1 + $0x68] sm:$0xff]  ;;  %5447 = vmatprep.subr.bf16.mxu1 %v7086_v4  ;;  %v7115_v14 = vpack.c.bf16 %v41_v11, %v38_v10  ;;  %v44_v16 = vld [vmem:[%s8823_s1 + $0x60] sm:$0xff]  ;;  %v47_v17 = vld [vmem:[%s8823_s1 + $0x78] sm:$0xff]  ;;  %v8837_v10 = vmov 0.0|0.0  }
   0x5   :  { %5449 = vmatpush1.bf16.msra.mxu1 %v7097_v8  ;;  %v7118_v15 = vpack.c.bf16 %v48_v13, %v45_v12  ;;  %v51_v18 = vld [vmem:[%s8823_s1 + $0x98] sm:$0xff]  ;;  %v54_v19 = vld [vmem:[%s8823_s1 + $0xb0] sm:$0xff]  ;;  %v7133_v20 = vpack.c.bf16 %v47_v17, %v44_v16  ;;  %v53_v23 = vld [vmem:[%s8823_s1 + $0xa8] sm:$0xff] }
   0x6   :  { %5451 = vmatprep.subr.bf16.mxu1 %v7099_v9  ;;  %v7136_v21 = vpack.c.bf16 %v54_v19, %v51_v18  ;;  %v50_v22 = vld [vmem:[%s8823_s1 + $0x90] sm:$0xff]  ;;  %v57_v24 = vld [vmem:[%s8823_s1 + $0xc8] sm:$0xff]  ;;  %v60_v25 = vld [vmem:[%s8823_s1 + $0xe0] sm:$0xff] }
   0x7   :  { %v7151_v26 = vpack.c.bf16 %v53_v23, %v50_v22  ;;  %v7154_v27 = vpack.c.bf16 %v60_v25, %v57_v24  ;;  %v56_v28 = vld [vmem:[%s8823_s1 + $0xc0] sm:$0xff]  ;;  %v59_v29 = vld [vmem:[%s8823_s1 + $0xd8] sm:$0xff]  ;;  %v66_v31 = vld [vmem:[%s8823_s1 + $0x110] sm:$0xff] }
   0x8   :  { %v63_v30 = vld [vmem:[%s8823_s1 + $0xf8] sm:$0xff]  ;;  %v62_v32 = vld [vmem:[%s8823_s1 + $0xf0] sm:$0xff]  ;;  %v65_v33 = vld [vmem:[%s8823_s1 + $0x108] sm:$0xff]  ;;  %v7175_v34 = vpack.c.bf16 %v59_v29, %v56_v28 }
   0x9   :  { %5453 = vmatpush1.bf16.msra.mxu1 %v7115_v14  ;;  %v133_v35 = vld [vmem:[%s8824_s5 + $0x8] sm:$0xff]  ;;  %v136_v36 = vld [vmem:[%s8824_s5 + $0x20] sm:$0xff]  ;;  %v7187_v38 = vpack.c.bf16 %v66_v31, %v63_v30  ;;  %v135_v42 = vld [vmem:[%s8824_s5 + $0x18] sm:$0xff]  ;;  %v7218_v49 = vpack.c.bf16 %v65_v33, %v62_v32 }
   0xa   :  { %5455 = vmatprep.subr.bf16.mxu1 %v7118_v15  ;;  %v132_v37 = vld [vmem:[%s8824_s5] sm:$0xff]  ;;  %v69_v39 = vld [vmem:[%s8823_s1 + $0x128] sm:$0xff]  ;;  %v7195_v41 = vpack.c.bf16 %v136_v36, %v133_v35  ;;  %v139_v44 = vld [vmem:[%s8824_s5 + $0x38] sm:$0xff] }
   0xb   :  { %8979 = vst [vmem:[#allocation4_spill] sm:$0xff] %v7187_v38  ;;  %v72_v40 = vld [vmem:[%s8823_s1 + $0x140] sm:$0xff]  ;;  %v7200_v43 = vpack.c.bf16 %v135_v42, %v132_v37  ;;  %v142_v45 = vld [vmem:[%s8824_s5 + $0x50] sm:$0xff]  ;;  %v141_v48 = vld [vmem:[%s8824_s5 + $0x48] sm:$0xff] }
   0xc   :  { %8980 = vst [vmem:[#allocation5_spill] sm:$0xff] %v7195_v41  ;;  %v138_v46 = vld [vmem:[%s8824_s5 + $0x30] sm:$0xff]  ;;  %5503 = vmatprep.subr.bf16.mxu0 %v7195_v41  ;;  %v7212_v47 = vpack.c.bf16 %v142_v45, %v139_v44  ;;  %8983 = vst [vmem:[#allocation8_spill] sm:$0xff] %v7218_v49  ;;  %v68_v50 = vld [vmem:[%s8823_s1 + $0x120] sm:$0xff]  ;;  %v7233_v54 = vpack.c.bf16 %v72_v40, %v69_v39 }
   0xd   :  { %5457 = vmatpush1.bf16.msra.mxu1 %v7133_v20  ;;  %8981 = vst [vmem:[#allocation6_spill] sm:$0xff] %v7200_v43  ;;  %5505 = vmatpush1.bf16.msra.mxu0 %v7200_v43  ;;  %v7224_v51 = vpack.c.bf16 %v141_v48, %v138_v46  ;;  %v145_v52 = vld [vmem:[%s8824_s5 + $0x68] sm:$0xff]  ;;  %v148_v53 = vld [vmem:[%s8824_s5 + $0x80] sm:$0xff]  ;;  %v71_v55 = vld [vmem:[%s8823_s1 + $0x138] sm:$0xff] }
   0xe   :  { %5459 = vmatprep.subr.bf16.mxu1 %v7136_v21  ;;  %8982 = vst [vmem:[#allocation7_spill] sm:$0xff] %v7212_v47  ;;  %8985 = vst [vmem:[#allocation10_spill] sm:$0xff] %v7233_v54  ;;  %5507 = vmatprep.subr.bf16.mxu0 %v7212_v47  ;;  %v7239_v56 = vpack.c.bf16 %v148_v53, %v145_v52  ;;  %v144_v57 = vld [vmem:[%s8824_s5 + $0x60] sm:$0xff]  ;;  %v147_v58 = vld [vmem:[%s8824_s5 + $0x78] sm:$0xff]  ;;  %v7254_v61 = vpack.c.bf16 %v71_v55, %v68_v50 }
   0xf   :  { %8984 = vst [vmem:[#allocation9_spill] sm:$0xff] %v7224_v51  ;;  %v75_v59 = vld [vmem:[%s8823_s1 + $0x158] sm:$0xff]  ;;  %v78_v60 = vld [vmem:[%s8823_s1 + $0x170] sm:$0xff]  ;;  %v7257_v62 = vpack.c.bf16 %v147_v58, %v144_v57  ;;  %v77_v1 = vld [vmem:[%s8823_s1 + $0x168] sm:$0xff] }
  0x10   :  { %8986 = vst [vmem:[#allocation11_spill] sm:$0xff] %v7239_v56  ;;  %8987 = vst [vmem:[#allocation12_spill] sm:$0xff] %v7254_v61  ;;  %v7260_v63 = vpack.c.bf16 %v78_v60, %v75_v59  ;;  %v74_v0 = vld [vmem:[%s8823_s1 + $0x150] sm:$0xff]  ;;  %v37_v6 = vld [vmem:[%s8823_s1 + $0x28] sm:$0xff] }
  0x11   :  { %5461 = vmatpush1.bf16.msra.mxu1 %v7151_v26  ;;  %5509 = vmatpush1.bf16.msra.mxu0 %v7224_v51  ;;  %8988 = vst [vmem:[#allocation13_spill] sm:$0xff] %v7257_v62  ;;  %v7270_v2 = vpack.c.bf16 %v77_v1, %v74_v0  ;;  %v34_v5 = vld [vmem:[%s8823_s1 + $0x10] sm:$0xff]  ;;  %v40_v11 = vld [vmem:[%s8823_s1 + $0x40] sm:$0xff]  ;;  %v43_v12 = vld [vmem:[%s8823_s1 + $0x58] sm:$0xff] }
  0x12   :  { %5463 = vmatprep.subr.bf16.mxu1 %v7154_v27  ;;  %8989 = vst [vmem:[#allocation14_spill] sm:$0xff] %v7260_v63  ;;  %5511 = vmatprep.subr.bf16.mxu0 %v7239_v56  ;;  %v7281_v7 = vpack.c.bf16 %v37_v6, %v34_v5  ;;  %v7292_v13 = vpack.c.bf16 %v43_v12, %v40_v11  ;;  %v46_v16 = vld [vmem:[%s8823_s1 + $0x70] sm:$0xff]  ;;  %v49_v17 = vld [vmem:[%s8823_s1 + $0x88] sm:$0xff]  ;;  %v52_v19 = vld [vmem:[%s8823_s1 + $0xa0] sm:$0xff] }
  0x13   :  { %8990 = vst [vmem:[#allocation15_spill] sm:$0xff] %v7270_v2  ;;  %v7304_v18 = vpack.c.bf16 %v49_v17, %v46_v16  ;;  %v55_v22 = vld [vmem:[%s8823_s1 + $0xb8] sm:$0xff]  ;;  %v58_v24 = vld [vmem:[%s8823_s1 + $0xd0] sm:$0xff]  ;;  %v61_v25 = vld [vmem:[%s8823_s1 + $0xe8] sm:$0xff] }
  0x14   :  { %v7314_v23 = vpack.c.bf16 %v55_v22, %v52_v19  ;;  %v7324_v28 = vpack.c.bf16 %v61_v25, %v58_v24  ;;  %v64_v29 = vld [vmem:[%s8823_s1 + $0x100] sm:$0xff]  ;;  %v67_v30 = vld [vmem:[%s8823_s1 + $0x118] sm:$0xff]  ;;  %v70_v32 = vld [vmem:[%s8823_s1 + $0x130] sm:$0xff] }
  0x15   :  { %5465 = vmatpush1.bf16.msra.mxu1 %v7175_v34  ;;  %5513 = vmatpush1.bf16.msra.mxu0 %v7257_v62  ;;  %v7334_v31 = vpack.c.bf16 %v67_v30, %v64_v29  ;;  %v73_v33 = vld [vmem:[%s8823_s1 + $0x148] sm:$0xff]  ;;  %v76_v36 = vld [vmem:[%s8823_s1 + $0x160] sm:$0xff]  ;;  %v79_v37 = vld [vmem:[%s8823_s1 + $0x178] sm:$0xff] }
  0x16   :  { %5467 = vmatprep.subr.bf16.mxu1 %v7187_v38  ;;  %v7344_v35 = vpack.c.bf16 %v73_v33, %v70_v32  ;;  %v7354_v39 = vpack.c.bf16 %v79_v37, %v76_v36  ;;  %v134_v40 = vld [vmem:[%s8824_s5 + $0x10] sm:$0xff]  ;;  %v137_v42 = vld [vmem:[%s8824_s5 + $0x28] sm:$0xff]  ;;  %v140_v45 = vld [vmem:[%s8824_s5 + $0x40] sm:$0xff] }
  0x17   :  { %8991 = vst [vmem:[#allocation16_spill] sm:$0xff] %v7334_v31  ;;  %v7364_v44 = vpack.c.bf16 %v137_v42, %v134_v40  ;;  %v143_v46 = vld [vmem:[%s8824_s5 + $0x58] sm:$0xff]  ;;  %v146_v50 = vld [vmem:[%s8824_s5 + $0x70] sm:$0xff]  ;;  %v149_v52 = vld [vmem:[%s8824_s5 + $0x88] sm:$0xff] }
  0x18   :  { %8992 = vst [vmem:[#allocation17_spill] sm:$0xff] %v7344_v35  ;;  %8993 = vst [vmem:[#allocation18_spill] sm:$0xff] %v7354_v39  ;;  %v7375_v48 = vpack.c.bf16 %v143_v46, %v140_v45  ;;  %v7387_v53 = vpack.c.bf16 %v149_v52, %v146_v50  ;;  %v151_v55 = vld [vmem:[%s8824_s5 + $0x98] sm:$0xff]  ;;  %v154_v57 = vld [vmem:[%s8824_s5 + $0xb0] sm:$0xff] }
  0x19   :  { %5469 = vmatpush1.bf16.msra.mxu1 %v7218_v49  ;;  %8994 = vst [vmem:[#allocation19_spill] sm:$0xff] %v7364_v44  ;;  %v7398_v58 = vpack.c.bf16 %v154_v57, %v151_v55  ;;  %v150_v59 = vld [vmem:[%s8824_s5 + $0x90] sm:$0xff]  ;;  %v153_v60 = vld [vmem:[%s8824_s5 + $0xa8] sm:$0xff]  ;;  %v152_v0 = vld [vmem:[%s8824_s5 + $0xa0] sm:$0xff] }
  0x1a   :  { %5471 = vmatprep.subr.bf16.mxu1 %v7233_v54  ;;  %8995 = vst [vmem:[#allocation20_spill] sm:$0xff] %v7375_v48  ;;  %8996 = vst [vmem:[#allocation21_spill] sm:$0xff] %v7387_v53  ;;  %v7409_v1 = vpack.c.bf16 %v153_v60, %v150_v59  ;;  %v155_v5 = vld [vmem:[%s8824_s5 + $0xb8] sm:$0xff]  ;;  %v157_v11 = vld [vmem:[%s8824_s5 + $0xc8] sm:$0xff] }
  0x1b   :  { %8997 = vst [vmem:[#allocation22_spill] sm:$0xff] %v7398_v58  ;;  %5515 = vmatprep.subr.bf16.mxu0 %v7398_v58  ;;  %v7415_v6 = vpack.c.bf16 %v155_v5, %v152_v0  ;;  %v160_v12 = vld [vmem:[%s8824_s5 + $0xe0] sm:$0xff]  ;;  %v159_v19 = vld [vmem:[%s8824_s5 + $0xd8] sm:$0xff]  ;;  %v158_v22 = vld [vmem:[%s8824_s5 + $0xd0] sm:$0xff] }
  0x1c   :  { %8998 = vst [vmem:[#allocation23_spill] sm:$0xff] %v7409_v1  ;;  %5517 = vmatpush1.bf16.msra.mxu0 %v7409_v1  ;;  %v7425_v16 = vpack.c.bf16 %v160_v12, %v157_v11  ;;  %v156_v17 = vld [vmem:[%s8824_s5 + $0xc0] sm:$0xff]  ;;  %v161_v25 = vld [vmem:[%s8824_s5 + $0xe8] sm:$0xff]  ;;  %v163_v30 = vld [vmem:[%s8824_s5 + $0xf8] sm:$0xff] }
  0x1d   :  { %5473 = vmatpush1.bf16.msra.mxu1 %v7254_v61  ;;  %8999 = vst [vmem:[#allocation24_spill] sm:$0xff] %v7415_v6  ;;  %v7437_v24 = vpack.c.bf16 %v159_v19, %v156_v17  ;;  %v7443_v29 = vpack.c.bf16 %v161_v25, %v158_v22  ;;  %v166_v32 = vld [vmem:[%s8824_s5 + $0x110] sm:$0xff]  ;;  %v165_v37 = vld [vmem:[%s8824_s5 + $0x108] sm:$0xff]  ;;  %v164_v40 = vld [vmem:[%s8824_s5 + $0x100] sm:$0xff] }
  0x1e   :  { %5475 = vmatprep.subr.bf16.mxu1 %v7260_v63  ;;  %9000 = vst [vmem:[#allocation25_spill] sm:$0xff] %v7425_v16  ;;  %5519 = vmatprep.subr.bf16.mxu0 %v7425_v16  ;;  %v7453_v33 = vpack.c.bf16 %v166_v32, %v163_v30  ;;  %v162_v36 = vld [vmem:[%s8824_s5 + $0xf0] sm:$0xff]  ;;  %v167_v45 = vld [vmem:[%s8824_s5 + $0x118] sm:$0xff]  ;;  %v169_v50 = vld [vmem:[%s8824_s5 + $0x128] sm:$0xff] }
  0x1f   :  { %9001 = vst [vmem:[#allocation26_spill] sm:$0xff] %v7437_v24  ;;  %9002 = vst [vmem:[#allocation27_spill] sm:$0xff] %v7443_v29  ;;  %v7465_v42 = vpack.c.bf16 %v165_v37, %v162_v36  ;;  %v7471_v46 = vpack.c.bf16 %v167_v45, %v164_v40  ;;  %v172_v52 = vld [vmem:[%s8824_s5 + $0x140] sm:$0xff]  ;;  %v171_v59 = vld [vmem:[%s8824_s5 + $0x138] sm:$0xff] }
  0x20   :  { %5521 = vmatpush1.bf16.msra.mxu0 %v7437_v24  ;;  %9003 = vst [vmem:[#allocation28_spill] sm:$0xff] %v7453_v33  ;;  %v7481_v55 = vpack.c.bf16 %v172_v52, %v169_v50  ;;  %v168_v57 = vld [vmem:[%s8824_s5 + $0x120] sm:$0xff]  ;;  %v170_v60 = vld [vmem:[%s8824_s5 + $0x130] sm:$0xff]  ;;  %v173_v5 = vld [vmem:[%s8824_s5 + $0x148] sm:$0xff] }
  0x21   :  { %5477 = vmatpush1.bf16.msra.mxu1 %v7270_v2  ;;  %9004 = vst [vmem:[#allocation29_spill] sm:$0xff] %v7465_v42  ;;  %5523 = vmatprep.subr.bf16.mxu0 %v7453_v33  ;;  %9005 = vst [vmem:[#allocation30_spill] sm:$0xff] %v7471_v46  ;;  %v7493_v0 = vpack.c.bf16 %v171_v59, %v168_v57  ;;  %v7499_v11 = vpack.c.bf16 %v173_v5, %v170_v60  ;;  %v175_v12 = vld [vmem:[%s8824_s5 + $0x158] sm:$0xff]  ;;  %v178_v17 = vld [vmem:[%s8824_s5 + $0x170] sm:$0xff] }
  0x22   :  { %5478 = vmatprep.subr.bf16.mxu1 %v8837_v10  ;;  %9006 = vst [vmem:[#allocation31_spill] sm:$0xff] %v7481_v55  ;;  %v7509_v19 = vpack.c.bf16 %v178_v17, %v175_v12  ;;  %v174_v22 = vld [vmem:[%s8824_s5 + $0x150] sm:$0xff]  ;;  %v177_v25 = vld [vmem:[%s8824_s5 + $0x168] sm:$0xff]  ;;  %v176_v30 = vld [vmem:[%s8824_s5 + $0x160] sm:$0xff] }
  0x23   :  { %9007 = vst [vmem:[#allocation32_spill] sm:$0xff] %v7493_v0  ;;  %9008 = vst [vmem:[#allocation33_spill] sm:$0xff] %v7499_v11  ;;  %v7521_v32 = vpack.c.bf16 %v177_v25, %v174_v22  ;;  %v179_v36 = vld [vmem:[%s8824_s5 + $0x178] sm:$0xff]  ;;  %v82_v40 = vld [vmem:[%s8825_s3 + $0x8] sm:$0xff] }
  0x24   :  { %249 = vmatmul.mubr.f32.vlgmr.msra.gmra.mrb[0].mxu1 %v8833_v3  ;;  %5525 = vmatpush1.bf16.msra.mxu0 %v7465_v42  ;;  %9009 = vst [vmem:[#allocation34_spill] sm:$0xff] %v7509_v19  ;;  %v7527_v37 = vpack.c.bf16 %v179_v36, %v176_v30  ;;  %v85_v45 = vld [vmem:[%s8825_s3 + $0x20] sm:$0xff]  ;;  %v84_v57 = vld [vmem:[%s8825_s3 + $0x18] sm:$0xff]  ;;  %v83_v59 = vld [vmem:[%s8825_s3 + $0x10] sm:$0xff] }
  0x25   :  { %5480 = vmatpush3.bf16.msra.mxu1 %v7281_v7  ;;  %4594 = vmatprep.mubr.msk.f32.mxu1 %vm7024_vm0, %v8833_v3  ;;  %9010 = vst [vmem:[#allocation35_spill] sm:$0xff] %v7521_v32  ;;  %v7537_v50 = vpack.c.bf16 %v85_v45, %v82_v40  ;;  %v81_v52 = vld [vmem:[%s8825_s3] sm:$0xff]  ;;  %v86_v5 = vld [vmem:[%s8825_s3 + $0x28] sm:$0xff]  ;;  %v88_v17 = vld [vmem:[%s8825_s3 + $0x38] sm:$0xff] }
  0x26   :  { %5481 = vmatprep.subr.bf16.mxu1 %v8837_v10  ;;  %5527 = vmatprep.subr.bf16.mxu0 %v7481_v55  ;;  %9011 = vst [vmem:[#allocation36_spill] sm:$0xff] %v7527_v37  ;;  %v7549_v60 = vpack.c.bf16 %v84_v57, %v81_v52  ;;  %v7556_v12 = vpack.c.bf16 %v86_v5, %v83_v59  ;;  %v91_v22 = vld [vmem:[%s8825_s3 + $0x50] sm:$0xff]  ;;  %v90_v36 = vld [vmem:[%s8825_s3 + $0x48] sm:$0xff]  ;;  %v89_v40 = vld [vmem:[%s8825_s3 + $0x40] sm:$0xff] }
  0x27   :  { %9012 = vst [vmem:[#allocation37_spill] sm:$0xff] %v7537_v50  ;;  %v7567_v25 = vpack.c.bf16 %v91_v22, %v88_v17  ;;  %v87_v30 = vld [vmem:[%s8825_s3 + $0x30] sm:$0xff]  ;;  %v92_v52 = vld [vmem:[%s8825_s3 + $0x58] sm:$0xff]  ;;  %v94_v59 = vld [vmem:[%s8825_s3 + $0x68] sm:$0xff] }
  0x28   :  { %5529 = vmatpush1.bf16.msra.mxu0 %v7493_v0  ;;  %9013 = vst [vmem:[#allocation38_spill] sm:$0xff] %v7549_v60  ;;  %9014 = vst [vmem:[#allocation39_spill] sm:$0xff] %v7556_v12  ;;  %v7580_v45 = vpack.c.bf16 %v90_v36, %v87_v30  ;;  %v7588_v57 = vpack.c.bf16 %v92_v52, %v89_v40  ;;  %v97_v5 = vld [vmem:[%s8825_s3 + $0x80] sm:$0xff]  ;;  %v96_v30 = vld [vmem:[%s8825_s3 + $0x78] sm:$0xff] }
  0x29   :  { %5483 = vmatpush3.bf16.msra.mxu1 %v7292_v13  ;;  %5531 = vmatprep.subr.bf16.mxu0 %v7509_v19  ;;  %9015 = vst [vmem:[#allocation40_spill] sm:$0xff] %v7567_v25  ;;  %v7598_v17 = vpack.c.bf16 %v97_v5, %v94_v59  ;;  %v93_v22 = vld [vmem:[%s8825_s3 + $0x60] sm:$0xff]  ;;  %v95_v36 = vld [vmem:[%s8825_s3 + $0x70] sm:$0xff]  ;;  %v98_v52 = vld [vmem:[%s8825_s3 + $0x88] sm:$0xff] }
  0x2a   :  { %5484 = vmatprep.subr.bf16.mxu1 %v8837_v10  ;;  %9016 = vst [vmem:[#allocation41_spill] sm:$0xff] %v7580_v45  ;;  %9017 = vst [vmem:[#allocation42_spill] sm:$0xff] %v7588_v57  ;;  %v7610_v40 = vpack.c.bf16 %v96_v30, %v93_v22  ;;  %v7616_v59 = vpack.c.bf16 %v98_v52, %v95_v36  ;;  %v100_v5 = vld [vmem:[%s8825_s3 + $0x98] sm:$0xff]  ;;  %v99_v30 = vld [vmem:[%s8825_s3 + $0x90] sm:$0xff] }
  0x2b   :  { %9018 = vst [vmem:[#allocation43_spill] sm:$0xff] %v7598_v17  ;;  %v102_v36 = vld [vmem:[%s8825_s3 + $0xa8] sm:$0xff] }
  0x2c   :  { %5533 = vmatpush1.bf16.msra.mxu0 %v7521_v32  ;;  %9019 = vst [vmem:[#allocation44_spill] sm:$0xff] %v7610_v40  ;;  %9020 = vst [vmem:[#allocation45_spill] sm:$0xff] %v7616_v59  ;;  %v7635_v52 = vpack.c.bf16 %v102_v36, %v99_v30  ;;  %v109_v30 = vld [vmem:[%s8825_s3 + $0xe0] sm:$0xff] }
  0x2d   :  { %5486 = vmatpush3.bf16.msra.mxu1 %v7304_v18  ;;  %5559 = vmatprep.subr.bf16.mxu0 %v7537_v50 }
  0x2e   :  { %5487 = vmatprep.subr.bf16.mxu1 %v8837_v10  ;;  %9022 = vst [vmem:[#allocation47_spill] sm:$0xff] %v7635_v52 }
  0x2f   :  { %412 = vmatmul.mubr.f32.vlgmr.msra.gmra.mrb[0].mxu0 %v8833_v3 }
  0x30   :  { %5561 = vmatpush1.bf16.msra.mxu0 %v7549_v60  ;;  %552 = vmatprep.mubr.f32.mxu0 %v8833_v3 }
  0x31   :  { %5489 = vmatpush3.bf16.msra.mxu1 %v7314_v23  ;;  %5563 = vmatprep.subr.bf16.mxu0 %v7567_v25 }
  0x32   :  { %5490 = vmatprep.subr.bf16.mxu1 %v8837_v10 }
  0x34   :  { %5565 = vmatpush1.bf16.msra.mxu0 %v7580_v45  ;;  %v119_v45 = vld [vmem:[%s8825_s3 + $0x130] sm:$0xff] }
  0x35   :  { %5492 = vmatpush3.bf16.msra.mxu1 %v7324_v28  ;;  %5567 = vmatprep.subr.bf16.mxu0 %v7598_v17  ;;  %v115_v17 = vld [vmem:[%s8825_s3 + $0x110] sm:$0xff] }
  0x36   :  { %5493 = vmatprep.subr.bf16.mxu1 %v8837_v10 }
  0x38   :  { %5569 = vmatpush1.bf16.msra.mxu0 %v7610_v40  ;;  %v101_v40 = vld [vmem:[%s8825_s3 + $0xa0] sm:$0xff] }
  0x39   :  { %5495 = vmatpush3.bf16.msra.mxu1 %v7334_v31 }
  0x3a   :  { %5496 = vmatprep.subr.bf16.mxu1 %v8837_v10 }
  0x3d   :  { %5498 = vmatpush3.bf16.msra.mxu1 %v7344_v35 }
  0x3e   :  { %5499 = vmatprep.subr.bf16.mxu1 %v8837_v10 }
  0x41   :  { %5501 = vmatpush3.bf16.msra.mxu1 %v7354_v39 }
  0x42   :  { %5534 = vmatprep.subr.bf16.mxu1 %v8837_v10 }
  0x44   :  { %4595 = vmatmul.mubr.f32.vlgmr.msra.gmra.mrb[2].mxu1 %v8833_v3 }
  0x45   :  { %5536 = vmatpush3.bf16.msra.mxu1 %v7364_v44  ;;  %4629 = vmatprep.mubr.msk.f32.mxu1 %vm7024_vm0, %v8833_v3 }
  0x46   :  { %5537 = vmatprep.subr.bf16.mxu1 %v8837_v10 }
  0x49   :  { %5539 = vmatpush3.bf16.msra.mxu1 %v7375_v48 }
  0x4a   :  { %5540 = vmatprep.subr.bf16.mxu1 %v8837_v10 }
  0x4d   :  { %5542 = vmatpush3.bf16.msra.mxu1 %v7387_v53 }
  0x4e   :  { %5543 = vmatprep.subr.bf16.mxu1 %v8837_v10 }
  0x51   :  { %5545 = vmatpush3.bf16.msra.mxu1 %v7415_v6 }
  0x52   :  { %5546 = vmatprep.subr.bf16.mxu1 %v8837_v10 }
  0x55   :  { %5548 = vmatpush3.bf16.msra.mxu1 %v7443_v29 }
  0x56   :  { %5549 = vmatprep.subr.bf16.mxu1 %v8837_v10 }
  0x59   :  { %5551 = vmatpush3.bf16.msra.mxu1 %v7471_v46 }
  0x5a   :  { %5552 = vmatprep.subr.bf16.mxu1 %v8837_v10 }
  0x5d   :  { %5554 = vmatpush3.bf16.msra.mxu1 %v7499_v11 }
  0x5e   :  { %5555 = vmatprep.subr.bf16.mxu1 %v8837_v10 }
  0x61   :  { %5557 = vmatpush3.bf16.msra.mxu1 %v7527_v37 }
  0x62   :  { %5590 = vmatprep.subr.bf16.mxu1 %v8837_v10 }
  0x64   :  { %4630 = vmatmul.mubr.f32.vlgmr.msra.gmra.mrb[4].mxu1 %v8833_v3 }
  0x65   :  { %5592 = vmatpush3.bf16.msra.mxu1 %v7556_v12  ;;  %4664 = vmatprep.mubr.msk.f32.mxu1 %vm7024_vm0, %v8833_v3  ;;  %v103_v3 = vld [vmem:[%s8825_s3 + $0xb0] sm:$0xff] }
  0x66   :  { %5593 = vmatprep.subr.bf16.mxu1 %v8837_v10  ;;  %v7626_v22 = vpack.c.bf16 %v103_v3, %v100_v5  ;;  %v104_v3 = vld [vmem:[%s8825_s3 + $0xb8] sm:$0xff] }
  0x67   :  { %v7644_v5 = vpack.c.bf16 %v104_v3, %v101_v40  ;;  %v108_v40 = vld [vmem:[%s8825_s3 + $0xd8] sm:$0xff]  ;;  %v107_v3 = vld [vmem:[%s8825_s3 + $0xd0] sm:$0xff] }
  0x68   :  { %9021 = vst [vmem:[#allocation46_spill] sm:$0xff] %v7626_v22  ;;  %5571 = vmatprep.subr.bf16.mxu0 %v7626_v22  ;;  %v105_v22 = vld [vmem:[%s8825_s3 + $0xc0] sm:$0xff] }
  0x69   :  { %5595 = vmatpush3.bf16.msra.mxu1 %v7588_v57  ;;  %9023 = vst [vmem:[#allocation48_spill] sm:$0xff] %v7644_v5  ;;  %5573 = vmatpush1.bf16.msra.mxu0 %v7635_v52  ;;  %v9025_v52 = vmov 0.0|0.0  }
  0x6a   :  { %5596 = vmatprep.subr.bf16.mxu1 %v8837_v10 }
  0x6d   :  { %5598 = vmatpush3.bf16.msra.mxu1 %v7616_v59  ;;  %v7666_v59 = vpack.c.bf16 %v108_v40, %v105_v22  ;;  %v111_v40 = vld [vmem:[%s8825_s3 + $0xf0] sm:$0xff] }
  0x6e   :  { %5599 = vmatprep.subr.bf16.mxu1 %v8837_v10  ;;  %v106_v10 = vld [vmem:[%s8825_s3 + $0xc8] sm:$0xff] }
  0x6f   :  { %v7654_v36 = vpack.c.bf16 %v109_v30, %v106_v10  ;;  %9026 = vst [vmem:[#allocation50_spill] sm:$0xff] %v7666_v59  ;;  %v110_v10 = vld [vmem:[%s8825_s3 + $0xe8] sm:$0xff] }
  0x70   :  { %v7672_v30 = vpack.c.bf16 %v110_v10, %v107_v3  ;;  %v114_v3 = vld [vmem:[%s8825_s3 + $0x108] sm:$0xff]  ;;  %v113_v10 = vld [vmem:[%s8825_s3 + $0x100] sm:$0xff] }
  0x71   :  { %5601 = vmatpush3.bf16.msra.mxu1 %v7644_v5  ;;  %9024 = vst [vmem:[#allocation49_spill] sm:$0xff] %v7654_v36  ;;  %5575 = vmatprep.subr.bf16.mxu0 %v7654_v36  ;;  %v112_v5 = vld [vmem:[%s8825_s3 + $0xf8] sm:$0xff] }
  0x72   :  { %5602 = vmatprep.subr.bf16.mxu1 %v9025_v52  ;;  %9027 = vst [vmem:[#allocation51_spill] sm:$0xff] %v7672_v30  ;;  %5577 = vmatpush1.bf16.msra.mxu0 %v7666_v59  ;;  %v7682_v22 = vpack.c.bf16 %v115_v17, %v112_v5  ;;  %v7694_v59 = vpack.c.bf16 %v114_v3, %v111_v40  ;;  %v116_v17 = vld [vmem:[%s8825_s3 + $0x118] sm:$0xff]  ;;  %v118_v5 = vld [vmem:[%s8825_s3 + $0x128] sm:$0xff]  ;;  %v117_v40 = vld [vmem:[%s8825_s3 + $0x120] sm:$0xff] }
  0x73   :  { %v7706_v36 = vpack.c.bf16 %v116_v17, %v113_v10  ;;  %v120_v3 = vld [vmem:[%s8825_s3 + $0x138] sm:$0xff]  ;;  %v127_v17 = vld [vmem:[%s8825_s3 + $0x170] sm:$0xff] }
  0x74   :  { %9028 = vst [vmem:[#allocation52_spill] sm:$0xff] %v7682_v22  ;;  %9029 = vst [vmem:[#allocation53_spill] sm:$0xff] %v7694_v59  ;;  %5579 = vmatprep.subr.bf16.mxu0 %v7682_v22  ;;  %v7720_v25 = vpack.c.bf16 %v120_v3, %v117_v40  ;;  %v124_v10 = vld [vmem:[%s8825_s3 + $0x158] sm:$0xff]  ;;  %v123_v3 = vld [vmem:[%s8825_s3 + $0x150] sm:$0xff] }
  0x75   :  { %5604 = vmatpush3.bf16.msra.mxu1 %v7672_v30  ;;  %v121_v30 = vld [vmem:[%s8825_s3 + $0x140] sm:$0xff]  ;;  %9030 = vst [vmem:[#allocation54_spill] sm:$0xff] %v7706_v36  ;;  %v7735_v40 = vpack.c.bf16 %v127_v17, %v124_v10 }
  0x76   :  { %5605 = vmatprep.subr.bf16.mxu1 %v9025_v52  ;;  %v7708_v57 = vpack.c.bf16 %v121_v30, %v118_v5  ;;  %5581 = vmatpush1.bf16.msra.mxu0 %v7694_v59  ;;  %9032 = vst [vmem:[#allocation56_spill] sm:$0xff] %v7720_v25  ;;  %v122_v30 = vld [vmem:[%s8825_s3 + $0x148] sm:$0xff] }
  0x77   :  { %v7733_v5 = vpack.c.bf16 %v122_v30, %v119_v45  ;;  %9034 = vst [vmem:[#allocation58_spill] sm:$0xff] %v7735_v40  ;;  %v126_v59 = vld [vmem:[%s8825_s3 + $0x168] sm:$0xff]  ;;  %v128_v45 = vld [vmem:[%s8825_s3 + $0x178] sm:$0xff] }
  0x78   :  { %9031 = vst [vmem:[#allocation55_spill] sm:$0xff] %v7708_v57  ;;  %5583 = vmatprep.subr.bf16.mxu0 %v7708_v57  ;;  %v7751_v30 = vpack.c.bf16 %v126_v59, %v123_v3  ;;  %v181_v59 = vld [vmem:[%s8826_s0] sm:$0xff] }
  0x79   :  { %5607 = vmatpush3.bf16.msra.mxu1 %v7706_v36  ;;  %9033 = vst [vmem:[#allocation57_spill] sm:$0xff] %v7733_v5  ;;  %v125_v36 = vld [vmem:[%s8825_s3 + $0x160] sm:$0xff] }
  0x7a   :  { %5608 = vmatprep.subr.bf16.mxu1 %v9025_v52  ;;  %5585 = vmatpush1.bf16.msra.mxu0 %v7720_v25  ;;  %9035 = vst [vmem:[#allocation59_spill] sm:$0xff] %v7751_v30  ;;  %v7755_v10 = vpack.c.bf16 %v128_v45, %v125_v36  ;;  %v182_v36 = vld [vmem:[%s8826_s0 + $0x8] sm:$0xff]  ;;  %v7771_v57 = vld [vmem:[%s8827_s2] sm:$0xff] }
  0x7b   :  { %5587 = vmatprep.subr.bf16.mxu0 %v7735_v40  ;;  %9037 = vst [vmem:[#allocation61_spill] sm:$0xff] %v7771_v57 }
  0x7c   :  { %9036 = vst [vmem:[#allocation60_spill] sm:$0xff] %v7755_v10 }
  0x7d   :  { %5610 = vmatpush3.bf16.msra.mxu1 %v7733_v5 }
  0x7e   :  { %5611 = vmatprep.subr.bf16.mxu1 %v9025_v52  ;;  %5589 = vmatpush1.bf16.msra.mxu0 %v7751_v30 }
  0x7f   :  { %5615 = vmatprep.subr.bf16.mxu0 %v7086_v4 }
  0x81   :  { %5613 = vmatpush3.bf16.msra.mxu1 %v7755_v10 }
  0x82   :  { %5646 = vmatprep.subr.bf16.mxu1 %v9025_v52 }
  0xf7   :  { %v250_v17 = vpop.f32.mrb[0].mxu1 }
  0xf8   :  { %v325_v3 = vadd.f32 %v250_v17, %v181_v59  ;;  %v252_v5 = vpop.f32.mrb[1].mxu1 }
  0xf9   :  { %v326_v45 = vadd.f32 %v252_v5, %v182_v36  ;;  %v183_v5 = vld [vmem:[%s8826_s0 + $0x10] sm:$0xff] }
  0xfa   :  { %v4097_v40 = vmul.f32 -1.442695, %v325_v3 }
  0xfb   :  { %v4098_v30 = vmul.f32 -1.442695, %v326_v45 }
  0xfc   :  { %6857 = vpow2.f32 %v4097_v40 }
  0xfd   :  { %6859 = vpow2.f32 %v4098_v30 }
 0x106   :  { %v6858_v10 = vpop.eup %6857 }
 0x107   :  { %v333_v4 = vadd.f32 1.0, %v6858_v10  ;;  %v6860_v25 = vpop.eup %6859 }
 0x108   :  { %v334_v59 = vadd.f32 1.0, %v6860_v25  ;;  %v9038_v25 = vmov 0.0  }
 0x109   :  { %6861 = vrcp.f32 %v333_v4 }
 0x10a   :  { %6863 = vrcp.f32 %v334_v59  ;;  %v7856_v59 = vld [vmem:[%s8828_s4] sm:$0xff] }
 0x10b   :  { %9040 = vst [vmem:[#allocation62_spill] sm:$0xff] %v7856_v59 }
 0x113   :  { %v6862_v22 = vpop.eup %6861 }
 0x114   :  { %v6864_v4 = vpop.eup %6863 }
 0x115   :  { %v343_v36 = vsub.f32 1.0, %v6864_v4  ;;  %v345_v60 = vmul.f32 0.0, %v6864_v4 }
 0x117   :  { %v321_v17 = vpop.f32.mrb[2].mxu1 }
 0x118   :  { %v339_v40 = vadd.f32 %v321_v17, %v7771_v57  ;;  %v4596_v3 = vpop.f32.mrb[3].mxu1 }
 0x11a   :  { %v340_v30 = vmul.f32 %v6862_v22, %v339_v40  ;;  %v9039_v22 = vld [vmem:[#allocation37_spill] sm:$0xff] }
 0x11c   :  { %v341_v10 = vadd.f32 %v340_v30, %v183_v5  ;;  %v7862_v5 = vld [vmem:[%s8828_s4 + $0x8] sm:$0xff] }
 0x11d   :  { %9041 = vst [vmem:[#allocation63_spill] sm:$0xff] %v7862_v5 }
 0x11e   :  { %6865 = vtanh.f32 %v341_v10 }
 0x128   :  { %v6866_v45 = vpop.eup %6865 }
 0x129   :  { %v344_v12 = vmul.f32 %v6866_v45, %v343_v36 }
 0x12b   :  { %v7777_v50 = vadd.f32 %v345_v60, %v344_v12 }
 0x12d   :  { %553 = vmatmul.mubr.f32.vlgmr.msra.gmra.mrb[0].mxu0 %v7777_v50  ;;  %4665 = vmatmul.mubr.f32.vlgmr.msra.gmra.mrb[6].mxu1 %v7777_v50 }
 0x12e   :  { %5617 = vmatpush1.bf16.msra.mxu0 %v7097_v8  ;;  %5648 = vmatpush3.bf16.msra.mxu1 %v7281_v7 }
 0x12f   :  { %5619 = vmatprep.subr.bf16.mxu0 %v7099_v9  ;;  %5649 = vmatprep.subr.bf16.mxu1 %v9025_v52 }
 0x130   :  { %719 = vmatprep.mubr.f32.mxu0 %v9038_v25  ;;  %4699 = vmatprep.mubr.msk.f32.mxu1 %vm7024_vm0, %v9038_v25 }
 0x132   :  { %5621 = vmatpush1.bf16.msra.mxu0 %v7115_v14  ;;  %5651 = vmatpush3.bf16.msra.mxu1 %v7292_v13 }
 0x133   :  { %5623 = vmatprep.subr.bf16.mxu0 %v7118_v15  ;;  %5652 = vmatprep.subr.bf16.mxu1 %v9025_v52 }
 0x136   :  { %5625 = vmatpush1.bf16.msra.mxu0 %v7133_v20  ;;  %5654 = vmatpush3.bf16.msra.mxu1 %v7304_v18 }
 0x137   :  { %5627 = vmatprep.subr.bf16.mxu0 %v7136_v21  ;;  %5655 = vmatprep.subr.bf16.mxu1 %v9025_v52  ;;  %v484_v60 = vpop.f32.mrb[4].mxu1 }
 0x138   :  { %v4631_v12 = vpop.f32.mrb[5].mxu1 }
 0x13a   :  { %5629 = vmatpush1.bf16.msra.mxu0 %v7151_v26  ;;  %5657 = vmatpush3.bf16.msra.mxu1 %v7314_v23 }
 0x13b   :  { %5631 = vmatprep.subr.bf16.mxu0 %v7154_v27  ;;  %5658 = vmatprep.subr.bf16.mxu1 %v9025_v52 }
 0x13e   :  { %5633 = vmatpush1.bf16.msra.mxu0 %v7175_v34  ;;  %5660 = vmatpush3.bf16.msra.mxu1 %v7324_v28 }
 0x13f   :  { %5635 = vmatprep.subr.bf16.mxu0 %v7187_v38  ;;  %5661 = vmatprep.subr.bf16.mxu1 %v9025_v52 }
 0x142   :  { %5637 = vmatpush1.bf16.msra.mxu0 %v7218_v49  ;;  %5663 = vmatpush3.bf16.msra.mxu1 %v7334_v31 }
 0x143   :  { %5639 = vmatprep.subr.bf16.mxu0 %v7233_v54  ;;  %5664 = vmatprep.subr.bf16.mxu1 %v9025_v52 }
 0x146   :  { %5641 = vmatpush1.bf16.msra.mxu0 %v7254_v61  ;;  %5666 = vmatpush3.bf16.msra.mxu1 %v7344_v35 }
 0x147   :  { %5643 = vmatprep.subr.bf16.mxu0 %v7260_v63  ;;  %5667 = vmatprep.subr.bf16.mxu1 %v9025_v52 }
 0x14a   :  { %5645 = vmatpush1.bf16.msra.mxu0 %v7270_v2  ;;  %5669 = vmatpush3.bf16.msra.mxu1 %v7354_v39 }
 0x14b   :  { %5671 = vmatprep.subr.bf16.mxu0 %v7195_v41  ;;  %5702 = vmatprep.subr.bf16.mxu1 %v9025_v52 }
 0x14d   :  { %720 = vmatmul.mubr.f32.vlgmr.msra.gmra.mrb[2].mxu0 %v7777_v50  ;;  %4700 = vmatmul.mubr.f32.vlgmr.msra.gmra.mrb[8].mxu1 %v7777_v50 }
 0x14e   :  { %5673 = vmatpush1.bf16.msra.mxu0 %v7200_v43  ;;  %5704 = vmatpush3.bf16.msra.mxu1 %v7364_v44 }
 0x14f   :  { %5675 = vmatprep.subr.bf16.mxu0 %v7212_v47  ;;  %5705 = vmatprep.subr.bf16.mxu1 %v9025_v52 }
 0x150   :  { %882 = vmatprep.mubr.f32.mxu0 %v9038_v25  ;;  %4734 = vmatprep.mubr.msk.f32.mxu1 %vm7024_vm0, %v9038_v25 }
 0x152   :  { %5677 = vmatpush1.bf16.msra.mxu0 %v7224_v51  ;;  %5707 = vmatpush3.bf16.msra.mxu1 %v7375_v48 }
 0x153   :  { %5679 = vmatprep.subr.bf16.mxu0 %v7239_v56  ;;  %5708 = vmatprep.subr.bf16.mxu1 %v9025_v52 }
 0x156   :  { %5681 = vmatpush1.bf16.msra.mxu0 %v7257_v62  ;;  %5710 = vmatpush3.bf16.msra.mxu1 %v7387_v53 }
 0x157   :  { %5683 = vmatprep.subr.bf16.mxu0 %v7398_v58  ;;  %5711 = vmatprep.subr.bf16.mxu1 %v9025_v52 }
 0x15a   :  { %5685 = vmatpush1.bf16.msra.mxu0 %v7409_v1  ;;  %5713 = vmatpush3.bf16.msra.mxu1 %v7415_v6 }
 0x15b   :  { %5687 = vmatprep.subr.bf16.mxu0 %v7425_v16  ;;  %5714 = vmatprep.subr.bf16.mxu1 %v9025_v52 }
 0x15e   :  { %5689 = vmatpush1.bf16.msra.mxu0 %v7437_v24  ;;  %5716 = vmatpush3.bf16.msra.mxu1 %v7443_v29 }
 0x15f   :  { %5691 = vmatprep.subr.bf16.mxu0 %v7453_v33  ;;  %5717 = vmatprep.subr.bf16.mxu1 %v9025_v52 }
 0x162   :  { %5693 = vmatpush1.bf16.msra.mxu0 %v7465_v42  ;;  %5719 = vmatpush3.bf16.msra.mxu1 %v7471_v46 }
 0x163   :  { %5695 = vmatprep.subr.bf16.mxu0 %v7481_v55  ;;  %5720 = vmatprep.subr.bf16.mxu1 %v9025_v52 }
 0x166   :  { %5697 = vmatpush1.bf16.msra.mxu0 %v7493_v0  ;;  %5722 = vmatpush3.bf16.msra.mxu1 %v7499_v11 }
 0x167   :  { %5699 = vmatprep.subr.bf16.mxu0 %v7509_v19  ;;  %5723 = vmatprep.subr.bf16.mxu1 %v9025_v52 }
 0x16a   :  { %5701 = vmatpush1.bf16.msra.mxu0 %v7521_v32  ;;  %5725 = vmatpush3.bf16.msra.mxu1 %v7527_v37  ;;  %v653_v32 = vld [vmem:[%s8826_s0 + $0x20] sm:$0xff] }
 0x16b   :  { %5727 = vmatprep.subr.bf16.mxu0 %v9039_v22  ;;  %5758 = vmatprep.subr.bf16.mxu1 %v9025_v52 }
 0x200   :  { %v554_v17 = vpop.f32.mrb[0].mxu0  ;;  %v625_v40 = vpop.f32.mrb[6].mxu1 }
 0x201   :  { %v555_v3 = vadd.f32 %v554_v17, %v7856_v59  ;;  %v556_v30 = vpop.f32.mrb[1].mxu0  ;;  %v4666_v10 = vpop.f32.mrb[7].mxu1  ;;  %v7868_v17 = vld [vmem:[%s8829_s6] sm:$0xff] }
 0x202   :  { %v557_v36 = vadd.f32 %v556_v30, %v7862_v5  ;;  %9042 = vst [vmem:[#allocation64_spill] sm:$0xff] %v7868_v17  ;;  %v7873_v10 = vld [vmem:[%s8828_s4 + $0x10] sm:$0xff] }
 0x203   :  { %v4099_v4 = vmul.f32 -1.442695, %v555_v3  ;;  %9043 = vst [vmem:[#allocation65_spill] sm:$0xff] %v7873_v10  ;;  %v643_v3 = vadd.f32 %v484_v60, %v7868_v17 }
 0x204   :  { %v4100_v45 = vmul.f32 -1.442695, %v557_v36 }
 0x205   :  { %6867 = vpow2.f32 %v4099_v4  ;;  %v626_v4 = vadd.f32 %v625_v40, %v7873_v10 }
 0x206   :  { %6869 = vpow2.f32 %v4100_v45 }
 0x20f   :  { %v6868_v12 = vpop.eup %6867 }
 0x210   :  { %v637_v22 = vadd.f32 1.0, %v6868_v12  ;;  %v6870_v37 = vpop.eup %6869 }
 0x211   :  { %v638_v59 = vadd.f32 1.0, %v6870_v37 }
 0x212   :  { %6871 = vrcp.f32 %v637_v22  ;;  %v652_v22 = vld [vmem:[%s8826_s0 + $0x18] sm:$0xff] }
 0x213   :  { %6873 = vrcp.f32 %v638_v59 }
 0x21c   :  { %v6872_v30 = vpop.eup %6871 }
 0x21d   :  { %v644_v36 = vmul.f32 %v6872_v30, %v643_v3  ;;  %v6874_v40 = vpop.eup %6873 }
 0x21e   :  { %v647_v3 = vsub.f32 1.0, %v6874_v40 }
 0x21f   :  { %v645_v45 = vadd.f32 %v644_v36, %v626_v4  ;;  %v649_v4 = vmul.f32 0.0, %v6874_v40  ;;  %v9051_v40 = vld [vmem:[#allocation44_spill] sm:$0xff] }
 0x220   :  { %v721_v12 = vpop.f32.mrb[2].mxu0  ;;  %v792_v5 = vpop.f32.mrb[8].mxu1 }
 0x221   :  { %6875 = vtanh.f32 %v645_v45  ;;  %v796_v37 = vadd.f32 %v721_v12, %v652_v22  ;;  %v723_v19 = vpop.f32.mrb[3].mxu0  ;;  %v4701_v60 = vpop.f32.mrb[9].mxu1  ;;  %v9045_v12 = vld [vmem:[#allocation38_spill] sm:$0xff] }
 0x222   :  { %v797_v11 = vadd.f32 %v723_v19, %v653_v32  ;;  %v9047_v19 = vld [vmem:[#allocation40_spill] sm:$0xff]  ;;  %v9049_v32 = vld [vmem:[#allocation42_spill] sm:$0xff] }
 0x223   :  { %v4101_v17 = vmul.f32 -1.442695, %v796_v37  ;;  %v9046_v37 = vld [vmem:[#allocation39_spill] sm:$0xff] }
 0x224   :  { %v4102_v59 = vmul.f32 -1.442695, %v797_v11  ;;  %v9048_v11 = vld [vmem:[#allocation41_spill] sm:$0xff] }
 0x225   :  { %6877 = vpow2.f32 %v4101_v17 }
 0x226   :  { %6879 = vpow2.f32 %v4102_v59  ;;  %v9052_v59 = vld [vmem:[#allocation45_spill] sm:$0xff] }
 0x22b   :  { %v6876_v30 = vpop.eup %6875 }
 0x22c   :  { %v648_v10 = vmul.f32 %v6876_v30, %v647_v3  ;;  %v9053_v3 = vld [vmem:[#allocation46_spill] sm:$0xff]  ;;  %v810_v30 = vadd.f32 %v792_v5, %v7771_v57  ;;  %v9058_v5 = vld [vmem:[#allocation51_spill] sm:$0xff]  ;;  %v9059_v57 = vld [vmem:[#allocation52_spill] sm:$0xff] }
 0x22e   :  { %v7883_v36 = vadd.f32 %v649_v4, %v648_v10  ;;  %v9050_v10 = vld [vmem:[#allocation43_spill] sm:$0xff] }
 0x22f   :  { %v6878_v45 = vpop.eup %6877 }
 0x230   :  { %9044 = vst [vmem:[#allocation66_spill] sm:$0xff] %v7883_v36  ;;  %v804_v22 = vadd.f32 1.0, %v6878_v45  ;;  %883 = vmatmul.mubr.f32.vlgmr.msra.gmra.mrb[4].mxu0 %v7883_v36  ;;  %4735 = vmatmul.mubr.f32.vlgmr.msra.gmra.mrb[10].mxu1 %v7883_v36  ;;  %v6880_v17 = vpop.eup %6879  ;;  %v654_v45 = vld [vmem:[%s8826_s0 + $0x28] sm:$0xff] }
 0x231   :  { %5729 = vmatpush1.bf16.msra.mxu0 %v9045_v12  ;;  %5760 = vmatpush3.bf16.msra.mxu1 %v9046_v37  ;;  %v805_v60 = vadd.f32 1.0, %v6880_v17  ;;  %v9055_v17 = vld [vmem:[#allocation48_spill] sm:$0xff] }
 0x232   :  { %6881 = vrcp.f32 %v804_v22  ;;  %5731 = vmatprep.subr.bf16.mxu0 %v9047_v19  ;;  %5761 = vmatprep.subr.bf16.mxu1 %v9025_v52 }
 0x233   :  { %1023 = vmatprep.mubr.f32.mxu0 %v9038_v25  ;;  %4769 = vmatprep.mubr.msk.f32.mxu1 %vm7024_vm0, %v9038_v25  ;;  %6883 = vrcp.f32 %v805_v60  ;;  %v9061_v60 = vld [vmem:[#allocation54_spill] sm:$0xff] }
 0x235   :  { %5733 = vmatpush1.bf16.msra.mxu0 %v9048_v11  ;;  %5763 = vmatpush3.bf16.msra.mxu1 %v9049_v32 }
 0x236   :  { %5735 = vmatprep.subr.bf16.mxu0 %v9050_v10  ;;  %5764 = vmatprep.subr.bf16.mxu1 %v9025_v52  ;;  %v9054_v10 = vld [vmem:[#allocation47_spill] sm:$0xff] }
 0x239   :  { %5737 = vmatpush1.bf16.msra.mxu0 %v9051_v40  ;;  %5766 = vmatpush3.bf16.msra.mxu1 %v9052_v59  ;;  %v9056_v40 = vld [vmem:[#allocation49_spill] sm:$0xff]  ;;  %v9057_v59 = vld [vmem:[#allocation50_spill] sm:$0xff] }
 0x23a   :  { %5739 = vmatprep.subr.bf16.mxu0 %v9053_v3  ;;  %5767 = vmatprep.subr.bf16.mxu1 %v9025_v52 }
 0x23c   :  { %v6882_v4 = vpop.eup %6881 }
 0x23d   :  { %v811_v22 = vmul.f32 %v6882_v4, %v810_v30  ;;  %5741 = vmatpush1.bf16.msra.mxu0 %v9054_v10  ;;  %5769 = vmatpush3.bf16.msra.mxu1 %v9055_v17  ;;  %v9060_v30 = vld [vmem:[#allocation53_spill] sm:$0xff]  ;;  %v9062_v4 = vld [vmem:[#allocation55_spill] sm:$0xff]  ;;  %v9063_v17 = vld [vmem:[#allocation56_spill] sm:$0xff] }
 0x23e   :  { %5743 = vmatprep.subr.bf16.mxu0 %v9056_v40  ;;  %5770 = vmatprep.subr.bf16.mxu1 %v9025_v52  ;;  %v6884_v40 = vpop.eup %6883  ;;  %v9068_v10 = vld [vmem:[#allocation3_spill] sm:$0xff] }
 0x23f   :  { %v812_v3 = vadd.f32 %v811_v22, %v654_v45  ;;  %v814_v45 = vsub.f32 1.0, %v6884_v40  ;;  %v9065_v22 = vld [vmem:[#allocation58_spill] sm:$0xff] }
 0x241   :  { %6885 = vtanh.f32 %v812_v3  ;;  %5745 = vmatpush1.bf16.msra.mxu0 %v9057_v59  ;;  %5772 = vmatpush3.bf16.msra.mxu1 %v9058_v5  ;;  %v9064_v3 = vld [vmem:[#allocation57_spill] sm:$0xff]  ;;  %v9066_v59 = vld [vmem:[#allocation59_spill] sm:$0xff] }
 0x242   :  { %5747 = vmatprep.subr.bf16.mxu0 %v9059_v57  ;;  %5773 = vmatprep.subr.bf16.mxu1 %v9025_v52 }
 0x245   :  { %5749 = vmatpush1.bf16.msra.mxu0 %v9060_v30  ;;  %5775 = vmatpush3.bf16.msra.mxu1 %v9061_v60  ;;  %v816_v30 = vmul.f32 %v6884_v40, %v7777_v50  ;;  %v9067_v60 = vld [vmem:[#allocation60_spill] sm:$0xff]  ;;  %v9069_v50 = vld [vmem:[#allocation33_spill] sm:$0xff]  ;;  %v9071_v40 = vld [vmem:[#allocation35_spill] sm:$0xff] }
 0x246   :  { %5751 = vmatprep.subr.bf16.mxu0 %v9062_v4  ;;  %5776 = vmatprep.subr.bf16.mxu1 %v9025_v52 }
 0x249   :  { %5753 = vmatpush1.bf16.msra.mxu0 %v9063_v17  ;;  %5778 = vmatpush3.bf16.msra.mxu1 %v9064_v3 }
 0x24a   :  { %5755 = vmatprep.subr.bf16.mxu0 %v9065_v22  ;;  %5779 = vmatprep.subr.bf16.mxu1 %v9025_v52 }
 0x24b   :  { %v6886_v57 = vpop.eup %6885 }
 0x24c   :  { %v815_v5 = vmul.f32 %v6886_v57, %v814_v45  ;;  %v9070_v57 = vld [vmem:[#allocation34_spill] sm:$0xff] }
 0x24d   :  { %5757 = vmatpush1.bf16.msra.mxu0 %v9066_v59  ;;  %5781 = vmatpush3.bf16.msra.mxu1 %v9067_v60 }
 0x24e   :  { %v7925_v4 = vadd.f32 %v816_v30, %v815_v5  ;;  %5783 = vmatprep.subr.bf16.mxu0 %v9068_v10  ;;  %5814 = vmatprep.subr.bf16.mxu1 %v9025_v52  ;;  %v9072_v5 = vld [vmem:[#allocation36_spill] sm:$0xff]  ;;  %v9073_v30 = vld [vmem:[#allocation37_spill] sm:$0xff] }
 0x250   :  { %1024 = vmatmul.mubr.f32.vlgmr.msra.gmra.mrb[4].mxu0 %v7925_v4  ;;  %4770 = vmatmul.mubr.f32.vlgmr.msra.gmra.mrb[12].mxu1 %v7925_v4 }
 0x251   :  { %5785 = vmatpush1.bf16.msra.mxu0 %v7097_v8  ;;  %5816 = vmatpush3.bf16.msra.mxu1 %v7281_v7 }
 0x252   :  { %5787 = vmatprep.subr.bf16.mxu0 %v7099_v9  ;;  %5817 = vmatprep.subr.bf16.mxu1 %v9025_v52 }
 0x253   :  { %1190 = vmatprep.mubr.f32.mxu0 %v9038_v25  ;;  %4804 = vmatprep.mubr.msk.f32.mxu1 %vm7024_vm0, %v9038_v25 }
 0x255   :  { %5789 = vmatpush1.bf16.msra.mxu0 %v7115_v14  ;;  %5819 = vmatpush3.bf16.msra.mxu1 %v7292_v13 }
 0x256   :  { %5791 = vmatprep.subr.bf16.mxu0 %v7118_v15  ;;  %5820 = vmatprep.subr.bf16.mxu1 %v9025_v52 }
 0x259   :  { %5793 = vmatpush1.bf16.msra.mxu0 %v7133_v20  ;;  %5822 = vmatpush3.bf16.msra.mxu1 %v7304_v18 }
 0x25a   :  { %5795 = vmatprep.subr.bf16.mxu0 %v7136_v21  ;;  %5823 = vmatprep.subr.bf16.mxu1 %v9025_v52 }
 0x25d   :  { %5797 = vmatpush1.bf16.msra.mxu0 %v7151_v26  ;;  %5825 = vmatpush3.bf16.msra.mxu1 %v7314_v23 }
 0x25e   :  { %5799 = vmatprep.subr.bf16.mxu0 %v7154_v27  ;;  %5826 = vmatprep.subr.bf16.mxu1 %v9025_v52 }
 0x261   :  { %5801 = vmatpush1.bf16.msra.mxu0 %v7175_v34  ;;  %5828 = vmatpush3.bf16.msra.mxu1 %v7324_v28 }
 0x262   :  { %5803 = vmatprep.subr.bf16.mxu0 %v7187_v38  ;;  %5829 = vmatprep.subr.bf16.mxu1 %v9025_v52 }
 0x265   :  { %5805 = vmatpush1.bf16.msra.mxu0 %v7218_v49  ;;  %5831 = vmatpush3.bf16.msra.mxu1 %v7334_v31 }
 0x266   :  { %5807 = vmatprep.subr.bf16.mxu0 %v7233_v54  ;;  %5832 = vmatprep.subr.bf16.mxu1 %v9025_v52 }
 0x269   :  { %5809 = vmatpush1.bf16.msra.mxu0 %v7254_v61  ;;  %5834 = vmatpush3.bf16.msra.mxu1 %v7344_v35 }
 0x26a   :  { %5811 = vmatprep.subr.bf16.mxu0 %v7260_v63  ;;  %5835 = vmatprep.subr.bf16.mxu1 %v9025_v52 }
 0x26d   :  { %5813 = vmatpush1.bf16.msra.mxu0 %v7270_v2  ;;  %5837 = vmatpush3.bf16.msra.mxu1 %v7354_v39 }
 0x26e   :  { %5839 = vmatprep.subr.bf16.mxu0 %v7195_v41  ;;  %5870 = vmatprep.subr.bf16.mxu1 %v9025_v52 }
 0x270   :  { %1191 = vmatmul.mubr.f32.vlgmr.msra.gmra.mrb[6].mxu0 %v7925_v4  ;;  %4805 = vmatmul.mubr.f32.vlgmr.msra.gmra.mrb[14].mxu1 %v7925_v4 }
 0x271   :  { %5841 = vmatpush1.bf16.msra.mxu0 %v7200_v43  ;;  %5872 = vmatpush3.bf16.msra.mxu1 %v7364_v44 }
 0x272   :  { %5843 = vmatprep.subr.bf16.mxu0 %v7212_v47  ;;  %5873 = vmatprep.subr.bf16.mxu1 %v9025_v52 }
 0x273   :  { %1353 = vmatprep.mubr.f32.mxu0 %v9038_v25  ;;  %4839 = vmatprep.mubr.msk.f32.mxu1 %vm7024_vm0, %v9038_v25 }
 0x275   :  { %5845 = vmatpush1.bf16.msra.mxu0 %v7224_v51  ;;  %5875 = vmatpush3.bf16.msra.mxu1 %v7375_v48 }
 0x276   :  { %5847 = vmatprep.subr.bf16.mxu0 %v7239_v56  ;;  %5876 = vmatprep.subr.bf16.mxu1 %v9025_v52 }
 0x279   :  { %5849 = vmatpush1.bf16.msra.mxu0 %v7257_v62  ;;  %5878 = vmatpush3.bf16.msra.mxu1 %v7387_v53  ;;  %v9077_v62 = vld [vmem:[#allocation65_spill] sm:$0xff] }
 0x27a   :  { %5851 = vmatprep.subr.bf16.mxu0 %v7398_v58  ;;  %5879 = vmatprep.subr.bf16.mxu1 %v9025_v52  ;;  %v9076_v58 = vld [vmem:[#allocation64_spill] sm:$0xff] }
 0x27d   :  { %5853 = vmatpush1.bf16.msra.mxu0 %v7409_v1  ;;  %5881 = vmatpush3.bf16.msra.mxu1 %v7415_v6 }
 0x27e   :  { %5855 = vmatprep.subr.bf16.mxu0 %v7425_v16  ;;  %5882 = vmatprep.subr.bf16.mxu1 %v9025_v52 }
 0x281   :  { %5857 = vmatpush1.bf16.msra.mxu0 %v7437_v24  ;;  %5884 = vmatpush3.bf16.msra.mxu1 %v7443_v29 }
 0x282   :  { %5859 = vmatprep.subr.bf16.mxu0 %v7453_v33  ;;  %5885 = vmatprep.subr.bf16.mxu1 %v9025_v52  ;;  %v9074_v33 = vld [vmem:[#allocation62_spill] sm:$0xff] }
 0x285   :  { %5861 = vmatpush1.bf16.msra.mxu0 %v7465_v42  ;;  %5887 = vmatpush3.bf16.msra.mxu1 %v7471_v46 }
 0x286   :  { %5863 = vmatprep.subr.bf16.mxu0 %v7481_v55  ;;  %5888 = vmatprep.subr.bf16.mxu1 %v9025_v52 }
 0x289   :  { %5865 = vmatpush1.bf16.msra.mxu0 %v7493_v0  ;;  %5890 = vmatpush3.bf16.msra.mxu1 %v9069_v50 }
 0x28a   :  { %5867 = vmatprep.subr.bf16.mxu0 %v9070_v57  ;;  %5891 = vmatprep.subr.bf16.mxu1 %v9025_v52  ;;  %v9075_v57 = vld [vmem:[#allocation63_spill] sm:$0xff] }
 0x28d   :  { %5869 = vmatpush1.bf16.msra.mxu0 %v9071_v40  ;;  %5893 = vmatpush3.bf16.msra.mxu1 %v9072_v5 }
 0x28e   :  { %5895 = vmatprep.subr.bf16.mxu0 %v9073_v30  ;;  %5926 = vmatprep.subr.bf16.mxu1 %v9025_v52 }
 0x303   :  { %v955_v45 = vpop.f32.mrb[10].mxu1 }
 0x304   :  { %v4736_v55 = vpop.f32.mrb[11].mxu1  ;;  %v1114_v53 = vadd.f32 %v955_v45, %v9076_v58 }
 0x323   :  { %v1025_v46 = vpop.f32.mrb[4].mxu0  ;;  %v1096_v42 = vpop.f32.mrb[12].mxu1 }
 0x324   :  { %v1026_v0 = vadd.f32 %v1025_v46, %v9074_v33  ;;  %v1027_v29 = vpop.f32.mrb[5].mxu0  ;;  %v4771_v50 = vpop.f32.mrb[13].mxu1  ;;  %v1097_v56 = vadd.f32 %v1096_v42, %v9077_v62  ;;  %v1123_v46 = vld [vmem:[%s8826_s0 + $0x30] sm:$0xff] }
 0x325   :  { %v1028_v16 = vadd.f32 %v1027_v29, %v9075_v57 }
 0x326   :  { %v4103_v24 = vmul.f32 -1.442695, %v1026_v0  ;;  %v1124_v0 = vld [vmem:[%s8826_s0 + $0x38] sm:$0xff] }
 0x327   :  { %v4104_v6 = vmul.f32 -1.442695, %v1028_v16 }
 0x328   :  { %6887 = vpow2.f32 %v4103_v24 }
 0x329   :  { %6889 = vpow2.f32 %v4104_v6 }
 0x332   :  { %v6888_v40 = vpop.eup %6887 }
 0x333   :  { %v1108_v5 = vadd.f32 1.0, %v6888_v40  ;;  %v6890_v30 = vpop.eup %6889 }
 0x334   :  { %v1109_v1 = vadd.f32 1.0, %v6890_v30 }
 0x335   :  { %6891 = vrcp.f32 %v1108_v5 }
 0x336   :  { %6893 = vrcp.f32 %v1109_v1 }
 0x33f   :  { %v6892_v55 = vpop.eup %6891 }
 0x340   :  { %v1115_v48 = vmul.f32 %v6892_v55, %v1114_v53  ;;  %v6894_v53 = vpop.eup %6893 }
 0x341   :  { %v1118_v42 = vsub.f32 1.0, %v6894_v53 }
 0x342   :  { %v1116_v29 = vadd.f32 %v1115_v48, %v1097_v56  ;;  %v1120_v56 = vmul.f32 %v6894_v53, %v7883_v36  ;;  %v9089_v36 = vld [vmem:[#allocation52_spill] sm:$0xff] }
 0x343   :  { %v1192_v24 = vpop.f32.mrb[6].mxu0  ;;  %v1263_v16 = vpop.f32.mrb[14].mxu1 }
 0x344   :  { %6895 = vtanh.f32 %v1116_v29  ;;  %v1267_v6 = vadd.f32 %v1192_v24, %v1123_v46  ;;  %v1194_v50 = vpop.f32.mrb[7].mxu0  ;;  %v4806_v40 = vpop.f32.mrb[15].mxu1 }
 0x345   :  { %v1268_v30 = vadd.f32 %v1194_v50, %v1124_v0  ;;  %v9080_v50 = vld [vmem:[#allocation44_spill] sm:$0xff]  ;;  %v9081_v40 = vld [vmem:[#allocation45_spill] sm:$0xff] }
 0x346   :  { %v4105_v5 = vmul.f32 -1.442695, %v1267_v6  ;;  %v9079_v6 = vld [vmem:[#allocation43_spill] sm:$0xff] }
 0x347   :  { %v4106_v1 = vmul.f32 -1.442695, %v1268_v30  ;;  %v9083_v30 = vld [vmem:[#allocation61_spill] sm:$0xff] }
 0x348   :  { %6897 = vpow2.f32 %v4105_v5  ;;  %v9082_v5 = vld [vmem:[#allocation46_spill] sm:$0xff]  ;;  %v1281_v53 = vadd.f32 %v1263_v16, %v9083_v30  ;;  %v9088_v16 = vld [vmem:[#allocation51_spill] sm:$0xff] }
 0x349   :  { %6899 = vpow2.f32 %v4106_v1 }
 0x34e   :  { %v6896_v45 = vpop.eup %6895 }
 0x34f   :  { %v1119_v55 = vmul.f32 %v6896_v45, %v1118_v42  ;;  %v1125_v42 = vld [vmem:[%s8826_s0 + $0x40] sm:$0xff] }
 0x351   :  { %v8014_v48 = vadd.f32 %v1120_v56, %v1119_v55  ;;  %v9084_v55 = vld [vmem:[#allocation47_spill] sm:$0xff]  ;;  %v9085_v56 = vld [vmem:[#allocation48_spill] sm:$0xff] }
 0x352   :  { %v6898_v46 = vpop.eup %6897 }
 0x353   :  { %9078 = vst [vmem:[#allocation38_spill] sm:$0xff] %v8014_v48  ;;  %v1275_v29 = vadd.f32 1.0, %v6898_v46  ;;  %1354 = vmatmul.mubr.f32.vlgmr.msra.gmra.mrb[8].mxu0 %v8014_v48  ;;  %4840 = vmatmul.mubr.f32.vlgmr.msra.gmra.mrb[16].mxu1 %v8014_v48  ;;  %v6900_v24 = vpop.eup %6899  ;;  %v9086_v46 = vld [vmem:[#allocation49_spill] sm:$0xff] }
 0x354   :  { %5897 = vmatpush1.bf16.msra.mxu0 %v9045_v12  ;;  %5928 = vmatpush3.bf16.msra.mxu1 %v9046_v37  ;;  %v1276_v0 = vadd.f32 1.0, %v6900_v24  ;;  %v9087_v24 = vld [vmem:[#allocation50_spill] sm:$0xff] }
 0x355   :  { %6901 = vrcp.f32 %v1275_v29  ;;  %5899 = vmatprep.subr.bf16.mxu0 %v9047_v19  ;;  %5929 = vmatprep.subr.bf16.mxu1 %v9025_v52 }
 0x356   :  { %1494 = vmatprep.mubr.f32.mxu0 %v9038_v25  ;;  %4874 = vmatprep.mubr.msk.f32.mxu1 %vm7024_vm0, %v9038_v25  ;;  %6903 = vrcp.f32 %v1276_v0  ;;  %v9091_v0 = vld [vmem:[#allocation54_spill] sm:$0xff] }
 0x358   :  { %5901 = vmatpush1.bf16.msra.mxu0 %v9048_v11  ;;  %5931 = vmatpush3.bf16.msra.mxu1 %v9049_v32 }
 0x359   :  { %5903 = vmatprep.subr.bf16.mxu0 %v9079_v6  ;;  %5932 = vmatprep.subr.bf16.mxu1 %v9025_v52 }
 0x35c   :  { %5905 = vmatpush1.bf16.msra.mxu0 %v9080_v50  ;;  %5934 = vmatpush3.bf16.msra.mxu1 %v9081_v40 }
 0x35d   :  { %5907 = vmatprep.subr.bf16.mxu0 %v9082_v5  ;;  %5935 = vmatprep.subr.bf16.mxu1 %v9025_v52 }
 0x35f   :  { %v6902_v1 = vpop.eup %6901 }
 0x360   :  { %v1282_v45 = vmul.f32 %v6902_v1, %v1281_v53  ;;  %5909 = vmatpush1.bf16.msra.mxu0 %v9084_v55  ;;  %5937 = vmatpush3.bf16.msra.mxu1 %v9085_v56  ;;  %v9090_v53 = vld [vmem:[#allocation53_spill] sm:$0xff]  ;;  %v9092_v1 = vld [vmem:[#allocation55_spill] sm:$0xff] }
 0x361   :  { %5911 = vmatprep.subr.bf16.mxu0 %v9086_v46  ;;  %5938 = vmatprep.subr.bf16.mxu1 %v9025_v52  ;;  %v6904_v46 = vpop.eup %6903 }
 0x362   :  { %v1283_v29 = vadd.f32 %v1282_v45, %v1125_v42  ;;  %v1285_v42 = vsub.f32 1.0, %v6904_v46 }
 0x364   :  { %6905 = vtanh.f32 %v1283_v29  ;;  %5913 = vmatpush1.bf16.msra.mxu0 %v9087_v24  ;;  %5940 = vmatpush3.bf16.msra.mxu1 %v9088_v16 }
 0x365   :  { %5915 = vmatprep.subr.bf16.mxu0 %v9089_v36  ;;  %5941 = vmatprep.subr.bf16.mxu1 %v9025_v52 }
 0x368   :  { %5917 = vmatpush1.bf16.msra.mxu0 %v9090_v53  ;;  %5943 = vmatpush3.bf16.msra.mxu1 %v9091_v0  ;;  %v1287_v53 = vmul.f32 %v6904_v46, %v7925_v4  ;;  %v9093_v4 = vld [vmem:[#allocation20_spill] sm:$0xff]  ;;  %v9094_v46 = vld [vmem:[#allocation11_spill] sm:$0xff] }
 0x369   :  { %5919 = vmatprep.subr.bf16.mxu0 %v9092_v1  ;;  %5944 = vmatprep.subr.bf16.mxu1 %v9025_v52 }
 0x36c   :  { %5921 = vmatpush1.bf16.msra.mxu0 %v9063_v17  ;;  %5946 = vmatpush3.bf16.msra.mxu1 %v9064_v3 }
 0x36d   :  { %5923 = vmatprep.subr.bf16.mxu0 %v9065_v22  ;;  %5947 = vmatprep.subr.bf16.mxu1 %v9025_v52 }
 0x36e   :  { %v6906_v45 = vpop.eup %6905 }
 0x36f   :  { %v1286_v29 = vmul.f32 %v6906_v45, %v1285_v42  ;;  %v9096_v42 = vld [vmem:[#allocation21_spill] sm:$0xff]  ;;  %v9097_v45 = vld [vmem:[#allocation22_spill] sm:$0xff] }
 0x370   :  { %5925 = vmatpush1.bf16.msra.mxu0 %v9066_v59  ;;  %5949 = vmatpush3.bf16.msra.mxu1 %v9067_v60 }
 0x371   :  { %5951 = vmatprep.subr.bf16.mxu0 %v9068_v10  ;;  %5982 = vmatprep.subr.bf16.mxu1 %v9025_v52  ;;  %v8058_v17 = vadd.f32 %v1287_v53, %v1286_v29  ;;  %v9095_v53 = vld [vmem:[#allocation13_spill] sm:$0xff]  ;;  %v9098_v29 = vld [vmem:[#allocation23_spill] sm:$0xff] }
 0x373   :  { %1495 = vmatmul.mubr.f32.vlgmr.msra.gmra.mrb[8].mxu0 %v8058_v17  ;;  %4875 = vmatmul.mubr.f32.vlgmr.msra.gmra.mrb[18].mxu1 %v8058_v17 }
 0x374   :  { %5953 = vmatpush1.bf16.msra.mxu0 %v7097_v8  ;;  %5984 = vmatpush3.bf16.msra.mxu1 %v7281_v7 }
 0x375   :  { %5955 = vmatprep.subr.bf16.mxu0 %v7099_v9  ;;  %5985 = vmatprep.subr.bf16.mxu1 %v9025_v52 }
 0x376   :  { %1661 = vmatprep.mubr.f32.mxu0 %v9038_v25  ;;  %4909 = vmatprep.mubr.msk.f32.mxu1 %vm7024_vm0, %v9038_v25 }
 0x378   :  { %5957 = vmatpush1.bf16.msra.mxu0 %v7115_v14  ;;  %5987 = vmatpush3.bf16.msra.mxu1 %v7292_v13 }
 0x379   :  { %5959 = vmatprep.subr.bf16.mxu0 %v7118_v15  ;;  %5988 = vmatprep.subr.bf16.mxu1 %v9025_v52 }
 0x37c   :  { %5961 = vmatpush1.bf16.msra.mxu0 %v7133_v20  ;;  %5990 = vmatpush3.bf16.msra.mxu1 %v7304_v18 }
 0x37d   :  { %5963 = vmatprep.subr.bf16.mxu0 %v7136_v21  ;;  %5991 = vmatprep.subr.bf16.mxu1 %v9025_v52 }
 0x380   :  { %5965 = vmatpush1.bf16.msra.mxu0 %v7151_v26  ;;  %5993 = vmatpush3.bf16.msra.mxu1 %v7314_v23 }
 0x381   :  { %5967 = vmatprep.subr.bf16.mxu0 %v7154_v27  ;;  %5994 = vmatprep.subr.bf16.mxu1 %v9025_v52 }
 0x384   :  { %5969 = vmatpush1.bf16.msra.mxu0 %v7175_v34  ;;  %5996 = vmatpush3.bf16.msra.mxu1 %v7324_v28 }
 0x385   :  { %5971 = vmatprep.subr.bf16.mxu0 %v7187_v38  ;;  %5997 = vmatprep.subr.bf16.mxu1 %v9025_v52 }
 0x388   :  { %5973 = vmatpush1.bf16.msra.mxu0 %v7218_v49  ;;  %5999 = vmatpush3.bf16.msra.mxu1 %v7334_v31 }
 0x389   :  { %5975 = vmatprep.subr.bf16.mxu0 %v7233_v54  ;;  %6000 = vmatprep.subr.bf16.mxu1 %v9025_v52 }
 0x38c   :  { %5977 = vmatpush1.bf16.msra.mxu0 %v7254_v61  ;;  %6002 = vmatpush3.bf16.msra.mxu1 %v7344_v35 }
 0x38d   :  { %5979 = vmatprep.subr.bf16.mxu0 %v7260_v63  ;;  %6003 = vmatprep.subr.bf16.mxu1 %v9025_v52 }
 0x390   :  { %5981 = vmatpush1.bf16.msra.mxu0 %v7270_v2  ;;  %6005 = vmatpush3.bf16.msra.mxu1 %v7354_v39 }
 0x391   :  { %6007 = vmatprep.subr.bf16.mxu0 %v7195_v41  ;;  %6038 = vmatprep.subr.bf16.mxu1 %v9025_v52 }
 0x393   :  { %1662 = vmatmul.mubr.f32.vlgmr.msra.gmra.mrb[10].mxu0 %v8058_v17  ;;  %4910 = vmatmul.mubr.f32.vlgmr.msra.gmra.mrb[20].mxu1 %v8058_v17 }
 0x394   :  { %6009 = vmatpush1.bf16.msra.mxu0 %v7200_v43  ;;  %6040 = vmatpush3.bf16.msra.mxu1 %v7364_v44  ;;  %v9100_v44 = vld [vmem:[#allocation25_spill] sm:$0xff] }
 0x395   :  { %6011 = vmatprep.subr.bf16.mxu0 %v7212_v47  ;;  %6041 = vmatprep.subr.bf16.mxu1 %v9025_v52  ;;  %v9099_v47 = vld [vmem:[#allocation24_spill] sm:$0xff] }
 0x396   :  { %1824 = vmatprep.mubr.f32.mxu0 %v9038_v25  ;;  %4944 = vmatprep.mubr.msk.f32.mxu1 %vm7024_vm0, %v9038_v25 }
 0x398   :  { %6013 = vmatpush1.bf16.msra.mxu0 %v7224_v51  ;;  %6043 = vmatpush3.bf16.msra.mxu1 %v9093_v4  ;;  %v9101_v4 = vld [vmem:[#allocation26_spill] sm:$0xff]  ;;  %v9103_v51 = vld [vmem:[#allocation28_spill] sm:$0xff] }
 0x399   :  { %6015 = vmatprep.subr.bf16.mxu0 %v9094_v46  ;;  %6044 = vmatprep.subr.bf16.mxu1 %v9025_v52  ;;  %v9102_v46 = vld [vmem:[#allocation27_spill] sm:$0xff] }
 0x39c   :  { %6017 = vmatpush1.bf16.msra.mxu0 %v9095_v53  ;;  %6046 = vmatpush3.bf16.msra.mxu1 %v9096_v42  ;;  %v9104_v42 = vld [vmem:[#allocation29_spill] sm:$0xff]  ;;  %v9106_v53 = vld [vmem:[#allocation31_spill] sm:$0xff] }
 0x39d   :  { %6019 = vmatprep.subr.bf16.mxu0 %v9097_v45  ;;  %6047 = vmatprep.subr.bf16.mxu1 %v9025_v52  ;;  %v9105_v45 = vld [vmem:[#allocation30_spill] sm:$0xff] }
 0x3a0   :  { %6021 = vmatpush1.bf16.msra.mxu0 %v9098_v29  ;;  %6049 = vmatpush3.bf16.msra.mxu1 %v9099_v47  ;;  %v9107_v47 = vld [vmem:[#allocation32_spill] sm:$0xff]  ;;  %v9109_v29 = vld [vmem:[#allocation34_spill] sm:$0xff] }
 0x3a1   :  { %6023 = vmatprep.subr.bf16.mxu0 %v9100_v44  ;;  %6050 = vmatprep.subr.bf16.mxu1 %v9025_v52  ;;  %v9108_v44 = vld [vmem:[#allocation33_spill] sm:$0xff] }
 0x3a4   :  { %6025 = vmatpush1.bf16.msra.mxu0 %v9101_v4  ;;  %6052 = vmatpush3.bf16.msra.mxu1 %v9102_v46  ;;  %v9110_v46 = vld [vmem:[#allocation35_spill] sm:$0xff]  ;;  %v9112_v4 = vld [vmem:[#allocation37_spill] sm:$0xff] }
 0x3a5   :  { %6027 = vmatprep.subr.bf16.mxu0 %v9103_v51  ;;  %6053 = vmatprep.subr.bf16.mxu1 %v9025_v52  ;;  %v9111_v51 = vld [vmem:[#allocation36_spill] sm:$0xff] }
 0x3a8   :  { %6029 = vmatpush1.bf16.msra.mxu0 %v9104_v42  ;;  %6055 = vmatpush3.bf16.msra.mxu1 %v9105_v45 }
 0x3a9   :  { %6031 = vmatprep.subr.bf16.mxu0 %v9106_v53  ;;  %6056 = vmatprep.subr.bf16.mxu1 %v9025_v52 }
 0x3ac   :  { %6033 = vmatpush1.bf16.msra.mxu0 %v9107_v47  ;;  %6058 = vmatpush3.bf16.msra.mxu1 %v9108_v44 }
 0x3ad   :  { %6035 = vmatprep.subr.bf16.mxu0 %v9109_v29  ;;  %6059 = vmatprep.subr.bf16.mxu1 %v9025_v52 }
 0x3b0   :  { %6037 = vmatpush1.bf16.msra.mxu0 %v9110_v46  ;;  %6061 = vmatpush3.bf16.msra.mxu1 %v9111_v51 }
 0x3b1   :  { %6063 = vmatprep.subr.bf16.mxu0 %v9112_v4  ;;  %6094 = vmatprep.subr.bf16.mxu1 %v9025_v52 }
 0x426   :  { %v1426_v45 = vpop.f32.mrb[16].mxu1 }
 0x427   :  { %v4841_v53 = vpop.f32.mrb[17].mxu1  ;;  %v1585_v35 = vadd.f32 %v1426_v45, %v9076_v58 }
 0x446   :  { %v1496_v42 = vpop.f32.mrb[8].mxu0  ;;  %v1567_v43 = vpop.f32.mrb[18].mxu1 }
 0x447   :  { %v1497_v47 = vadd.f32 %v1496_v42, %v9074_v33  ;;  %v1498_v41 = vpop.f32.mrb[9].mxu0  ;;  %v4876_v44 = vpop.f32.mrb[19].mxu1  ;;  %v1568_v61 = vadd.f32 %v1567_v43, %v9077_v62 }
 0x448   :  { %v1499_v29 = vadd.f32 %v1498_v41, %v9075_v57 }
 0x449   :  { %v4107_v39 = vmul.f32 -1.442695, %v1497_v47  ;;  %v1594_v47 = vld [vmem:[%s8826_s0 + $0x48] sm:$0xff] }
 0x44a   :  { %v4108_v2 = vmul.f32 -1.442695, %v1499_v29 }
 0x44b   :  { %6907 = vpow2.f32 %v4107_v39 }
 0x44c   :  { %6909 = vpow2.f32 %v4108_v2 }
 0x455   :  { %v6908_v46 = vpop.eup %6907 }
 0x456   :  { %v1579_v51 = vadd.f32 1.0, %v6908_v46  ;;  %v6910_v4 = vpop.eup %6909 }
 0x457   :  { %v1580_v63 = vadd.f32 1.0, %v6910_v4 }
 0x458   :  { %6911 = vrcp.f32 %v1579_v51  ;;  %v1595_v51 = vld [vmem:[%s8826_s0 + $0x50] sm:$0xff] }
 0x459   :  { %6913 = vrcp.f32 %v1580_v63 }
 0x462   :  { %v6912_v53 = vpop.eup %6911 }
 0x463   :  { %v1586_v54 = vmul.f32 %v6912_v53, %v1585_v35  ;;  %v6914_v43 = vpop.eup %6913 }
 0x464   :  { %v1589_v35 = vsub.f32 1.0, %v6914_v43 }
 0x465   :  { %v1587_v41 = vadd.f32 %v1586_v54, %v1568_v61  ;;  %v1591_v54 = vmul.f32 %v6914_v43, %v8014_v48  ;;  %v9131_v48 = vld [vmem:[#allocation21_spill] sm:$0xff] }
 0x466   :  { %v1663_v39 = vpop.f32.mrb[10].mxu0  ;;  %v1734_v44 = vpop.f32.mrb[20].mxu1 }
 0x467   :  { %6915 = vtanh.f32 %v1587_v41  ;;  %v1738_v2 = vadd.f32 %v1663_v39, %v1594_v47  ;;  %v1665_v4 = vpop.f32.mrb[11].mxu0  ;;  %v4911_v46 = vpop.f32.mrb[21].mxu1 }
 0x468   :  { %v1739_v45 = vadd.f32 %v1665_v4, %v1595_v51  ;;  %v1752_v51 = vadd.f32 %v1734_v44, %v9083_v30  ;;  %v1596_v46 = vld [vmem:[%s8826_s0 + $0x58] sm:$0xff]  ;;  %v9115_v30 = vld [vmem:[#allocation53_spill] sm:$0xff] }
 0x469   :  { %v4109_v42 = vmul.f32 -1.442695, %v1738_v2 }
 0x46a   :  { %v4110_v63 = vmul.f32 -1.442695, %v1739_v45  ;;  %v9114_v45 = vld [vmem:[#allocation49_spill] sm:$0xff] }
 0x46b   :  { %6917 = vpow2.f32 %v4109_v42 }
 0x46c   :  { %6919 = vpow2.f32 %v4110_v63  ;;  %v9116_v63 = vld [vmem:[#allocation56_spill] sm:$0xff] }
 0x471   :  { %v6916_v29 = vpop.eup %6915 }
 0x472   :  { %v1590_v53 = vmul.f32 %v6916_v29, %v1589_v35 }
 0x474   :  { %v8145_v61 = vadd.f32 %v1591_v54, %v1590_v53 }
 0x475   :  { %v6918_v47 = vpop.eup %6917 }
 0x476   :  { %9113 = vst [vmem:[#allocation39_spill] sm:$0xff] %v8145_v61  ;;  %v1746_v41 = vadd.f32 1.0, %v6918_v47  ;;  %1825 = vmatmul.mubr.f32.vlgmr.msra.gmra.mrb[12].mxu0 %v8145_v61  ;;  %4945 = vmatmul.mubr.f32.vlgmr.msra.gmra.mrb[22].mxu1 %v8145_v61  ;;  %v6920_v39 = vpop.eup %6919 }
 0x477   :  { %6065 = vmatpush1.bf16.msra.mxu0 %v9045_v12  ;;  %6096 = vmatpush3.bf16.msra.mxu1 %v9046_v37  ;;  %v1747_v2 = vadd.f32 1.0, %v6920_v39  ;;  %v9119_v39 = vld [vmem:[#allocation17_spill] sm:$0xff] }
 0x478   :  { %6921 = vrcp.f32 %v1746_v41  ;;  %6067 = vmatprep.subr.bf16.mxu0 %v9047_v19  ;;  %6097 = vmatprep.subr.bf16.mxu1 %v9025_v52  ;;  %v9118_v41 = vld [vmem:[#allocation12_spill] sm:$0xff] }
 0x479   :  { %1965 = vmatprep.mubr.f32.mxu0 %v9038_v25  ;;  %4979 = vmatprep.mubr.msk.f32.mxu1 %vm7024_vm0, %v9038_v25  ;;  %6923 = vrcp.f32 %v1747_v2  ;;  %v9120_v2 = vld [vmem:[#allocation14_spill] sm:$0xff] }
 0x47b   :  { %6069 = vmatpush1.bf16.msra.mxu0 %v9048_v11  ;;  %6099 = vmatpush3.bf16.msra.mxu1 %v9049_v32 }
 0x47c   :  { %6071 = vmatprep.subr.bf16.mxu0 %v9079_v6  ;;  %6100 = vmatprep.subr.bf16.mxu1 %v9025_v52 }
 0x47f   :  { %6073 = vmatpush1.bf16.msra.mxu0 %v9080_v50  ;;  %6102 = vmatpush3.bf16.msra.mxu1 %v9081_v40 }
 0x480   :  { %6075 = vmatprep.subr.bf16.mxu0 %v9082_v5  ;;  %6103 = vmatprep.subr.bf16.mxu1 %v9025_v52 }
 0x482   :  { %v6922_v4 = vpop.eup %6921 }
 0x483   :  { %v1753_v42 = vmul.f32 %v6922_v4, %v1752_v51  ;;  %6077 = vmatpush1.bf16.msra.mxu0 %v9084_v55  ;;  %6105 = vmatpush3.bf16.msra.mxu1 %v9085_v56  ;;  %v6924_v44 = vpop.eup %6923  ;;  %v9121_v51 = vld [vmem:[#allocation15_spill] sm:$0xff]  ;;  %v9122_v4 = vld [vmem:[#allocation18_spill] sm:$0xff] }
 0x484   :  { %6079 = vmatprep.subr.bf16.mxu0 %v9114_v45  ;;  %6106 = vmatprep.subr.bf16.mxu1 %v9025_v52  ;;  %v1756_v35 = vsub.f32 1.0, %v6924_v44  ;;  %v1758_v54 = vmul.f32 %v6924_v44, %v8058_v17  ;;  %v9117_v17 = vld [vmem:[#allocation10_spill] sm:$0xff]  ;;  %v9126_v44 = vld [vmem:[#allocation7_spill] sm:$0xff] }
 0x485   :  { %v1754_v43 = vadd.f32 %v1753_v42, %v1596_v46  ;;  %v9123_v46 = vld [vmem:[#allocation5_spill] sm:$0xff]  ;;  %v9124_v42 = vld [vmem:[#allocation6_spill] sm:$0xff] }
 0x487   :  { %6925 = vtanh.f32 %v1754_v43  ;;  %6081 = vmatpush1.bf16.msra.mxu0 %v9087_v24  ;;  %6108 = vmatpush3.bf16.msra.mxu1 %v9088_v16  ;;  %v9125_v43 = vld [vmem:[#allocation19_spill] sm:$0xff] }
 0x488   :  { %6083 = vmatprep.subr.bf16.mxu0 %v9089_v36  ;;  %6109 = vmatprep.subr.bf16.mxu1 %v9025_v52 }
 0x48b   :  { %6085 = vmatpush1.bf16.msra.mxu0 %v9115_v30  ;;  %6111 = vmatpush3.bf16.msra.mxu1 %v9091_v0 }
 0x48c   :  { %6087 = vmatprep.subr.bf16.mxu0 %v9092_v1  ;;  %6112 = vmatprep.subr.bf16.mxu1 %v9025_v52 }
 0x48f   :  { %6089 = vmatpush1.bf16.msra.mxu0 %v9116_v63  ;;  %6114 = vmatpush3.bf16.msra.mxu1 %v9064_v3 }
 0x490   :  { %6091 = vmatprep.subr.bf16.mxu0 %v9065_v22  ;;  %6115 = vmatprep.subr.bf16.mxu1 %v9025_v52 }
 0x491   :  { %v6926_v29 = vpop.eup %6925 }
 0x492   :  { %v1757_v53 = vmul.f32 %v6926_v29, %v1756_v35  ;;  %v9127_v35 = vld [vmem:[#allocation9_spill] sm:$0xff]  ;;  %v9128_v29 = vld [vmem:[#allocation20_spill] sm:$0xff] }
 0x493   :  { %6093 = vmatpush1.bf16.msra.mxu0 %v9066_v59  ;;  %6117 = vmatpush3.bf16.msra.mxu1 %v9067_v60 }
 0x494   :  { %v8187_v47 = vadd.f32 %v1758_v54, %v1757_v53  ;;  %6119 = vmatprep.subr.bf16.mxu0 %v9068_v10  ;;  %6150 = vmatprep.subr.bf16.mxu1 %v9025_v52  ;;  %v9129_v53 = vld [vmem:[#allocation11_spill] sm:$0xff]  ;;  %v9130_v54 = vld [vmem:[#allocation13_spill] sm:$0xff] }
 0x496   :  { %1966 = vmatmul.mubr.f32.vlgmr.msra.gmra.mrb[12].mxu0 %v8187_v47  ;;  %4980 = vmatmul.mubr.f32.vlgmr.msra.gmra.mrb[24].mxu1 %v8187_v47 }
 0x497   :  { %6121 = vmatpush1.bf16.msra.mxu0 %v7097_v8  ;;  %6152 = vmatpush3.bf16.msra.mxu1 %v7281_v7 }
 0x498   :  { %6123 = vmatprep.subr.bf16.mxu0 %v7099_v9  ;;  %6153 = vmatprep.subr.bf16.mxu1 %v9025_v52 }
 0x499   :  { %2132 = vmatprep.mubr.f32.mxu0 %v9038_v25  ;;  %5014 = vmatprep.mubr.msk.f32.mxu1 %vm7024_vm0, %v9038_v25 }
 0x49b   :  { %6125 = vmatpush1.bf16.msra.mxu0 %v7115_v14  ;;  %6155 = vmatpush3.bf16.msra.mxu1 %v7292_v13 }
 0x49c   :  { %6127 = vmatprep.subr.bf16.mxu0 %v7118_v15  ;;  %6156 = vmatprep.subr.bf16.mxu1 %v9025_v52 }
 0x49f   :  { %6129 = vmatpush1.bf16.msra.mxu0 %v7133_v20  ;;  %6158 = vmatpush3.bf16.msra.mxu1 %v7304_v18 }
 0x4a0   :  { %6131 = vmatprep.subr.bf16.mxu0 %v7136_v21  ;;  %6159 = vmatprep.subr.bf16.mxu1 %v9025_v52 }
 0x4a3   :  { %6133 = vmatpush1.bf16.msra.mxu0 %v7151_v26  ;;  %6161 = vmatpush3.bf16.msra.mxu1 %v7314_v23 }
 0x4a4   :  { %6135 = vmatprep.subr.bf16.mxu0 %v7154_v27  ;;  %6162 = vmatprep.subr.bf16.mxu1 %v9025_v52 }
 0x4a7   :  { %6137 = vmatpush1.bf16.msra.mxu0 %v7175_v34  ;;  %6164 = vmatpush3.bf16.msra.mxu1 %v7324_v28 }
 0x4a8   :  { %6139 = vmatprep.subr.bf16.mxu0 %v7187_v38  ;;  %6165 = vmatprep.subr.bf16.mxu1 %v9025_v52 }
 0x4ab   :  { %6141 = vmatpush1.bf16.msra.mxu0 %v7218_v49  ;;  %6167 = vmatpush3.bf16.msra.mxu1 %v7334_v31 }
 0x4ac   :  { %6143 = vmatprep.subr.bf16.mxu0 %v9117_v17  ;;  %6168 = vmatprep.subr.bf16.mxu1 %v9025_v52 }
 0x4af   :  { %6145 = vmatpush1.bf16.msra.mxu0 %v9118_v41  ;;  %6170 = vmatpush3.bf16.msra.mxu1 %v9119_v39 }
 0x4b0   :  { %6147 = vmatprep.subr.bf16.mxu0 %v9120_v2  ;;  %6171 = vmatprep.subr.bf16.mxu1 %v9025_v52 }
 0x4b3   :  { %6149 = vmatpush1.bf16.msra.mxu0 %v9121_v51  ;;  %6173 = vmatpush3.bf16.msra.mxu1 %v9122_v4 }
 0x4b4   :  { %6175 = vmatprep.subr.bf16.mxu0 %v9123_v46  ;;  %6206 = vmatprep.subr.bf16.mxu1 %v9025_v52  ;;  %v9135_v46 = vld [vmem:[#allocation25_spill] sm:$0xff] }
 0x4b6   :  { %2133 = vmatmul.mubr.f32.vlgmr.msra.gmra.mrb[14].mxu0 %v8187_v47  ;;  %5015 = vmatmul.mubr.f32.vlgmr.msra.gmra.mrb[26].mxu1 %v8187_v47 }
 0x4b7   :  { %6177 = vmatpush1.bf16.msra.mxu0 %v9124_v42  ;;  %6208 = vmatpush3.bf16.msra.mxu1 %v9125_v43  ;;  %v9133_v43 = vld [vmem:[#allocation23_spill] sm:$0xff]  ;;  %v9134_v42 = vld [vmem:[#allocation24_spill] sm:$0xff] }
 0x4b8   :  { %6179 = vmatprep.subr.bf16.mxu0 %v9126_v44  ;;  %6209 = vmatprep.subr.bf16.mxu1 %v9025_v52  ;;  %v9132_v44 = vld [vmem:[#allocation22_spill] sm:$0xff] }
 0x4b9   :  { %2295 = vmatprep.mubr.f32.mxu0 %v9038_v25  ;;  %5049 = vmatprep.mubr.msk.f32.mxu1 %vm7024_vm0, %v9038_v25 }
 0x4bb   :  { %6181 = vmatpush1.bf16.msra.mxu0 %v9127_v35  ;;  %6211 = vmatpush3.bf16.msra.mxu1 %v9128_v29  ;;  %v9136_v29 = vld [vmem:[#allocation26_spill] sm:$0xff]  ;;  %v9138_v35 = vld [vmem:[#allocation28_spill] sm:$0xff] }
 0x4bc   :  { %6183 = vmatprep.subr.bf16.mxu0 %v9129_v53  ;;  %6212 = vmatprep.subr.bf16.mxu1 %v9025_v52  ;;  %v9137_v53 = vld [vmem:[#allocation27_spill] sm:$0xff] }
 0x4bf   :  { %6185 = vmatpush1.bf16.msra.mxu0 %v9130_v54  ;;  %6214 = vmatpush3.bf16.msra.mxu1 %v9131_v48  ;;  %v9139_v48 = vld [vmem:[#allocation29_spill] sm:$0xff]  ;;  %v9141_v54 = vld [vmem:[#allocation31_spill] sm:$0xff] }
 0x4c0   :  { %6187 = vmatprep.subr.bf16.mxu0 %v9132_v44  ;;  %6215 = vmatprep.subr.bf16.mxu1 %v9025_v52  ;;  %v9140_v44 = vld [vmem:[#allocation30_spill] sm:$0xff] }
 0x4c3   :  { %6189 = vmatpush1.bf16.msra.mxu0 %v9133_v43  ;;  %6217 = vmatpush3.bf16.msra.mxu1 %v9134_v42  ;;  %v9142_v42 = vld [vmem:[#allocation32_spill] sm:$0xff]  ;;  %v9144_v43 = vld [vmem:[#allocation34_spill] sm:$0xff] }
 0x4c4   :  { %6191 = vmatprep.subr.bf16.mxu0 %v9135_v46  ;;  %6218 = vmatprep.subr.bf16.mxu1 %v9025_v52  ;;  %v9143_v46 = vld [vmem:[#allocation33_spill] sm:$0xff] }
 0x4c7   :  { %6193 = vmatpush1.bf16.msra.mxu0 %v9136_v29  ;;  %6220 = vmatpush3.bf16.msra.mxu1 %v9137_v53  ;;  %v9145_v53 = vld [vmem:[#allocation35_spill] sm:$0xff]  ;;  %v9147_v29 = vld [vmem:[#allocation37_spill] sm:$0xff] }
 0x4c8   :  { %6195 = vmatprep.subr.bf16.mxu0 %v9138_v35  ;;  %6221 = vmatprep.subr.bf16.mxu1 %v9025_v52  ;;  %v9146_v35 = vld [vmem:[#allocation36_spill] sm:$0xff] }
 0x4cb   :  { %6197 = vmatpush1.bf16.msra.mxu0 %v9139_v48  ;;  %6223 = vmatpush3.bf16.msra.mxu1 %v9140_v44 }
 0x4cc   :  { %6199 = vmatprep.subr.bf16.mxu0 %v9141_v54  ;;  %6224 = vmatprep.subr.bf16.mxu1 %v9025_v52 }
 0x4cf   :  { %6201 = vmatpush1.bf16.msra.mxu0 %v9142_v42  ;;  %6226 = vmatpush3.bf16.msra.mxu1 %v9143_v46 }
 0x4d0   :  { %6203 = vmatprep.subr.bf16.mxu0 %v9144_v43  ;;  %6227 = vmatprep.subr.bf16.mxu1 %v9025_v52 }
 0x4d3   :  { %6205 = vmatpush1.bf16.msra.mxu0 %v9145_v53  ;;  %6229 = vmatpush3.bf16.msra.mxu1 %v9146_v35 }
 0x4d4   :  { %6231 = vmatprep.subr.bf16.mxu0 %v9147_v29  ;;  %6262 = vmatprep.subr.bf16.mxu1 %v9025_v52 }
 0x549   :  { %v1897_v44 = vpop.f32.mrb[22].mxu1 }
 0x54a   :  { %v4946_v54 = vpop.f32.mrb[23].mxu1  ;;  %v2056_v17 = vadd.f32 %v1897_v44, %v9076_v58 }
 0x569   :  { %v1967_v48 = vpop.f32.mrb[12].mxu0  ;;  %v2038_v4 = vpop.f32.mrb[24].mxu1 }
 0x56a   :  { %v1968_v42 = vadd.f32 %v1967_v48, %v9074_v33  ;;  %v1969_v51 = vpop.f32.mrb[13].mxu0  ;;  %v4981_v46 = vpop.f32.mrb[25].mxu1  ;;  %v2039_v31 = vadd.f32 %v2038_v4, %v9077_v62  ;;  %v2065_v33 = vld [vmem:[%s8826_s0 + $0x60] sm:$0xff] }
 0x56b   :  { %v1970_v43 = vadd.f32 %v1969_v51, %v9075_v57  ;;  %v2066_v51 = vld [vmem:[%s8826_s0 + $0x68] sm:$0xff] }
 0x56c   :  { %v4111_v2 = vmul.f32 -1.442695, %v1968_v42 }
 0x56d   :  { %v4112_v39 = vmul.f32 -1.442695, %v1970_v43 }
 0x56e   :  { %6927 = vpow2.f32 %v4111_v2 }
 0x56f   :  { %6929 = vpow2.f32 %v4112_v39 }
 0x578   :  { %v6928_v53 = vpop.eup %6927 }
 0x579   :  { %v2050_v35 = vadd.f32 1.0, %v6928_v53  ;;  %v6930_v29 = vpop.eup %6929 }
 0x57a   :  { %v2051_v41 = vadd.f32 1.0, %v6930_v29 }
 0x57b   :  { %6931 = vrcp.f32 %v2050_v35 }
 0x57c   :  { %6933 = vrcp.f32 %v2051_v41 }
 0x585   :  { %v6932_v54 = vpop.eup %6931 }
 0x586   :  { %v2057_v49 = vmul.f32 %v6932_v54, %v2056_v17  ;;  %v6934_v62 = vpop.eup %6933 }
 0x587   :  { %v2060_v41 = vsub.f32 1.0, %v6934_v62 }
 0x588   :  { %v2058_v57 = vadd.f32 %v2057_v49, %v2039_v31  ;;  %v2062_v49 = vmul.f32 %v6934_v62, %v8145_v61  ;;  %v9168_v61 = vld [vmem:[#allocation24_spill] sm:$0xff] }
 0x589   :  { %v2134_v48 = vpop.f32.mrb[14].mxu0  ;;  %v2205_v2 = vpop.f32.mrb[26].mxu1 }
 0x58a   :  { %6935 = vtanh.f32 %v2058_v57  ;;  %v2209_v39 = vadd.f32 %v2134_v48, %v2065_v33  ;;  %v2136_v46 = vpop.f32.mrb[15].mxu0  ;;  %v5016_v58 = vpop.f32.mrb[27].mxu1  ;;  %v8298_v33 = vld [vmem:[%s8827_s2] sm:$0xff] }
 0x58b   :  { %v2210_v43 = vadd.f32 %v2136_v46, %v2066_v51  ;;  %v2223_v57 = vadd.f32 %v8298_v33, %v2205_v2 }
 0x58c   :  { %v4113_v42 = vmul.f32 -1.442695, %v2209_v39  ;;  %v2067_v39 = vld [vmem:[%s8826_s0 + $0x70] sm:$0xff] }
 0x58d   :  { %v4114_v17 = vmul.f32 -1.442695, %v2210_v43 }
 0x58e   :  { %6937 = vpow2.f32 %v4113_v42 }
 0x58f   :  { %6939 = vpow2.f32 %v4114_v17 }
 0x594   :  { %v6936_v4 = vpop.eup %6935 }
 0x595   :  { %v2061_v44 = vmul.f32 %v6936_v4, %v2060_v41  ;;  %v9150_v41 = vld [vmem:[#allocation16_spill] sm:$0xff]  ;;  %v9151_v4 = vld [vmem:[#allocation10_spill] sm:$0xff] }
 0x597   :  { %v8276_v31 = vadd.f32 %v2062_v49, %v2061_v44  ;;  %v9152_v44 = vld [vmem:[#allocation12_spill] sm:$0xff]  ;;  %v9153_v49 = vld [vmem:[#allocation17_spill] sm:$0xff] }
 0x598   :  { %v6938_v35 = vpop.eup %6937 }
 0x599   :  { %9148 = vst [vmem:[#allocation40_spill] sm:$0xff] %v8276_v31  ;;  %v2217_v29 = vadd.f32 1.0, %v6938_v35  ;;  %2296 = vmatmul.mubr.f32.vlgmr.msra.gmra.mrb[16].mxu0 %v8276_v31  ;;  %5050 = vmatmul.mubr.f32.vlgmr.msra.gmra.mrb[28].mxu1 %v8276_v31  ;;  %v6940_v53 = vpop.eup %6939  ;;  %v9154_v35 = vld [vmem:[#allocation14_spill] sm:$0xff] }
 0x59a   :  { %6233 = vmatpush1.bf16.msra.mxu0 %v9045_v12  ;;  %6264 = vmatpush3.bf16.msra.mxu1 %v9046_v37  ;;  %v2218_v54 = vadd.f32 1.0, %v6940_v53  ;;  %v9156_v53 = vld [vmem:[#allocation18_spill] sm:$0xff] }
 0x59b   :  { %6941 = vrcp.f32 %v2217_v29  ;;  %6235 = vmatprep.subr.bf16.mxu0 %v9047_v19  ;;  %6265 = vmatprep.subr.bf16.mxu1 %v9025_v52  ;;  %v9155_v29 = vld [vmem:[#allocation15_spill] sm:$0xff] }
 0x59c   :  { %2436 = vmatprep.mubr.f32.mxu0 %v9038_v25  ;;  %5084 = vmatprep.mubr.msk.f32.mxu1 %vm7024_vm0, %v9038_v25  ;;  %6943 = vrcp.f32 %v2218_v54  ;;  %v9157_v54 = vld [vmem:[#allocation5_spill] sm:$0xff] }
 0x59e   :  { %6237 = vmatpush1.bf16.msra.mxu0 %v9048_v11  ;;  %6267 = vmatpush3.bf16.msra.mxu1 %v9049_v32 }
 0x59f   :  { %6239 = vmatprep.subr.bf16.mxu0 %v9079_v6  ;;  %6268 = vmatprep.subr.bf16.mxu1 %v9025_v52 }
 0x5a2   :  { %6241 = vmatpush1.bf16.msra.mxu0 %v9080_v50  ;;  %6270 = vmatpush3.bf16.msra.mxu1 %v9081_v40 }
 0x5a3   :  { %6243 = vmatprep.subr.bf16.mxu0 %v9082_v5  ;;  %6271 = vmatprep.subr.bf16.mxu1 %v9025_v52 }
 0x5a5   :  { %v6942_v48 = vpop.eup %6941 }
 0x5a6   :  { %v2224_v51 = vmul.f32 %v6942_v48, %v2223_v57  ;;  %6245 = vmatpush1.bf16.msra.mxu0 %v9084_v55  ;;  %6273 = vmatpush3.bf16.msra.mxu1 %v9085_v56  ;;  %v6944_v2 = vpop.eup %6943  ;;  %v9158_v57 = vld [vmem:[#allocation6_spill] sm:$0xff]  ;;  %v9159_v48 = vld [vmem:[#allocation19_spill] sm:$0xff] }
 0x5a7   :  { %6247 = vmatprep.subr.bf16.mxu0 %v9114_v45  ;;  %6274 = vmatprep.subr.bf16.mxu1 %v9025_v52  ;;  %v2227_v58 = vsub.f32 1.0, %v6944_v2  ;;  %v2229_v62 = vmul.f32 %v6944_v2, %v8187_v47  ;;  %v9149_v47 = vld [vmem:[#allocation8_spill] sm:$0xff]  ;;  %v9163_v2 = vld [vmem:[#allocation11_spill] sm:$0xff] }
 0x5a8   :  { %v2225_v46 = vadd.f32 %v2224_v51, %v2067_v39  ;;  %v9160_v39 = vld [vmem:[#allocation7_spill] sm:$0xff]  ;;  %v9161_v51 = vld [vmem:[#allocation9_spill] sm:$0xff] }
 0x5aa   :  { %6945 = vtanh.f32 %v2225_v46  ;;  %6249 = vmatpush1.bf16.msra.mxu0 %v9087_v24  ;;  %6276 = vmatpush3.bf16.msra.mxu1 %v9088_v16  ;;  %v9162_v46 = vld [vmem:[#allocation20_spill] sm:$0xff] }
 0x5ab   :  { %6251 = vmatprep.subr.bf16.mxu0 %v9089_v36  ;;  %6277 = vmatprep.subr.bf16.mxu1 %v9025_v52 }
 0x5ae   :  { %6253 = vmatpush1.bf16.msra.mxu0 %v9115_v30  ;;  %6279 = vmatpush3.bf16.msra.mxu1 %v9091_v0 }
 0x5af   :  { %6255 = vmatprep.subr.bf16.mxu0 %v9092_v1  ;;  %6280 = vmatprep.subr.bf16.mxu1 %v9025_v52 }
 0x5b2   :  { %6257 = vmatpush1.bf16.msra.mxu0 %v9116_v63  ;;  %6282 = vmatpush3.bf16.msra.mxu1 %v9064_v3 }
 0x5b3   :  { %6259 = vmatprep.subr.bf16.mxu0 %v9065_v22  ;;  %6283 = vmatprep.subr.bf16.mxu1 %v9025_v52 }
 0x5b4   :  { %v6946_v42 = vpop.eup %6945 }
 0x5b5   :  { %v2228_v43 = vmul.f32 %v6946_v42, %v2227_v58  ;;  %v9164_v58 = vld [vmem:[#allocation13_spill] sm:$0xff] }
 0x5b6   :  { %6261 = vmatpush1.bf16.msra.mxu0 %v9066_v59  ;;  %6285 = vmatpush3.bf16.msra.mxu1 %v9067_v60  ;;  %v9165_v42 = vld [vmem:[#allocation21_spill] sm:$0xff] }
 0x5b7   :  { %6287 = vmatprep.subr.bf16.mxu0 %v9068_v10  ;;  %6318 = vmatprep.subr.bf16.mxu1 %v9025_v52  ;;  %v8325_v17 = vadd.f32 %v2229_v62, %v2228_v43  ;;  %v9166_v43 = vld [vmem:[#allocation22_spill] sm:$0xff]  ;;  %v9167_v62 = vld [vmem:[#allocation23_spill] sm:$0xff] }
 0x5b9   :  { %2437 = vmatmul.mubr.f32.vlgmr.msra.gmra.mrb[16].mxu0 %v8325_v17  ;;  %5085 = vmatmul.mubr.f32.vlgmr.msra.gmra.mrb[30].mxu1 %v8325_v17 }
 0x5ba   :  { %6289 = vmatpush1.bf16.msra.mxu0 %v7097_v8  ;;  %6320 = vmatpush3.bf16.msra.mxu1 %v7281_v7 }
 0x5bb   :  { %6291 = vmatprep.subr.bf16.mxu0 %v7099_v9  ;;  %6321 = vmatprep.subr.bf16.mxu1 %v9025_v52 }
 0x5bc   :  { %2603 = vmatprep.mubr.f32.mxu0 %v9038_v25  ;;  %5119 = vmatprep.mubr.msk.f32.mxu1 %vm7024_vm0, %v9038_v25 }
 0x5be   :  { %6293 = vmatpush1.bf16.msra.mxu0 %v7115_v14  ;;  %6323 = vmatpush3.bf16.msra.mxu1 %v7292_v13 }
 0x5bf   :  { %6295 = vmatprep.subr.bf16.mxu0 %v7118_v15  ;;  %6324 = vmatprep.subr.bf16.mxu1 %v9025_v52 }
 0x5c2   :  { %6297 = vmatpush1.bf16.msra.mxu0 %v7133_v20  ;;  %6326 = vmatpush3.bf16.msra.mxu1 %v7304_v18 }
 0x5c3   :  { %6299 = vmatprep.subr.bf16.mxu0 %v7136_v21  ;;  %6327 = vmatprep.subr.bf16.mxu1 %v9025_v52 }
 0x5c6   :  { %6301 = vmatpush1.bf16.msra.mxu0 %v7151_v26  ;;  %6329 = vmatpush3.bf16.msra.mxu1 %v7314_v23 }
 0x5c7   :  { %6303 = vmatprep.subr.bf16.mxu0 %v7154_v27  ;;  %6330 = vmatprep.subr.bf16.mxu1 %v9025_v52 }
 0x5ca   :  { %6305 = vmatpush1.bf16.msra.mxu0 %v7175_v34  ;;  %6332 = vmatpush3.bf16.msra.mxu1 %v7324_v28 }
 0x5cb   :  { %6307 = vmatprep.subr.bf16.mxu0 %v7187_v38  ;;  %6333 = vmatprep.subr.bf16.mxu1 %v9025_v52 }
 0x5ce   :  { %6309 = vmatpush1.bf16.msra.mxu0 %v9149_v47  ;;  %6335 = vmatpush3.bf16.msra.mxu1 %v9150_v41 }
 0x5cf   :  { %6311 = vmatprep.subr.bf16.mxu0 %v9151_v4  ;;  %6336 = vmatprep.subr.bf16.mxu1 %v9025_v52 }
 0x5d2   :  { %6313 = vmatpush1.bf16.msra.mxu0 %v9152_v44  ;;  %6338 = vmatpush3.bf16.msra.mxu1 %v9153_v49 }
 0x5d3   :  { %6315 = vmatprep.subr.bf16.mxu0 %v9154_v35  ;;  %6339 = vmatprep.subr.bf16.mxu1 %v9025_v52 }
 0x5d6   :  { %6317 = vmatpush1.bf16.msra.mxu0 %v9155_v29  ;;  %6341 = vmatpush3.bf16.msra.mxu1 %v9156_v53 }
 0x5d7   :  { %6343 = vmatprep.subr.bf16.mxu0 %v9157_v54  ;;  %6374 = vmatprep.subr.bf16.mxu1 %v9025_v52 }
 0x5d9   :  { %2604 = vmatmul.mubr.f32.vlgmr.msra.gmra.mrb[18].mxu0 %v8325_v17  ;;  %5120 = vmatmul.mubr.f32.vlgmr.msra.gmra.mrb[32].mxu1 %v8325_v17 }
 0x5da   :  { %6345 = vmatpush1.bf16.msra.mxu0 %v9158_v57  ;;  %6376 = vmatpush3.bf16.msra.mxu1 %v9159_v48 }
 0x5db   :  { %6347 = vmatprep.subr.bf16.mxu0 %v9160_v39  ;;  %6377 = vmatprep.subr.bf16.mxu1 %v9025_v52  ;;  %v9169_v39 = vld [vmem:[#allocation25_spill] sm:$0xff] }
 0x5dc   :  { %2766 = vmatprep.mubr.f32.mxu0 %v9038_v25  ;;  %5154 = vmatprep.mubr.msk.f32.mxu1 %vm7024_vm0, %v9038_v25 }
 0x5de   :  { %6349 = vmatpush1.bf16.msra.mxu0 %v9161_v51  ;;  %6379 = vmatpush3.bf16.msra.mxu1 %v9162_v46  ;;  %v9170_v46 = vld [vmem:[#allocation26_spill] sm:$0xff]  ;;  %v9172_v51 = vld [vmem:[#allocation28_spill] sm:$0xff] }
 0x5df   :  { %6351 = vmatprep.subr.bf16.mxu0 %v9163_v2  ;;  %6380 = vmatprep.subr.bf16.mxu1 %v9025_v52  ;;  %v9171_v2 = vld [vmem:[#allocation27_spill] sm:$0xff] }
 0x5e2   :  { %6353 = vmatpush1.bf16.msra.mxu0 %v9164_v58  ;;  %6382 = vmatpush3.bf16.msra.mxu1 %v9165_v42  ;;  %v9173_v42 = vld [vmem:[#allocation29_spill] sm:$0xff]  ;;  %v9175_v58 = vld [vmem:[#allocation31_spill] sm:$0xff] }
 0x5e3   :  { %6355 = vmatprep.subr.bf16.mxu0 %v9166_v43  ;;  %6383 = vmatprep.subr.bf16.mxu1 %v9025_v52  ;;  %v9174_v43 = vld [vmem:[#allocation30_spill] sm:$0xff] }
 0x5e6   :  { %6357 = vmatpush1.bf16.msra.mxu0 %v9167_v62  ;;  %6385 = vmatpush3.bf16.msra.mxu1 %v9168_v61  ;;  %v9176_v61 = vld [vmem:[#allocation32_spill] sm:$0xff]  ;;  %v9178_v62 = vld [vmem:[#allocation34_spill] sm:$0xff] }
 0x5e7   :  { %6359 = vmatprep.subr.bf16.mxu0 %v9169_v39  ;;  %6386 = vmatprep.subr.bf16.mxu1 %v9025_v52  ;;  %v9177_v39 = vld [vmem:[#allocation33_spill] sm:$0xff] }
 0x5ea   :  { %6361 = vmatpush1.bf16.msra.mxu0 %v9170_v46  ;;  %6388 = vmatpush3.bf16.msra.mxu1 %v9171_v2  ;;  %v9179_v2 = vld [vmem:[#allocation35_spill] sm:$0xff]  ;;  %v9181_v46 = vld [vmem:[#allocation37_spill] sm:$0xff] }
 0x5eb   :  { %6363 = vmatprep.subr.bf16.mxu0 %v9172_v51  ;;  %6389 = vmatprep.subr.bf16.mxu1 %v9025_v52  ;;  %v9180_v51 = vld [vmem:[#allocation36_spill] sm:$0xff] }
 0x5ee   :  { %6365 = vmatpush1.bf16.msra.mxu0 %v9173_v42  ;;  %6391 = vmatpush3.bf16.msra.mxu1 %v9174_v43 }
 0x5ef   :  { %6367 = vmatprep.subr.bf16.mxu0 %v9175_v58  ;;  %6392 = vmatprep.subr.bf16.mxu1 %v9025_v52 }
 0x5f2   :  { %6369 = vmatpush1.bf16.msra.mxu0 %v9176_v61  ;;  %6394 = vmatpush3.bf16.msra.mxu1 %v9177_v39  ;;  %v8404_v39 = vld [vmem:[%s8828_s4] sm:$0xff] }
 0x5f3   :  { %6371 = vmatprep.subr.bf16.mxu0 %v9178_v62  ;;  %6395 = vmatprep.subr.bf16.mxu1 %v9025_v52  ;;  %9182 = vst [vmem:[#allocation41_spill] sm:$0xff] %v8404_v39 }
 0x5f6   :  { %6373 = vmatpush1.bf16.msra.mxu0 %v9179_v2  ;;  %6397 = vmatpush3.bf16.msra.mxu1 %v9180_v51 }
 0x5f7   :  { %6399 = vmatprep.subr.bf16.mxu0 %v9181_v46  ;;  %6430 = vmatprep.subr.bf16.mxu1 %v9025_v52  ;;  %v8410_v46 = vld [vmem:[%s8828_s4 + $0x8] sm:$0xff] }
 0x5f8   :  { %9183 = vst [vmem:[#allocation42_spill] sm:$0xff] %v8410_v46 }
 0x66c   :  { %v2368_v43 = vpop.f32.mrb[28].mxu1 }
 0x66d   :  { %v5051_v58 = vpop.f32.mrb[29].mxu1 }
 0x68c   :  { %v2438_v42 = vpop.f32.mrb[16].mxu0  ;;  %v2509_v48 = vpop.f32.mrb[30].mxu1 }
 0x68d   :  { %v2439_v62 = vadd.f32 %v8404_v39, %v2438_v42  ;;  %v2440_v61 = vpop.f32.mrb[17].mxu0  ;;  %v5086_v57 = vpop.f32.mrb[31].mxu1 }
 0x68e   :  { %v2441_v51 = vadd.f32 %v8410_v46, %v2440_v61  ;;  %v8416_v57 = vld [vmem:[%s8829_s6] sm:$0xff]  ;;  %v8422_v61 = vld [vmem:[%s8828_s4 + $0x10] sm:$0xff] }
 0x68f   :  { %v4115_v2 = vmul.f32 -1.442695, %v2439_v62  ;;  %9184 = vst [vmem:[#allocation57_spill] sm:$0xff] %v8416_v57  ;;  %v2527_v42 = vadd.f32 %v8416_v57, %v2368_v43  ;;  %9185 = vst [vmem:[#allocation58_spill] sm:$0xff] %v8422_v61  ;;  %v2537_v43 = vld [vmem:[%s8826_s0 + $0x80] sm:$0xff] }
 0x690   :  { %v4116_v58 = vmul.f32 -1.442695, %v2441_v51  ;;  %v2510_v51 = vadd.f32 %v8422_v61, %v2509_v48 }
 0x691   :  { %6947 = vpow2.f32 %v4115_v2 }
 0x692   :  { %6949 = vpow2.f32 %v4116_v58 }
 0x69b   :  { %v6948_v54 = vpop.eup %6947 }
 0x69c   :  { %v2521_v53 = vadd.f32 1.0, %v6948_v54  ;;  %v6950_v29 = vpop.eup %6949 }
 0x69d   :  { %v2522_v35 = vadd.f32 1.0, %v6950_v29  ;;  %v2536_v29 = vld [vmem:[%s8826_s0 + $0x78] sm:$0xff] }
 0x69e   :  { %6951 = vrcp.f32 %v2521_v53 }
 0x69f   :  { %6953 = vrcp.f32 %v2522_v35 }
 0x6a8   :  { %v6952_v62 = vpop.eup %6951 }
 0x6a9   :  { %v2528_v2 = vmul.f32 %v6952_v62, %v2527_v42  ;;  %v6954_v48 = vpop.eup %6953 }
 0x6aa   :  { %v2531_v42 = vsub.f32 1.0, %v6954_v48 }
 0x6ab   :  { %v2529_v53 = vadd.f32 %v2528_v2, %v2510_v51  ;;  %v2533_v51 = vmul.f32 %v6954_v48, %v8276_v31  ;;  %v9202_v31 = vld [vmem:[#allocation24_spill] sm:$0xff] }
 0x6ac   :  { %v2605_v54 = vpop.f32.mrb[18].mxu0  ;;  %v2676_v58 = vpop.f32.mrb[32].mxu1 }
 0x6ad   :  { %6955 = vtanh.f32 %v2529_v53  ;;  %v2680_v46 = vadd.f32 %v2605_v54, %v2536_v29  ;;  %v2607_v57 = vpop.f32.mrb[19].mxu0  ;;  %v5121_v39 = vpop.f32.mrb[33].mxu1 }
 0x6ae   :  { %v2681_v44 = vadd.f32 %v2607_v57, %v2537_v43  ;;  %v2694_v39 = vadd.f32 %v8298_v33, %v2676_v58  ;;  %v2538_v57 = vld [vmem:[%s8826_s0 + $0x88] sm:$0xff] }
 0x6af   :  { %v4117_v49 = vmul.f32 -1.442695, %v2680_v46 }
 0x6b0   :  { %v4118_v35 = vmul.f32 -1.442695, %v2681_v44 }
 0x6b1   :  { %6957 = vpow2.f32 %v4117_v49 }
 0x6b2   :  { %6959 = vpow2.f32 %v4118_v35 }
 0x6b7   :  { %v6956_v62 = vpop.eup %6955 }
 0x6b8   :  { %v2532_v61 = vmul.f32 %v6956_v62, %v2531_v42 }
 0x6ba   :  { %v8432_v2 = vadd.f32 %v2533_v51, %v2532_v61  ;;  %v9187_v51 = vld [vmem:[#allocation17_spill] sm:$0xff] }
 0x6bb   :  { %v6958_v29 = vpop.eup %6957 }
 0x6bc   :  { %v2688_v53 = vadd.f32 1.0, %v6958_v29  ;;  %2767 = vmatmul.mubr.f32.vlgmr.msra.gmra.mrb[20].mxu0 %v8432_v2  ;;  %5155 = vmatmul.mubr.f32.vlgmr.msra.gmra.mrb[34].mxu1 %v8432_v2  ;;  %v6960_v44 = vpop.eup %6959  ;;  %v9188_v29 = vld [vmem:[#allocation14_spill] sm:$0xff] }
 0x6bd   :  { %6401 = vmatpush1.bf16.msra.mxu0 %v9045_v12  ;;  %6432 = vmatpush3.bf16.msra.mxu1 %v9046_v37  ;;  %v2689_v49 = vadd.f32 1.0, %v6960_v44  ;;  %v9190_v44 = vld [vmem:[#allocation18_spill] sm:$0xff] }
 0x6be   :  { %6961 = vrcp.f32 %v2688_v53  ;;  %6403 = vmatprep.subr.bf16.mxu0 %v9047_v19  ;;  %6433 = vmatprep.subr.bf16.mxu1 %v9025_v52  ;;  %v9189_v53 = vld [vmem:[#allocation15_spill] sm:$0xff] }
 0x6bf   :  { %2907 = vmatprep.mubr.f32.mxu0 %v9038_v25  ;;  %5189 = vmatprep.mubr.msk.f32.mxu1 %vm7024_vm0, %v9038_v25  ;;  %6963 = vrcp.f32 %v2689_v49  ;;  %v9191_v49 = vld [vmem:[#allocation5_spill] sm:$0xff] }
 0x6c1   :  { %6405 = vmatpush1.bf16.msra.mxu0 %v9048_v11  ;;  %6435 = vmatpush3.bf16.msra.mxu1 %v9049_v32 }
 0x6c2   :  { %6407 = vmatprep.subr.bf16.mxu0 %v9079_v6  ;;  %6436 = vmatprep.subr.bf16.mxu1 %v9025_v52 }
 0x6c5   :  { %6409 = vmatpush1.bf16.msra.mxu0 %v9080_v50  ;;  %6438 = vmatpush3.bf16.msra.mxu1 %v9081_v40 }
 0x6c6   :  { %6411 = vmatprep.subr.bf16.mxu0 %v9082_v5  ;;  %6439 = vmatprep.subr.bf16.mxu1 %v9025_v52 }
 0x6c8   :  { %v6962_v46 = vpop.eup %6961 }
 0x6c9   :  { %v2695_v61 = vmul.f32 %v6962_v46, %v2694_v39  ;;  %6413 = vmatpush1.bf16.msra.mxu0 %v9084_v55  ;;  %6441 = vmatpush3.bf16.msra.mxu1 %v9085_v56  ;;  %v6964_v58 = vpop.eup %6963  ;;  %v9192_v39 = vld [vmem:[#allocation6_spill] sm:$0xff]  ;;  %v9193_v46 = vld [vmem:[#allocation19_spill] sm:$0xff] }
 0x6ca   :  { %6415 = vmatprep.subr.bf16.mxu0 %v9114_v45  ;;  %6442 = vmatprep.subr.bf16.mxu1 %v9025_v52  ;;  %v2698_v43 = vsub.f32 1.0, %v6964_v58  ;;  %v2700_v42 = vmul.f32 %v6964_v58, %v8325_v17  ;;  %v9186_v17 = vld [vmem:[#allocation12_spill] sm:$0xff]  ;;  %v9197_v58 = vld [vmem:[#allocation11_spill] sm:$0xff] }
 0x6cb   :  { %v2696_v54 = vadd.f32 %v2695_v61, %v2538_v57  ;;  %v9194_v57 = vld [vmem:[#allocation7_spill] sm:$0xff]  ;;  %v9195_v61 = vld [vmem:[#allocation9_spill] sm:$0xff] }
 0x6cd   :  { %6965 = vtanh.f32 %v2696_v54  ;;  %6417 = vmatpush1.bf16.msra.mxu0 %v9087_v24  ;;  %6444 = vmatpush3.bf16.msra.mxu1 %v9088_v16  ;;  %v9196_v54 = vld [vmem:[#allocation20_spill] sm:$0xff] }
 0x6ce   :  { %6419 = vmatprep.subr.bf16.mxu0 %v9089_v36  ;;  %6445 = vmatprep.subr.bf16.mxu1 %v9025_v52 }
 0x6d1   :  { %6421 = vmatpush1.bf16.msra.mxu0 %v9115_v30  ;;  %6447 = vmatpush3.bf16.msra.mxu1 %v9091_v0 }
 0x6d2   :  { %6423 = vmatprep.subr.bf16.mxu0 %v9092_v1  ;;  %6448 = vmatprep.subr.bf16.mxu1 %v9025_v52 }
 0x6d5   :  { %6425 = vmatpush1.bf16.msra.mxu0 %v9116_v63  ;;  %6450 = vmatpush3.bf16.msra.mxu1 %v9064_v3 }
 0x6d6   :  { %6427 = vmatprep.subr.bf16.mxu0 %v9065_v22  ;;  %6451 = vmatprep.subr.bf16.mxu1 %v9025_v52 }
 0x6d7   :  { %v6966_v48 = vpop.eup %6965 }
 0x6d8   :  { %v2699_v35 = vmul.f32 %v6966_v48, %v2698_v43  ;;  %v9198_v43 = vld [vmem:[#allocation13_spill] sm:$0xff] }
 0x6d9   :  { %6429 = vmatpush1.bf16.msra.mxu0 %v9066_v59  ;;  %6453 = vmatpush3.bf16.msra.mxu1 %v9067_v60  ;;  %v9199_v48 = vld [vmem:[#allocation21_spill] sm:$0xff] }
 0x6da   :  { %v8474_v62 = vadd.f32 %v2700_v42, %v2699_v35  ;;  %6455 = vmatprep.subr.bf16.mxu0 %v9068_v10  ;;  %6486 = vmatprep.subr.bf16.mxu1 %v9025_v52  ;;  %v9200_v35 = vld [vmem:[#allocation22_spill] sm:$0xff]  ;;  %v9201_v42 = vld [vmem:[#allocation23_spill] sm:$0xff] }
 0x6dc   :  { %2908 = vmatmul.mubr.f32.vlgmr.msra.gmra.mrb[20].mxu0 %v8474_v62  ;;  %5190 = vmatmul.mubr.f32.vlgmr.msra.gmra.mrb[36].mxu1 %v8474_v62 }
 0x6dd   :  { %6457 = vmatpush1.bf16.msra.mxu0 %v7097_v8  ;;  %6488 = vmatpush3.bf16.msra.mxu1 %v7281_v7 }
 0x6de   :  { %6459 = vmatprep.subr.bf16.mxu0 %v7099_v9  ;;  %6489 = vmatprep.subr.bf16.mxu1 %v9025_v52 }
 0x6df   :  { %3074 = vmatprep.mubr.f32.mxu0 %v9038_v25  ;;  %5224 = vmatprep.mubr.msk.f32.mxu1 %vm7024_vm0, %v9038_v25 }
 0x6e1   :  { %6461 = vmatpush1.bf16.msra.mxu0 %v7115_v14  ;;  %6491 = vmatpush3.bf16.msra.mxu1 %v7292_v13 }
 0x6e2   :  { %6463 = vmatprep.subr.bf16.mxu0 %v7118_v15  ;;  %6492 = vmatprep.subr.bf16.mxu1 %v9025_v52 }
 0x6e5   :  { %6465 = vmatpush1.bf16.msra.mxu0 %v7133_v20  ;;  %6494 = vmatpush3.bf16.msra.mxu1 %v7304_v18 }
 0x6e6   :  { %6467 = vmatprep.subr.bf16.mxu0 %v7136_v21  ;;  %6495 = vmatprep.subr.bf16.mxu1 %v9025_v52 }
 0x6e9   :  { %6469 = vmatpush1.bf16.msra.mxu0 %v7151_v26  ;;  %6497 = vmatpush3.bf16.msra.mxu1 %v7314_v23 }
 0x6ea   :  { %6471 = vmatprep.subr.bf16.mxu0 %v7154_v27  ;;  %6498 = vmatprep.subr.bf16.mxu1 %v9025_v52 }
 0x6ed   :  { %6473 = vmatpush1.bf16.msra.mxu0 %v7175_v34  ;;  %6500 = vmatpush3.bf16.msra.mxu1 %v7324_v28 }
 0x6ee   :  { %6475 = vmatprep.subr.bf16.mxu0 %v7187_v38  ;;  %6501 = vmatprep.subr.bf16.mxu1 %v9025_v52 }
 0x6f1   :  { %6477 = vmatpush1.bf16.msra.mxu0 %v9149_v47  ;;  %6503 = vmatpush3.bf16.msra.mxu1 %v9150_v41  ;;  %v9219_v41 = vld [vmem:[#allocation58_spill] sm:$0xff] }
 0x6f2   :  { %6479 = vmatprep.subr.bf16.mxu0 %v9151_v4  ;;  %6504 = vmatprep.subr.bf16.mxu1 %v9025_v52 }
 0x6f5   :  { %6481 = vmatpush1.bf16.msra.mxu0 %v9186_v17  ;;  %6506 = vmatpush3.bf16.msra.mxu1 %v9187_v51  ;;  %v9218_v17 = vld [vmem:[#allocation57_spill] sm:$0xff] }
 0x6f6   :  { %6483 = vmatprep.subr.bf16.mxu0 %v9188_v29  ;;  %6507 = vmatprep.subr.bf16.mxu1 %v9025_v52 }
 0x6f9   :  { %6485 = vmatpush1.bf16.msra.mxu0 %v9189_v53  ;;  %6509 = vmatpush3.bf16.msra.mxu1 %v9190_v44 }
 0x6fa   :  { %6511 = vmatprep.subr.bf16.mxu0 %v9191_v49  ;;  %6542 = vmatprep.subr.bf16.mxu1 %v9025_v52 }
 0x6fc   :  { %3075 = vmatmul.mubr.f32.vlgmr.msra.gmra.mrb[22].mxu0 %v8474_v62  ;;  %5225 = vmatmul.mubr.f32.vlgmr.msra.gmra.mrb[38].mxu1 %v8474_v62 }
 0x6fd   :  { %6513 = vmatpush1.bf16.msra.mxu0 %v9192_v39  ;;  %6544 = vmatpush3.bf16.msra.mxu1 %v9193_v46  ;;  %v9216_v39 = vld [vmem:[#allocation41_spill] sm:$0xff] }
 0x6fe   :  { %6515 = vmatprep.subr.bf16.mxu0 %v9194_v57  ;;  %6545 = vmatprep.subr.bf16.mxu1 %v9025_v52  ;;  %v9203_v57 = vld [vmem:[#allocation25_spill] sm:$0xff] }
 0x6ff   :  { %3237 = vmatprep.mubr.f32.mxu0 %v9038_v25  ;;  %5259 = vmatprep.mubr.msk.f32.mxu1 %vm7024_vm0, %v9038_v25 }
 0x701   :  { %6517 = vmatpush1.bf16.msra.mxu0 %v9195_v61  ;;  %6547 = vmatpush3.bf16.msra.mxu1 %v9196_v54  ;;  %v9204_v54 = vld [vmem:[#allocation26_spill] sm:$0xff]  ;;  %v9206_v61 = vld [vmem:[#allocation28_spill] sm:$0xff] }
 0x702   :  { %6519 = vmatprep.subr.bf16.mxu0 %v9197_v58  ;;  %6548 = vmatprep.subr.bf16.mxu1 %v9025_v52  ;;  %v9205_v58 = vld [vmem:[#allocation27_spill] sm:$0xff] }
 0x705   :  { %6521 = vmatpush1.bf16.msra.mxu0 %v9198_v43  ;;  %6550 = vmatpush3.bf16.msra.mxu1 %v9199_v48  ;;  %v9207_v48 = vld [vmem:[#allocation29_spill] sm:$0xff]  ;;  %v9209_v43 = vld [vmem:[#allocation31_spill] sm:$0xff] }
 0x706   :  { %6523 = vmatprep.subr.bf16.mxu0 %v9200_v35  ;;  %6551 = vmatprep.subr.bf16.mxu1 %v9025_v52  ;;  %v9208_v35 = vld [vmem:[#allocation30_spill] sm:$0xff] }
 0x709   :  { %6525 = vmatpush1.bf16.msra.mxu0 %v9201_v42  ;;  %6553 = vmatpush3.bf16.msra.mxu1 %v9202_v31  ;;  %v9210_v31 = vld [vmem:[#allocation32_spill] sm:$0xff]  ;;  %v9212_v42 = vld [vmem:[#allocation34_spill] sm:$0xff] }
 0x70a   :  { %6527 = vmatprep.subr.bf16.mxu0 %v9203_v57  ;;  %6554 = vmatprep.subr.bf16.mxu1 %v9025_v52  ;;  %v9211_v57 = vld [vmem:[#allocation33_spill] sm:$0xff] }
 0x70d   :  { %6529 = vmatpush1.bf16.msra.mxu0 %v9204_v54  ;;  %6556 = vmatpush3.bf16.msra.mxu1 %v9205_v58  ;;  %v9213_v58 = vld [vmem:[#allocation35_spill] sm:$0xff]  ;;  %v9215_v54 = vld [vmem:[#allocation37_spill] sm:$0xff] }
 0x70e   :  { %6531 = vmatprep.subr.bf16.mxu0 %v9206_v61  ;;  %6557 = vmatprep.subr.bf16.mxu1 %v9025_v52  ;;  %v9214_v61 = vld [vmem:[#allocation36_spill] sm:$0xff] }
 0x711   :  { %6533 = vmatpush1.bf16.msra.mxu0 %v9207_v48  ;;  %6559 = vmatpush3.bf16.msra.mxu1 %v9208_v35 }
 0x712   :  { %6535 = vmatprep.subr.bf16.mxu0 %v9209_v43  ;;  %6560 = vmatprep.subr.bf16.mxu1 %v9025_v52 }
 0x715   :  { %6537 = vmatpush1.bf16.msra.mxu0 %v9210_v31  ;;  %6562 = vmatpush3.bf16.msra.mxu1 %v9211_v57 }
 0x716   :  { %6539 = vmatprep.subr.bf16.mxu0 %v9212_v42  ;;  %6563 = vmatprep.subr.bf16.mxu1 %v9025_v52  ;;  %v9217_v42 = vld [vmem:[#allocation42_spill] sm:$0xff] }
 0x719   :  { %6541 = vmatpush1.bf16.msra.mxu0 %v9213_v58  ;;  %6565 = vmatpush3.bf16.msra.mxu1 %v9214_v61 }
 0x71a   :  { %6567 = vmatprep.subr.bf16.mxu0 %v9215_v54  ;;  %6598 = vmatprep.subr.bf16.mxu1 %v9025_v52 }
 0x78f   :  { %v2839_v35 = vpop.f32.mrb[34].mxu1 }
 0x790   :  { %v5156_v43 = vpop.f32.mrb[35].mxu1  ;;  %v2998_v4 = vadd.f32 %v9218_v17, %v2839_v35 }
 0x7af   :  { %v2909_v48 = vpop.f32.mrb[20].mxu0  ;;  %v2980_v46 = vpop.f32.mrb[36].mxu1 }
 0x7b0   :  { %v2910_v31 = vadd.f32 %v9216_v39, %v2909_v48  ;;  %v2911_v49 = vpop.f32.mrb[21].mxu0  ;;  %v5191_v57 = vpop.f32.mrb[37].mxu1  ;;  %v2981_v47 = vadd.f32 %v9219_v41, %v2980_v46 }
 0x7b1   :  { %v2912_v53 = vadd.f32 %v9217_v42, %v2911_v49  ;;  %v3008_v57 = vld [vmem:[%s8826_s0 + $0x98] sm:$0xff] }
 0x7b2   :  { %v4119_v44 = vmul.f32 -1.442695, %v2910_v31  ;;  %v3007_v31 = vld [vmem:[%s8826_s0 + $0x90] sm:$0xff] }
 0x7b3   :  { %v4120_v29 = vmul.f32 -1.442695, %v2912_v53 }
 0x7b4   :  { %6967 = vpow2.f32 %v4119_v44 }
 0x7b5   :  { %6969 = vpow2.f32 %v4120_v29 }
 0x7be   :  { %v6968_v58 = vpop.eup %6967 }
 0x7bf   :  { %v2992_v61 = vadd.f32 1.0, %v6968_v58  ;;  %v6970_v54 = vpop.eup %6969 }
 0x7c0   :  { %v2993_v51 = vadd.f32 1.0, %v6970_v54 }
 0x7c1   :  { %6971 = vrcp.f32 %v2992_v61 }
 0x7c2   :  { %6973 = vrcp.f32 %v2993_v51 }
 0x7cb   :  { %v6972_v43 = vpop.eup %6971 }
 0x7cc   :  { %v2999_v38 = vmul.f32 %v6972_v43, %v2998_v4  ;;  %v6974_v4 = vpop.eup %6973 }
 0x7cd   :  { %v3002_v46 = vsub.f32 1.0, %v6974_v4 }
 0x7ce   :  { %v3000_v49 = vadd.f32 %v2999_v38, %v2981_v47  ;;  %v3004_v38 = vmul.f32 %v6974_v4, %v8432_v2 }
 0x7cf   :  { %v3076_v44 = vpop.f32.mrb[22].mxu0  ;;  %v3147_v53 = vpop.f32.mrb[38].mxu1 }
 0x7d0   :  { %6975 = vtanh.f32 %v3000_v49  ;;  %v3151_v29 = vadd.f32 %v3076_v44, %v3007_v31  ;;  %v3078_v61 = vpop.f32.mrb[23].mxu0  ;;  %v5226_v54 = vpop.f32.mrb[39].mxu1 }
 0x7d1   :  { %v3152_v48 = vadd.f32 %v3078_v61, %v3008_v57  ;;  %v3165_v57 = vadd.f32 %v8298_v33, %v3147_v53  ;;  %v3009_v54 = vld [vmem:[%s8826_s0 + $0xa0] sm:$0xff] }
 0x7d2   :  { %v4121_v58 = vmul.f32 -1.442695, %v3151_v29 }
 0x7d3   :  { %v4122_v51 = vmul.f32 -1.442695, %v3152_v48 }
 0x7d4   :  { %6977 = vpow2.f32 %v4121_v58 }
 0x7d5   :  { %6979 = vpow2.f32 %v4122_v51 }
 0x7da   :  { %v6976_v35 = vpop.eup %6975 }
 0x7db   :  { %v3003_v43 = vmul.f32 %v6976_v35, %v3002_v46 }
 0x7dd   :  { %v8563_v47 = vadd.f32 %v3004_v38, %v3003_v43  ;;  %v9236_v38 = vld [vmem:[#allocation13_spill] sm:$0xff] }
 0x7de   :  { %v6978_v31 = vpop.eup %6977 }
 0x7df   :  { %v3159_v49 = vadd.f32 1.0, %v6978_v31  ;;  %3238 = vmatmul.mubr.f32.vlgmr.msra.gmra.mrb[24].mxu0 %v8563_v47  ;;  %5260 = vmatmul.mubr.f32.vlgmr.msra.gmra.mrb[40].mxu1 %v8563_v47  ;;  %v6980_v44 = vpop.eup %6979  ;;  %v9237_v31 = vld [vmem:[#allocation21_spill] sm:$0xff] }
 0x7e0   :  { %6569 = vmatpush1.bf16.msra.mxu0 %v9045_v12  ;;  %6600 = vmatpush3.bf16.msra.mxu1 %v9046_v37  ;;  %v3160_v29 = vadd.f32 1.0, %v6980_v44  ;;  %v9239_v44 = vld [vmem:[#allocation23_spill] sm:$0xff] }
 0x7e1   :  { %6981 = vrcp.f32 %v3159_v49  ;;  %6571 = vmatprep.subr.bf16.mxu0 %v9047_v19  ;;  %6601 = vmatprep.subr.bf16.mxu1 %v9025_v52  ;;  %v9238_v49 = vld [vmem:[#allocation22_spill] sm:$0xff] }
 0x7e2   :  { %3378 = vmatprep.mubr.f32.mxu0 %v9038_v25  ;;  %5294 = vmatprep.mubr.msk.f32.mxu1 %vm7024_vm0, %v9038_v25  ;;  %6983 = vrcp.f32 %v3160_v29  ;;  %v9240_v29 = vld [vmem:[#allocation24_spill] sm:$0xff] }
 0x7e4   :  { %6573 = vmatpush1.bf16.msra.mxu0 %v9048_v11  ;;  %6603 = vmatpush3.bf16.msra.mxu1 %v9049_v32 }
 0x7e5   :  { %6575 = vmatprep.subr.bf16.mxu0 %v9079_v6  ;;  %6604 = vmatprep.subr.bf16.mxu1 %v9025_v52 }
 0x7e8   :  { %6577 = vmatpush1.bf16.msra.mxu0 %v9080_v50  ;;  %6606 = vmatpush3.bf16.msra.mxu1 %v9081_v40 }
 0x7e9   :  { %6579 = vmatprep.subr.bf16.mxu0 %v9082_v5  ;;  %6607 = vmatprep.subr.bf16.mxu1 %v9025_v52 }
 0x7eb   :  { %v6982_v61 = vpop.eup %6981 }
 0x7ec   :  { %v3166_v58 = vmul.f32 %v6982_v61, %v3165_v57  ;;  %6581 = vmatpush1.bf16.msra.mxu0 %v9084_v55  ;;  %6609 = vmatpush3.bf16.msra.mxu1 %v9085_v56  ;;  %v6984_v53 = vpop.eup %6983  ;;  %v9241_v57 = vld [vmem:[#allocation25_spill] sm:$0xff]  ;;  %v9242_v61 = vld [vmem:[#allocation26_spill] sm:$0xff] }
 0x7ed   :  { %6583 = vmatprep.subr.bf16.mxu0 %v9114_v45  ;;  %6610 = vmatprep.subr.bf16.mxu1 %v9025_v52  ;;  %v3169_v4 = vsub.f32 1.0, %v6984_v53  ;;  %v3171_v35 = vmul.f32 %v6984_v53, %v8474_v62  ;;  %v9235_v62 = vld [vmem:[#allocation11_spill] sm:$0xff]  ;;  %v9246_v53 = vld [vmem:[#allocation30_spill] sm:$0xff] }
 0x7ee   :  { %v3167_v48 = vadd.f32 %v3166_v58, %v3009_v54  ;;  %v9243_v54 = vld [vmem:[#allocation27_spill] sm:$0xff]  ;;  %v9244_v58 = vld [vmem:[#allocation28_spill] sm:$0xff] }
 0x7f0   :  { %6985 = vtanh.f32 %v3167_v48  ;;  %6585 = vmatpush1.bf16.msra.mxu0 %v9087_v24  ;;  %6612 = vmatpush3.bf16.msra.mxu1 %v9088_v16  ;;  %v9245_v48 = vld [vmem:[#allocation29_spill] sm:$0xff] }
 0x7f1   :  { %6587 = vmatprep.subr.bf16.mxu0 %v9089_v36  ;;  %6613 = vmatprep.subr.bf16.mxu1 %v9025_v52 }
 0x7f4   :  { %6589 = vmatpush1.bf16.msra.mxu0 %v9115_v30  ;;  %6615 = vmatpush3.bf16.msra.mxu1 %v9091_v0 }
 0x7f5   :  { %6591 = vmatprep.subr.bf16.mxu0 %v9092_v1  ;;  %6616 = vmatprep.subr.bf16.mxu1 %v9025_v52 }
 0x7f8   :  { %6593 = vmatpush1.bf16.msra.mxu0 %v9116_v63  ;;  %6618 = vmatpush3.bf16.msra.mxu1 %v9064_v3 }
 0x7f9   :  { %6595 = vmatprep.subr.bf16.mxu0 %v9065_v22  ;;  %6619 = vmatprep.subr.bf16.mxu1 %v9025_v52 }
 0x7fa   :  { %v6986_v51 = vpop.eup %6985 }
 0x7fb   :  { %v3170_v46 = vmul.f32 %v6986_v51, %v3169_v4  ;;  %v9247_v4 = vld [vmem:[#allocation31_spill] sm:$0xff]  ;;  %v9248_v51 = vld [vmem:[#allocation32_spill] sm:$0xff] }
 0x7fc   :  { %6597 = vmatpush1.bf16.msra.mxu0 %v9066_v59  ;;  %6621 = vmatpush3.bf16.msra.mxu1 %v9067_v60 }
 0x7fd   :  { %6623 = vmatprep.subr.bf16.mxu0 %v9068_v10  ;;  %6654 = vmatprep.subr.bf16.mxu1 %v9025_v52  ;;  %v8607_v43 = vadd.f32 %v3171_v35, %v3170_v46  ;;  %v9234_v10 = vld [vmem:[#allocation20_spill] sm:$0xff]  ;;  %v9249_v46 = vld [vmem:[#allocation33_spill] sm:$0xff]  ;;  %v9250_v35 = vld [vmem:[#allocation34_spill] sm:$0xff] }
 0x7ff   :  { %3379 = vmatmul.mubr.f32.vlgmr.msra.gmra.mrb[24].mxu0 %v8607_v43  ;;  %5295 = vmatmul.mubr.f32.vlgmr.msra.gmra.mrb[42].mxu1 %v8607_v43 }
 0x800   :  { %6625 = vmatpush1.bf16.msra.mxu0 %v7097_v8  ;;  %6656 = vmatpush3.bf16.msra.mxu1 %v7281_v7  ;;  %v9220_v8 = vld [vmem:[#allocation4_spill] sm:$0xff]  ;;  %v9229_v7 = vld [vmem:[#allocation5_spill] sm:$0xff] }
 0x801   :  { %6627 = vmatprep.subr.bf16.mxu0 %v7099_v9  ;;  %6657 = vmatprep.subr.bf16.mxu1 %v9025_v52  ;;  %v9221_v9 = vld [vmem:[#allocation8_spill] sm:$0xff] }
 0x802   :  { %3545 = vmatprep.mubr.f32.mxu0 %v9038_v25  ;;  %5329 = vmatprep.mubr.msk.f32.mxu1 %vm7024_vm0, %v9038_v25 }
 0x804   :  { %6629 = vmatpush1.bf16.msra.mxu0 %v7115_v14  ;;  %6659 = vmatpush3.bf16.msra.mxu1 %v7292_v13  ;;  %v9222_v14 = vld [vmem:[#allocation16_spill] sm:$0xff]  ;;  %v9230_v13 = vld [vmem:[#allocation6_spill] sm:$0xff] }
 0x805   :  { %6631 = vmatprep.subr.bf16.mxu0 %v7118_v15  ;;  %6660 = vmatprep.subr.bf16.mxu1 %v9025_v52  ;;  %v9223_v15 = vld [vmem:[#allocation10_spill] sm:$0xff] }
 0x808   :  { %6633 = vmatpush1.bf16.msra.mxu0 %v7133_v20  ;;  %6662 = vmatpush3.bf16.msra.mxu1 %v7304_v18  ;;  %v9224_v20 = vld [vmem:[#allocation12_spill] sm:$0xff]  ;;  %v9231_v18 = vld [vmem:[#allocation19_spill] sm:$0xff] }
 0x809   :  { %6635 = vmatprep.subr.bf16.mxu0 %v7136_v21  ;;  %6663 = vmatprep.subr.bf16.mxu1 %v9025_v52  ;;  %v9225_v21 = vld [vmem:[#allocation17_spill] sm:$0xff] }
 0x80c   :  { %6637 = vmatpush1.bf16.msra.mxu0 %v7151_v26  ;;  %6665 = vmatpush3.bf16.msra.mxu1 %v7314_v23  ;;  %v9226_v26 = vld [vmem:[#allocation14_spill] sm:$0xff]  ;;  %v9232_v23 = vld [vmem:[#allocation7_spill] sm:$0xff] }
 0x80d   :  { %6639 = vmatprep.subr.bf16.mxu0 %v7154_v27  ;;  %6666 = vmatprep.subr.bf16.mxu1 %v9025_v52  ;;  %v9227_v27 = vld [vmem:[#allocation15_spill] sm:$0xff] }
 0x810   :  { %6641 = vmatpush1.bf16.msra.mxu0 %v7175_v34  ;;  %6668 = vmatpush3.bf16.msra.mxu1 %v7324_v28  ;;  %v9228_v34 = vld [vmem:[#allocation18_spill] sm:$0xff]  ;;  %v9233_v28 = vld [vmem:[#allocation9_spill] sm:$0xff] }
 0x811   :  { %6643 = vmatprep.subr.bf16.mxu0 %v9220_v8  ;;  %6669 = vmatprep.subr.bf16.mxu1 %v9025_v52  ;;  %v9251_v8 = vld [vmem:[#allocation35_spill] sm:$0xff] }
 0x814   :  { %6645 = vmatpush1.bf16.msra.mxu0 %v9221_v9  ;;  %6671 = vmatpush3.bf16.msra.mxu1 %v9222_v14  ;;  %v9252_v9 = vld [vmem:[#allocation36_spill] sm:$0xff]  ;;  %v9253_v14 = vld [vmem:[#allocation37_spill] sm:$0xff] }
 0x815   :  { %6647 = vmatprep.subr.bf16.mxu0 %v9223_v15  ;;  %6672 = vmatprep.subr.bf16.mxu1 %v9025_v52 }
 0x818   :  { %6649 = vmatpush1.bf16.msra.mxu0 %v9224_v20  ;;  %6674 = vmatpush3.bf16.msra.mxu1 %v9225_v21 }
 0x819   :  { %6651 = vmatprep.subr.bf16.mxu0 %v9226_v26  ;;  %6675 = vmatprep.subr.bf16.mxu1 %v9025_v52 }
 0x81c   :  { %6653 = vmatpush1.bf16.msra.mxu0 %v9227_v27  ;;  %6677 = vmatpush3.bf16.msra.mxu1 %v9228_v34 }
 0x81d   :  { %6679 = vmatprep.subr.bf16.mxu0 %v9229_v7  ;;  %6710 = vmatprep.subr.bf16.mxu1 %v9025_v52 }
 0x81f   :  { %3546 = vmatmul.mubr.f32.vlgmr.msra.gmra.mrb[26].mxu0 %v8607_v43  ;;  %5330 = vmatmul.mubr.f32.vlgmr.msra.gmra.mrb[44].mxu1 %v8607_v43 }
 0x820   :  { %6681 = vmatpush1.bf16.msra.mxu0 %v9230_v13  ;;  %6712 = vmatpush3.bf16.msra.mxu1 %v9231_v18 }
 0x821   :  { %6683 = vmatprep.subr.bf16.mxu0 %v9232_v23  ;;  %6713 = vmatprep.subr.bf16.mxu1 %v9025_v52 }
 0x822   :  { %3708 = vmatprep.mubr.f32.mxu0 %v9038_v25  ;;  %5364 = vmatprep.mubr.msk.f32.mxu1 %vm7024_vm0, %v9038_v25 }
 0x824   :  { %6685 = vmatpush1.bf16.msra.mxu0 %v9233_v28  ;;  %6715 = vmatpush3.bf16.msra.mxu1 %v9234_v10 }
 0x825   :  { %6687 = vmatprep.subr.bf16.mxu0 %v9235_v62  ;;  %6716 = vmatprep.subr.bf16.mxu1 %v9025_v52 }
 0x828   :  { %6689 = vmatpush1.bf16.msra.mxu0 %v9236_v38  ;;  %6718 = vmatpush3.bf16.msra.mxu1 %v9237_v31 }
 0x829   :  { %6691 = vmatprep.subr.bf16.mxu0 %v9238_v49  ;;  %6719 = vmatprep.subr.bf16.mxu1 %v9025_v52 }
 0x82c   :  { %6693 = vmatpush1.bf16.msra.mxu0 %v9239_v44  ;;  %6721 = vmatpush3.bf16.msra.mxu1 %v9240_v29 }
 0x82d   :  { %6695 = vmatprep.subr.bf16.mxu0 %v9241_v57  ;;  %6722 = vmatprep.subr.bf16.mxu1 %v9025_v52  ;;  %v3478_v57 = vld [vmem:[%s8826_s0 + $0xa8] sm:$0xff] }
 0x830   :  { %6697 = vmatpush1.bf16.msra.mxu0 %v9242_v61  ;;  %6724 = vmatpush3.bf16.msra.mxu1 %v9243_v54 }
 0x831   :  { %6699 = vmatprep.subr.bf16.mxu0 %v9244_v58  ;;  %6725 = vmatprep.subr.bf16.mxu1 %v9025_v52 }
 0x834   :  { %6701 = vmatpush1.bf16.msra.mxu0 %v9245_v48  ;;  %6727 = vmatpush3.bf16.msra.mxu1 %v9246_v53  ;;  %v3479_v53 = vld [vmem:[%s8826_s0 + $0xb0] sm:$0xff] }
 0x835   :  { %6703 = vmatprep.subr.bf16.mxu0 %v9247_v4  ;;  %6728 = vmatprep.subr.bf16.mxu1 %v9025_v52 }
 0x838   :  { %6705 = vmatpush1.bf16.msra.mxu0 %v9248_v51  ;;  %6730 = vmatpush3.bf16.msra.mxu1 %v9249_v46 }
 0x839   :  { %6707 = vmatprep.subr.bf16.mxu0 %v9250_v35  ;;  %6731 = vmatprep.subr.bf16.mxu1 %v9025_v52 }
 0x83c   :  { %6709 = vmatpush1.bf16.msra.mxu0 %v9251_v8  ;;  %6733 = vmatpush3.bf16.msra.mxu1 %v9252_v9 }
 0x83d   :  { %6735 = vmatprep.subr.bf16.mxu0 %v9253_v14  ;;  %6766 = vmatprep.subr.bf16.mxu1 %v9025_v52 }
 0x8b2   :  { %v3310_v15 = vpop.f32.mrb[40].mxu1 }
 0x8b3   :  { %v5261_v20 = vpop.f32.mrb[41].mxu1  ;;  %v3469_v31 = vadd.f32 %v9218_v17, %v3310_v15 }
 0x8d2   :  { %v3380_v21 = vpop.f32.mrb[24].mxu0  ;;  %v3451_v26 = vpop.f32.mrb[42].mxu1 }
 0x8d3   :  { %v3381_v27 = vadd.f32 %v9216_v39, %v3380_v21  ;;  %v3382_v34 = vpop.f32.mrb[25].mxu0  ;;  %v5296_v7 = vpop.f32.mrb[43].mxu1  ;;  %v3452_v44 = vadd.f32 %v9219_v41, %v3451_v26 }
 0x8d4   :  { %v3383_v18 = vadd.f32 %v9217_v42, %v3382_v34 }
 0x8d5   :  { %v4123_v13 = vmul.f32 -1.442695, %v3381_v27 }
 0x8d6   :  { %v4124_v23 = vmul.f32 -1.442695, %v3383_v18  ;;  %v3967_v18 = vld [vmem:[%s8830_s7 + $0x50] sm:$0xff] }
 0x8d7   :  { %6987 = vpow2.f32 %v4123_v13 }
 0x8d8   :  { %6989 = vpow2.f32 %v4124_v23  ;;  %v3968_v23 = vld [vmem:[%s8830_s7 + $0x58] sm:$0xff] }
 0x8e1   :  { %v6988_v28 = vpop.eup %6987 }
 0x8e2   :  { %v3463_v10 = vadd.f32 1.0, %v6988_v28  ;;  %v6990_v62 = vpop.eup %6989  ;;  %v6810_v28 = vpack.c.bf16 %v3968_v23, %v3967_v18 }
 0x8e3   :  { %v3464_v38 = vadd.f32 1.0, %v6990_v62  ;;  %v3970_v62 = vld [vmem:[%s8830_s7 + $0x68] sm:$0xff] }
 0x8e4   :  { %6991 = vrcp.f32 %v3463_v10  ;;  %v3969_v10 = vld [vmem:[%s8830_s7 + $0x60] sm:$0xff] }
 0x8e5   :  { %6993 = vrcp.f32 %v3464_v38  ;;  %v6814_v38 = vpack.c.bf16 %v3970_v62, %v3969_v10 }
 0x8ee   :  { %v6992_v49 = vpop.eup %6991 }
 0x8ef   :  { %v3470_v29 = vmul.f32 %v6992_v49, %v3469_v31  ;;  %v6994_v8 = vpop.eup %6993  ;;  %v3971_v31 = vld [vmem:[%s8830_s7 + $0x70] sm:$0xff]  ;;  %v3972_v49 = vld [vmem:[%s8830_s7 + $0x78] sm:$0xff] }
 0x8f0   :  { %v3473_v14 = vsub.f32 1.0, %v6994_v8  ;;  %v3475_v21 = vmul.f32 %v6994_v8, %v8563_v47 }
 0x8f1   :  { %v3471_v61 = vadd.f32 %v3470_v29, %v3452_v44  ;;  %v6818_v44 = vpack.c.bf16 %v3972_v49, %v3971_v31  ;;  %v9255_v29 = vld [vmem:[#allocation38_spill] sm:$0xff] }
 0x8f2   :  { %v3547_v54 = vpop.f32.mrb[26].mxu0  ;;  %v3618_v58 = vpop.f32.mrb[44].mxu1 }
 0x8f3   :  { %6995 = vtanh.f32 %v3471_v61  ;;  %v3622_v48 = vadd.f32 %v3547_v54, %v3478_v57  ;;  %v3549_v4 = vpop.f32.mrb[27].mxu0  ;;  %v5331_v51 = vpop.f32.mrb[45].mxu1  ;;  %v9256_v57 = vld [vmem:[#allocation39_spill] sm:$0xff]  ;;  %v9257_v61 = vld [vmem:[#allocation40_spill] sm:$0xff] }
 0x8f4   :  { %v3623_v35 = vadd.f32 %v3549_v4, %v3479_v53 }
 0x8f5   :  { %v4125_v46 = vmul.f32 -1.442695, %v3622_v48 }
 0x8f6   :  { %v4126_v9 = vmul.f32 -1.442695, %v3623_v35 }
 0x8f7   :  { %6997 = vpow2.f32 %v4125_v46 }
 0x8f8   :  { %6999 = vpow2.f32 %v4126_v9 }
 0x8fd   :  { %v6996_v15 = vpop.eup %6995 }
 0x8fe   :  { %v3474_v20 = vmul.f32 %v6996_v15, %v3473_v14 }
 0x900   :  { %v8694_v26 = vadd.f32 %v3475_v21, %v3474_v20 }
 0x901   :  { %v6998_v27 = vpop.eup %6997 }
 0x902   :  { %v3630_v34 = vadd.f32 1.0, %v6998_v27  ;;  %3709 = vmatmul.mubr.f32.vlgmr.msra.gmra.mrb[28].mxu0 %v8694_v26  ;;  %5365 = vmatmul.mubr.f32.vlgmr.msra.gmra.mrb[46].mxu1 %v8694_v26  ;;  %v7000_v7 = vpop.eup %6999 }
 0x903   :  { %6737 = vmatpush1.bf16.msra.mxu0 %v9045_v12  ;;  %6768 = vmatpush3.bf16.msra.mxu1 %v9046_v37  ;;  %v3631_v12 = vadd.f32 1.0, %v7000_v7 }
 0x904   :  { %7001 = vrcp.f32 %v3630_v34  ;;  %6739 = vmatprep.subr.bf16.mxu0 %v9047_v19  ;;  %6769 = vmatprep.subr.bf16.mxu1 %v9025_v52  ;;  %v3480_v19 = vld [vmem:[%s8826_s0 + $0xb8] sm:$0xff] }
 0x905   :  { %3849 = vmatprep.mubr.f32.mxu0 %v9038_v25  ;;  %5399 = vmatprep.mubr.msk.f32.mxu1 %vm7024_vm0, %v9038_v25  ;;  %v3636_v25 = vadd.f32 %v8298_v33, %v3618_v58  ;;  %7003 = vrcp.f32 %v3631_v12  ;;  %v3965_v33 = vld [vmem:[%s8830_s7 + $0x40] sm:$0xff] }
 0x907   :  { %6741 = vmatpush1.bf16.msra.mxu0 %v9048_v11  ;;  %6771 = vmatpush3.bf16.msra.mxu1 %v9049_v32 }
 0x908   :  { %6743 = vmatprep.subr.bf16.mxu0 %v9079_v6  ;;  %6772 = vmatprep.subr.bf16.mxu1 %v9025_v52 }
 0x90b   :  { %6745 = vmatpush1.bf16.msra.mxu0 %v9080_v50  ;;  %6774 = vmatpush3.bf16.msra.mxu1 %v9081_v40  ;;  %v3957_v50 = vld [vmem:[%s8830_s7] sm:$0xff]  ;;  %v3958_v40 = vld [vmem:[%s8830_s7 + $0x8] sm:$0xff] }
 0x90c   :  { %6747 = vmatprep.subr.bf16.mxu0 %v9082_v5  ;;  %6775 = vmatprep.subr.bf16.mxu1 %v9025_v52  ;;  %v6790_v5 = vpack.c.bf16 %v3958_v40, %v3957_v50 }
 0x90e   :  { %v7002_v37 = vpop.eup %7001 }
 0x90f   :  { %v3637_v11 = vmul.f32 %v7002_v37, %v3636_v25  ;;  %6749 = vmatpush1.bf16.msra.mxu0 %v9084_v55  ;;  %6777 = vmatpush3.bf16.msra.mxu1 %v9085_v56  ;;  %v7004_v6 = vpop.eup %7003  ;;  %v3959_v56 = vld [vmem:[%s8830_s7 + $0x10] sm:$0xff] }
 0x910   :  { %6751 = vmatprep.subr.bf16.mxu0 %v9114_v45  ;;  %6778 = vmatprep.subr.bf16.mxu1 %v9025_v52  ;;  %v9254_v45 = vld [vmem:[#allocation66_spill] sm:$0xff] }
 0x911   :  { %v3638_v32 = vadd.f32 %v3637_v11, %v3480_v19 }
 0x913   :  { %7005 = vtanh.f32 %v3638_v32  ;;  %6753 = vmatpush1.bf16.msra.mxu0 %v9087_v24  ;;  %6780 = vmatpush3.bf16.msra.mxu1 %v9088_v16  ;;  %v3960_v24 = vld [vmem:[%s8830_s7 + $0x18] sm:$0xff] }
 0x914   :  { %6755 = vmatprep.subr.bf16.mxu0 %v9089_v36  ;;  %6781 = vmatprep.subr.bf16.mxu1 %v9025_v52  ;;  %v3640_v36 = vsub.f32 1.0, %v7004_v6 }
 0x917   :  { %6757 = vmatpush1.bf16.msra.mxu0 %v9115_v30  ;;  %6783 = vmatpush3.bf16.msra.mxu1 %v9091_v0  ;;  %v3642_v0 = vmul.f32 %v7004_v6, %v8607_v43  ;;  %v3964_v30 = vld [vmem:[%s8830_s7 + $0x38] sm:$0xff]  ;;  %v3966_v43 = vld [vmem:[%s8830_s7 + $0x48] sm:$0xff] }
 0x918   :  { %6759 = vmatprep.subr.bf16.mxu0 %v9092_v1  ;;  %6784 = vmatprep.subr.bf16.mxu1 %v9025_v52  ;;  %v3962_v1 = vld [vmem:[%s8830_s7 + $0x28] sm:$0xff]  ;;  %v6806_v13 = vpack.c.bf16 %v3966_v43, %v3965_v33 }
 0x91b   :  { %6761 = vmatpush1.bf16.msra.mxu0 %v9116_v63  ;;  %6786 = vmatpush3.bf16.msra.mxu1 %v9064_v3 }
 0x91c   :  { %6763 = vmatprep.subr.bf16.mxu0 %v9065_v22  ;;  %6787 = vmatprep.subr.bf16.mxu1 %v9025_v52  ;;  %v6794_v52 = vpack.c.bf16 %v3960_v24, %v3959_v56  ;;  %v3961_v22 = vld [vmem:[%s8830_s7 + $0x20] sm:$0xff] }
 0x91d   :  { %v7006_v55 = vpop.eup %7005 }
 0x91e   :  { %v3641_v16 = vmul.f32 %v7006_v55, %v3640_v36 }
 0x91f   :  { %6765 = vmatpush1.bf16.msra.mxu0 %v9066_v59  ;;  %6789 = vmatpush3.bf16.msra.mxu1 %v9067_v60  ;;  %v6798_v59 = vpack.c.bf16 %v3962_v1, %v3961_v22  ;;  %v3963_v60 = vld [vmem:[%s8830_s7 + $0x30] sm:$0xff] }
 0x920   :  { %v3643_v3 = vadd.f32 %v3642_v0, %v3641_v16  ;;  %6791 = vmatprep.subr.bf16.mxu0 %v6790_v5  ;;  %v6802_v63 = vpack.c.bf16 %v3964_v30, %v3963_v60 }
 0x922   :  { %3850 = vmatmul.mubr.f32.vlgmr.msra.gmra.mrb[28].mxu0 %v3643_v3  ;;  %5400 = vmatmul.mubr.f32.vlgmr.msra.gmra.mrb[48].mxu1 %v3643_v3 }
 0x923   :  { %6793 = vmatpush3.bf16.msra.mxu0 %v6790_v5  ;;  %5434 = vmatprep.mubr.f32.mxu0 %v9254_v45 }
 0x924   :  { %6795 = vmatprep.subr.bf16.mxu0 %v6794_v52 }
 0x927   :  { %6797 = vmatpush3.bf16.msra.mxu0 %v6794_v52 }
 0x928   :  { %6799 = vmatprep.subr.bf16.mxu0 %v6798_v59 }
 0x92b   :  { %6801 = vmatpush3.bf16.msra.mxu0 %v6798_v59 }
 0x92c   :  { %6803 = vmatprep.subr.bf16.mxu0 %v6802_v63 }
 0x92f   :  { %6805 = vmatpush3.bf16.msra.mxu0 %v6802_v63 }
 0x930   :  { %6807 = vmatprep.subr.bf16.mxu0 %v6806_v13 }
 0x933   :  { %6809 = vmatpush3.bf16.msra.mxu0 %v6806_v13 }
 0x934   :  { %6811 = vmatprep.subr.bf16.mxu0 %v6810_v28 }
 0x937   :  { %6813 = vmatpush3.bf16.msra.mxu0 %v6810_v28 }
 0x938   :  { %6815 = vmatprep.subr.bf16.mxu0 %v6814_v38 }
 0x93b   :  { %6817 = vmatpush3.bf16.msra.mxu0 %v6814_v38 }
 0x93c   :  { %6819 = vmatprep.subr.bf16.mxu0 %v6818_v44 }
 0x93f   :  { %6821 = vmatpush3.bf16.msra.mxu0 %v6818_v44 }
 0x942   :  { %5435 = vmatmul.mubr.f32.vlgmr.msra.gmra.mrb[30].mxu0 %v9255_v29 }
 0x943   :  { %5437 = vmatprep.mubr.f32.mxu0 %v9256_v57 }
 0x946   :  { %5438 = vmatmul.mubr.f32.gmra.mrb[32].mxu0 %v9257_v61 }
 0x947   :  { %5440 = vmatprep.mubr.f32.mxu0 %v8432_v2 }
 0x94a   :  { %5441 = vmatmul.mubr.f32.gmra.mrb[34].mxu0 %v8563_v47 }
 0x94b   :  { %5443 = vmatprep.mubr.f32.mxu0 %v8694_v26 }
 0x9d5   :  { %v3781_v54 = vpop.f32.mrb[46].mxu1 }
 0x9d6   :  { %v5366_v58 = vpop.f32.mrb[47].mxu1  ;;  %v3940_v20 = vadd.f32 %v9218_v17, %v3781_v54 }
 0x9f5   :  { %v3851_v48 = vpop.f32.mrb[28].mxu0  ;;  %v3922_v53 = vpop.f32.mrb[48].mxu1 }
 0x9f6   :  { %v3852_v4 = vadd.f32 %v9216_v39, %v3851_v48  ;;  %v3853_v51 = vpop.f32.mrb[29].mxu0  ;;  %v5401_v46 = vpop.f32.mrb[49].mxu1  ;;  %v3923_v27 = vadd.f32 %v9219_v41, %v3922_v53  ;;  %v4129_v39 = vld [vmem:[%s8831_s8] ss:$0 sm:$0xff] }
 0x9f7   :  { %v3854_v8 = vadd.f32 %v9217_v42, %v3853_v51 }
 0x9f8   :  { %v4127_v35 = vmul.f32 -1.442695, %v3852_v4 }
 0x9f9   :  { %v4128_v9 = vmul.f32 -1.442695, %v3854_v8 }
 0x9fa   :  { %7007 = vpow2.f32 %v4127_v35 }
 0x9fb   :  { %7009 = vpow2.f32 %v4128_v9 }
 0xa04   :  { %v7008_v14 = vpop.eup %7007 }
 0xa05   :  { %v3934_v2 = vadd.f32 1.0, %v7008_v14  ;;  %v7010_v47 = vpop.eup %7009 }
 0xa06   :  { %v3935_v15 = vadd.f32 1.0, %v7010_v47 }
 0xa07   :  { %7011 = vrcp.f32 %v3934_v2 }
 0xa08   :  { %7013 = vrcp.f32 %v3935_v15 }
 0xa11   :  { %v7012_v21 = vpop.eup %7011 }
 0xa12   :  { %v3941_v34 = vmul.f32 %v7012_v21, %v3940_v20  ;;  %v7014_v32 = vpop.eup %7013 }
 0xa13   :  { %v3944_v5 = vsub.f32 1.0, %v7014_v32  ;;  %v3946_v24 = vmul.f32 %v7014_v32, %v8694_v26 }
 0xa14   :  { %v3942_v42 = vadd.f32 %v3941_v34, %v3923_v27 }
 0xa15   :  { %v5436_v7 = vpop.f32.mrb[30].mxu0 }
 0xa16   :  { %7015 = vtanh.f32 %v3942_v42  ;;  %v4052_v12 = vadd.f32 %v5436_v7, %v4129_v39  ;;  %v4046_v25 = vpop.f32.mrb[31].mxu0 }
 0xa17   :  { %v4047_v37 = vadd.f32 %v4129_v39, %v4046_v25 }
 0xa18   :  { %4086 = vst [vmem:[%s8832_s9 + $0x8] sm:$0xff] %v4052_v12 }
 0xa19   :  { %4085 = vst [vmem:[%s8832_s9] sm:$0xff] %v4047_v37  ;;  %v5439_v41 = vpop.f32.mrb[32].mxu0 }
 0xa1a   :  { %v4062_v17 = vadd.f32 %v5439_v41, %v4129_v39  ;;  %v4056_v19 = vpop.f32.mrb[33].mxu0 }
 0xa1b   :  { %v4057_v11 = vadd.f32 %v4129_v39, %v4056_v19 }
 0xa1c   :  { %4088 = vst [vmem:[%s8832_s9 + $0x18] sm:$0xff] %v4062_v17 }
 0xa1d   :  { %4087 = vst [vmem:[%s8832_s9 + $0x10] sm:$0xff] %v4057_v11  ;;  %v5442_v6 = vpop.f32.mrb[34].mxu0 }
 0xa1e   :  { %v4072_v50 = vadd.f32 %v5442_v6, %v4129_v39  ;;  %v4066_v40 = vpop.f32.mrb[35].mxu0 }
 0xa1f   :  { %v4067_v36 = vadd.f32 %v4129_v39, %v4066_v40 }
 0xa20   :  { %v7016_v55 = vpop.eup %7015  ;;  %4090 = vst [vmem:[%s8832_s9 + $0x28] sm:$0xff] %v4072_v50 }
 0xa21   :  { %4089 = vst [vmem:[%s8832_s9 + $0x20] sm:$0xff] %v4067_v36  ;;  %v3945_v56 = vmul.f32 %v7016_v55, %v3944_v5 }
 0xa23   :  { %v3947_v16 = vadd.f32 %v3946_v24, %v3945_v56 }
 0xa25   :  { %5444 = vmatmul.mubr.f32.gmra.mrb[36].mxu0 %v3947_v16 }
 0xaf8   :  { %v5445_v0 = vpop.f32.mrb[36].mxu0 }
 0xaf9   :  { %v4082_v3 = vadd.f32 %v5445_v0, %v4129_v39  ;;  %v4076_v52 = vpop.f32.mrb[37].mxu0 }
 0xafa   :  { %v4077_v22 = vadd.f32 %v4129_v39, %v4076_v52 }
 0xafb   :  { %4092 = vst [vmem:[%s8832_s9 + $0x38] sm:$0xff] %v4082_v3 }
 0xafc   :  { %4091 = vst [vmem:[%s8832_s9 + $0x30] sm:$0xff] %v4077_v22 }

</bundles_post_ra>
